<compile_context>
chip_gen: v7x
topology: tpu7x:2x2x1
jax: 0.10.0
libtpu: 0.0.40
codegen_flags: <defaults>
</compile_context>

<pallas_src>
import jax
import jax.numpy as jnp
from jax.experimental import pallas as pl
from jax.experimental.pallas import tpu as pltpu

# ---- small synthetic shapes consistent with the module ---------------------
BATCH = 2
NVIEW = 2            # AP + LAT
NJOINTS = 4          # config.num_classes
HM = 32              # heatmap h = w  (module hard-codes 128; scaled down)
HW = HM * HM         # 1024 -> lane-dense last dim
IMG = 4 * HM         # input image size (scale_trans = 0.25)
C_HID = 32           # hidden channels of the synthetic backbone
C_FEAT = 8           # channels of feature_before_final
JF = NJOINTS + C_FEAT
SOFTMAX_TEMP = 0.05  # SoftArgmax2D softmax_temp
INV_TEMP = 1.0 / SOFTMAX_TEMP


def _num_blocks():
    # 2 TensorCores per chip on v7x -> split BV across them; single-TC
    # generations (v5e / v6e) run a single whole-array block (no grid
    # step overhead, everything fits VMEM with huge margin).
    try:
        kind = jax.devices()[0].device_kind.lower()
    except Exception:
        return 1
    return 2 if ("v7" in kind or "7x" in kind) else 1


# ============================ Pallas kernels ================================

def _backbone_head_kernel(rows_ref, w1e_ref, b1_ref, w2t_ref, b2t_ref, xy_ref,
                          hms_ref, cm_ref, feat_ref):
    """Backbone MLP + heatmaps + feature pooling + soft-argmax, fused.

    rows_ref : (bvt, 1, HW)   pooled pixel rows, one image per leading index
    hms_ref  : (bvt, J, HW)   heatmaps (lane-dense)
    cm_ref   : (bvt, J, 4)    [x, y, 1, maxv] per joint (single store)
    feat_ref : (bvt, C_FEAT, 1) per-image mean of the feature channels
    """
    bvt = rows_ref.shape[0]
    x = rows_ref[...]                           # (bvt, 1, HW)
    w1e = w1e_ref[...]                          # (C_HID, 1)
    b1 = b1_ref[...]                            # (C_HID, 1)
    w2t = w2t_ref[...]                          # (JF, C_HID)
    b2t = b2t_ref[...]                          # (JF, 1)
    xs = xy_ref[0:1, :]                         # (1, HW)
    ys = xy_ref[1:2, :]                         # (1, HW)

    hm_list, cm_list, ft_list = [], [], []
    for i in range(bvt):                        # small static unroll (<=4)
        p = x[i]                                              # (1, HW)
        h = jnp.maximum(w1e * p + b1, 0.0)                    # (C_HID, HW)
        o = jnp.dot(w2t, h,
                    preferred_element_type=jnp.float32) + b2t  # (JF, HW)
        hm = o[:NJOINTS, :]                                   # (J, HW)
        ft = jnp.mean(o[NJOINTS:, :], axis=1, keepdims=True)  # (C_FEAT, 1)

        # TODO(synk): SoftArgmax2D uniform windowing (window_width=15) around
        # the argmax is not reproduced; temperature-softmax expectation only.
        mx = jnp.max(hm, axis=1, keepdims=True)               # (J, 1)
        e = jnp.exp((hm - mx) * INV_TEMP)                     # (J, HW)
        s = jnp.sum(e, axis=1, keepdims=True)                 # (J, 1)
        inv_s = pl.reciprocal(s, approx=False)                # EUP
        ex = jnp.sum(e * xs, axis=1, keepdims=True) * inv_s
        ey = jnp.sum(e * ys, axis=1, keepdims=True) * inv_s
        cm = jnp.concatenate([ex, ey, jnp.ones_like(ex), mx], axis=1)  # (J,4)

        hm_list.append(hm)
        cm_list.append(cm)
        ft_list.append(ft)

    hms_ref[...] = jnp.stack(hm_list, axis=0)    # one lane-dense store
    cm_ref[...] = jnp.stack(cm_list, axis=0)     # one store for coords+maxv
    feat_ref[...] = jnp.stack(ft_list, axis=0)


def backbone_and_softargmax(rows, w1e, b1, w2t, b2t, xy, num_blocks):
    BV = rows.shape[0]
    bvt = BV // num_blocks
    return pl.pallas_call(
        _backbone_head_kernel,
        out_shape=(jax.ShapeDtypeStruct((BV, NJOINTS, HW), jnp.float32),
                   jax.ShapeDtypeStruct((BV, NJOINTS, 4), jnp.float32),
                   jax.ShapeDtypeStruct((BV, C_FEAT, 1), jnp.float32)),
        grid_spec=pltpu.PrefetchScalarGridSpec(
            num_scalar_prefetch=0,
            grid=(num_blocks,),
            in_specs=[
                pl.BlockSpec((bvt, 1, HW), lambda i: (i, 0, 0)),
                pl.BlockSpec((C_HID, 1), lambda i: (0, 0)),
                pl.BlockSpec((C_HID, 1), lambda i: (0, 0)),
                pl.BlockSpec((JF, C_HID), lambda i: (0, 0)),
                pl.BlockSpec((JF, 1), lambda i: (0, 0)),
                pl.BlockSpec((2, HW), lambda i: (0, 0)),
            ],
            out_specs=[
                pl.BlockSpec((bvt, NJOINTS, HW), lambda i: (i, 0, 0)),
                pl.BlockSpec((bvt, NJOINTS, 4), lambda i: (i, 0, 0)),
                pl.BlockSpec((bvt, C_FEAT, 1), lambda i: (i, 0, 0)),
            ],
        ),
        compiler_params=pltpu.CompilerParams(
            dimension_semantics=("parallel",)),
    )(rows, w1e, b1, w2t, b2t, xy)


def _fuse_softargmax_kernel(hm_ref, sc_ref, xy_ref, fused_ref, cm_ref):
    """Normalize+weight+cross-view fuse + soft-argmax, fused.

    hm_ref    : (bvt, J, HW)  raw heatmaps; leading index = (batch, view),
                              view fastest, so the other view of entry k is
                              k ^ 1 inside the same block.
    sc_ref    : (bvt, J, 2)   [self_scale, other_scale] = warp_weight / maxv
    fused_ref : (bvt, J, HW)  fused heatmaps
    cm_ref    : (bvt, J, 3)   [x, y, 1] per joint
    """
    bvt = hm_ref.shape[0]
    h = hm_ref[...]                             # (bvt, J, HW)
    sc = sc_ref[...]                            # (bvt, J, 2)
    xs = xy_ref[0:1, :]
    ys = xy_ref[1:2, :]

    f_list, cm_list = [], []
    for k in range(bvt):
        partner = k ^ 1                         # other view, same batch item
        # TODO(synk): CamFusionModule epipolar warping not provided; the
        # other-view heatmap is fused un-warped.
        f = h[k] * sc[k, :, 0:1] + h[partner] * sc[k, :, 1:2]   # (J, HW)

        mx = jnp.max(f, axis=1, keepdims=True)
        e = jnp.exp((f - mx) * INV_TEMP)
        s = jnp.sum(e, axis=1, keepdims=True)
        inv_s = pl.reciprocal(s, approx=False)
        ex = jnp.sum(e * xs, axis=1, keepdims=True) * inv_s
        ey = jnp.sum(e * ys, axis=1, keepdims=True) * inv_s
        cm_list.append(jnp.concatenate([ex, ey, jnp.ones_like(ex)], axis=1))
        f_list.append(f)

    fused_ref[...] = jnp.stack(f_list, axis=0)
    cm_ref[...] = jnp.stack(cm_list, axis=0)


def fuse_and_softargmax(hms, scale, xy, num_blocks):
    BV = hms.shape[0]
    bvt = BV // num_blocks
    return pl.pallas_call(
        _fuse_softargmax_kernel,
        out_shape=(jax.ShapeDtypeStruct((BV, NJOINTS, HW), jnp.float32),
                   jax.ShapeDtypeStruct((BV, NJOINTS, 3), jnp.float32)),
        grid_spec=pltpu.PrefetchScalarGridSpec(
            num_scalar_prefetch=0,
            grid=(num_blocks,),
            in_specs=[
                pl.BlockSpec((bvt, NJOINTS, HW), lambda i: (i, 0, 0)),
                pl.BlockSpec((bvt, NJOINTS, 2), lambda i: (i, 0, 0)),
                pl.BlockSpec((2, HW), lambda i: (0, 0)),
            ],
            out_specs=[
                pl.BlockSpec((bvt, NJOINTS, HW), lambda i: (i, 0, 0)),
                pl.BlockSpec((bvt, NJOINTS, 3), lambda i: (i, 0, 0)),
            ],
        ),
        compiler_params=pltpu.CompilerParams(
            dimension_semantics=("parallel",)),
    )(hms, scale, xy)


# ============================ plain JAX glue ================================

def get_batch_fundamental_mat(r1, t1, k1, r2, t2, k2):
    n = r1.shape[0]
    r = jnp.einsum('bij,bkj->bik', r2, r1)                    # r2 @ r1^T
    t = (t2 - jnp.einsum('bij,bjk->bik', r, t1)).reshape(n, 3)
    z = jnp.zeros_like(t[:, 0])
    row0 = jnp.stack([z, -t[:, 2], t[:, 1]], axis=-1)
    row1 = jnp.stack([z, z, -t[:, 0]], axis=-1)
    row2 = jnp.stack([z, z, z], axis=-1)
    t_mat = jnp.stack([row0, row1, row2], axis=1)             # (n,3,3)
    t_mat = -jnp.transpose(t_mat, (0, 2, 1)) + t_mat
    inv_k1 = jnp.linalg.inv(k1)
    inv_k2 = jnp.linalg.inv(k2)
    inv_k2_t = jnp.transpose(inv_k2, (0, 2, 1))
    return inv_k2_t @ (t_mat @ (r @ inv_k1))


def get_fund_mat_pairs(cam_R, cam_T, cam_Intri):
    B, V = cam_R.shape[:2]
    R1 = jnp.broadcast_to(cam_R[:, None], (B, V, V, 3, 3)).reshape(-1, 3, 3)
    R2 = jnp.broadcast_to(cam_R[:, :, None], (B, V, V, 3, 3)).reshape(-1, 3, 3)
    T1 = jnp.broadcast_to(cam_T[:, None], (B, V, V, 3, 1)).reshape(-1, 3, 1)
    T2 = jnp.broadcast_to(cam_T[:, :, None], (B, V, V, 3, 1)).reshape(-1, 3, 1)
    K1 = jnp.broadcast_to(cam_Intri[:, None], (B, V, V, 3, 3)).reshape(-1, 3, 3)
    K2 = jnp.broadcast_to(cam_Intri[:, :, None], (B, V, V, 3, 3)).reshape(-1, 3, 3)
    fm = get_batch_fundamental_mat(R1, T1, K1, R2, T2, K2)
    return fm.reshape(B, V, V, 3, 3)


def adafuse_forward(params, AP_img, AP_K, AP_T, LAT_img, LAT_K, LAT_T,
                    num_blocks=1):
    inputs = jnp.stack([AP_img, LAT_img], axis=1)           # (B, V, 1, IMG, IMG)
    B, V = inputs.shape[:2]
    J = NJOINTS
    BV = B * V
    assert BV % num_blocks == 0 and (BV // num_blocks) % V == 0
    imgs = inputs.reshape(BV, IMG, IMG)

    # coordinate planes for soft-argmax (resident constant inside kernels)
    xs = (jnp.arange(HW, dtype=jnp.int32) % HM).astype(jnp.float32)
    ys = (jnp.arange(HW, dtype=jnp.int32) // HM).astype(jnp.float32)
    xy = jnp.stack([xs, ys], axis=0)                         # (2, HW)

    # --- synthetic backbone front end ----------------------------------------
    # TODO(synk): get_pose_net (pose ResNet) is not provided; stand-in = 4x4
    # average pooling + per-pixel 2-layer channel MLP.  The .repeat(1,3,1,1)
    # of the module is folded into w1 (3 identical channels -> w1.sum(0)).
    # TODO(synk): the 4x4 pooling + flatten stays in XLA (one fused reduce);
    # folding it in-kernel would need an (HM,HM)->(HW,) lane relayout.
    pooled = imgs.reshape(BV, HM, 4, HM, 4).mean(axis=(2, 4))     # (BV,HM,HM)
    rows = pooled.reshape(BV, 1, HW)                              # (BV,1,HW)
    w1e = params['w1'].sum(axis=0).reshape(C_HID, 1)
    b1 = params['b1'].reshape(C_HID, 1)
    w2t = params['w2'].T                                          # (JF, C_HID)
    b2t = params['b2'].reshape(JF, 1)

    # fused Pallas kernel #1: MLP head + heatmaps + feat pooling + soft-argmax
    hms, cm, feat = backbone_and_softargmax(rows, w1e, b1, w2t, b2t, xy,
                                            num_blocks)
    j2d_nofusion = jnp.transpose(cm[:, :, :3], (0, 2, 1))         # (BV,3,J)
    j2d_nofusion_maxv = cm[:, :, 3]                               # (BV,J)
    feat_pool = feat[:, :, 0]                                     # (BV,C_FEAT)

    # --- affine / camera setup ----------------------------------------------
    scale_trans = jnp.array([[0.25, 0., 0.],
                             [0., 0.25, 0.],
                             [0., 0., 1.]], jnp.float32)
    inv_affine = jnp.linalg.inv(scale_trans)
    inv_affine_bv = jnp.broadcast_to(inv_affine, (BV, 3, 3))

    cam_Intri = jnp.stack([AP_K, LAT_K], axis=1)[:, :, :, :3]     # (B,V,3,3)
    camTmat = jnp.stack([AP_T, LAT_T], axis=1)
    cam_R = camTmat[:, :, :3, :3]
    standard_cam_T = camTmat[:, :, :3, 3][..., None]              # (B,V,3,1)
    fund_mats2 = get_fund_mat_pairs(cam_R, standard_cam_T, cam_Intri)

    j2d_nofusion_img = jnp.matmul(inv_affine_bv, j2d_nofusion)    # (BV,3,J)
    j2d_nofusion_img = j2d_nofusion_img.reshape(B, V, 3, J)
    confi = j2d_nofusion_maxv.reshape(B, V, J)

    # --- epipolar distances ---------------------------------------------------
    eps = 1e-12
    dist_rows, conf_rows = [], []
    for i in range(V):
        others = [o for o in range(V) if o != i]
        d_i, c_i = [], []
        for jv in others:
            cv = j2d_nofusion_img[:, i]                     # (B,3,J)
            ov = j2d_nofusion_img[:, jv]
            F = fund_mats2[:, i, jv]                        # (B,3,3)
            l_i = jnp.einsum('bij,bjk->bik', F, ov)
            dist_d = jnp.sum(cv * l_i, axis=1) ** 2
            lp_i = jnp.einsum('bji,bjk->bik', F, cv)        # F^T @ cv
            div = (l_i[:, 0] ** 2 + l_i[:, 1] ** 2
                   + lp_i[:, 0] ** 2 + lp_i[:, 1] ** 2 + eps)
            d_i.append(dist_d / div)
            c_i.append(confi[:, i])
        dist_rows.append(jnp.stack(d_i, axis=1))            # (B,V-1,J)
        conf_rows.append(jnp.stack(c_i, axis=1))
    distances = jnp.sqrt(jnp.stack(dist_rows, axis=1))      # (B,V,V-1,J)
    confidences = jnp.stack(conf_rows, axis=1)

    # --- view weights ---------------------------------------------------------
    # TODO(synk): ViewWeightNet (conv/fc net) not provided; deterministic linear
    # surrogate over pooled features, confidences and epipolar distances.
    feat_score = feat_pool.reshape(B, V, C_FEAT) @ params['w_vw']   # (B,V)
    logits = (2.0 * confi - distances.mean(axis=2)
              + 0.5 * confidences.mean(axis=2) + feat_score[:, :, None])
    view_weight = jax.nn.softmax(logits, axis=1)                    # (B,V,J)

    # --- normalization + cross-view fusion + soft-argmax (fused Pallas #2) ----
    maxv = jnp.where(j2d_nofusion_maxv > 0.01, j2d_nofusion_maxv,
                     jnp.full_like(j2d_nofusion_maxv, 1e6))         # (BV,J)
    inv_maxv = (1.0 / maxv).reshape(B, V, J)
    vw_self = view_weight                                           # (B,V,J)
    vw_other = view_weight[:, ::-1, :]                              # V == 2
    inv_maxv_other = inv_maxv[:, ::-1, :]
    scale = jnp.stack([vw_self * inv_maxv, vw_other * inv_maxv_other],
                      axis=-1).reshape(BV, J, 2)                    # (BV,J,2)

    fused_flat, cm2 = fuse_and_softargmax(hms, scale, xy, num_blocks)
    j2d_fused = jnp.transpose(cm2, (0, 2, 1))                       # (BV,3,J)
    j2d_fused_image = jnp.matmul(inv_affine_bv, j2d_fused).reshape(B, V, 3, J)
    fused_hm = fused_flat.reshape(BV, J, HM, HM)
    return j2d_fused_image[:, :, :2, :], fused_hm


# ============================ params / inputs ===============================

def init_params(key):
    k1, k2, k3, k4, k5 = jax.random.split(key, 5)
    return {
        'w1': 0.5 * jax.random.normal(k1, (3, C_HID), jnp.float32),
        'b1': 0.1 * jax.random.normal(k2, (1, C_HID), jnp.float32),
        'w2': 0.5 * jax.random.normal(k3, (C_HID, JF), jnp.float32),
        'b2': 0.1 * jax.random.normal(k4, (1, JF), jnp.float32),
        'w_vw': 0.1 * jax.random.normal(k5, (C_FEAT,), jnp.float32),
    }


def make_cameras(batch):
    f, cx, cy = 500.0, 64.0, 64.0
    K = jnp.array([[f, 0., cx, 0.],
                   [0., f, cy, 0.],
                   [0., 0., 1., 0.]], jnp.float32)
    AP_K = jnp.broadcast_to(K, (batch, 3, 4))
    LAT_K = AP_K
    R_ap = jnp.eye(3, dtype=jnp.float32)
    c = jnp.cos(jnp.pi / 2).astype(jnp.float32)
    s = jnp.sin(jnp.pi / 2).astype(jnp.float32)
    R_lat = jnp.array([[c, 0., s], [0., 1., 0.], [-s, 0., c]], jnp.float32)

    def ext(R, t):
        T = jnp.eye(4, dtype=jnp.float32)
        return T.at[:3, :3].set(R).at[:3, 3].set(t)

    AP_T = jnp.broadcast_to(ext(R_ap, jnp.array([0.1, 0.2, 5.0], jnp.float32)),
                            (batch, 4, 4))
    LAT_T = jnp.broadcast_to(ext(R_lat, jnp.array([-0.2, 0.1, 5.0], jnp.float32)),
                             (batch, 4, 4))
    return AP_K, AP_T, LAT_K, LAT_T


if __name__ == "__main__":
    key = jax.random.PRNGKey(0)
    kp, ki1, ki2 = jax.random.split(key, 3)
    params = init_params(kp)
    AP_img = jax.random.normal(ki1, (BATCH, 1, IMG, IMG), jnp.float32)
    LAT_img = jax.random.normal(ki2, (BATCH, 1, IMG, IMG), jnp.float32)
    AP_K, AP_T, LAT_K, LAT_T = make_cameras(BATCH)

    nb = _num_blocks()
    fwd = jax.jit(lambda p, a, ak, at, l, lk, lt: adafuse_forward(
        p, a, ak, at, l, lk, lt, num_blocks=nb))
    j2d, fused_hm = fwd(params, AP_img, AP_K, AP_T, LAT_img, LAT_K, LAT_T)
    jax.block_until_ready((j2d, fused_hm))

    assert j2d.shape == (BATCH, NVIEW, 2, NJOINTS)
    assert fused_hm.shape == (BATCH * NVIEW, NJOINTS, HM, HM)
    print("KERNEL_OK")
</pallas_src>

<mosaic_0001>
module attributes {stable_mosaic.version = 11 : i64} {
  func.func @_backbone_head_kernel(%arg0: i32, %arg1: memref<4x1x1024xf32, #tpu.memory_space<vmem>>, %arg2: memref<32x1xf32, #tpu.memory_space<vmem>>, %arg3: memref<32x1xf32, #tpu.memory_space<vmem>>, %arg4: memref<12x32xf32, #tpu.memory_space<vmem>>, %arg5: memref<12x1xf32, #tpu.memory_space<vmem>>, %arg6: memref<2x1024xf32, #tpu.memory_space<vmem>>, %arg7: memref<4x4x1024xf32, #tpu.memory_space<vmem>>, %arg8: memref<4x4x4xf32, #tpu.memory_space<vmem>>, %arg9: memref<4x8x1xf32, #tpu.memory_space<vmem>>) attributes {dimension_semantics = [#tpu.dimension_semantics<parallel>], iteration_bounds = array<i64: 1>, scalar_prefetch = 0 : i64, scratch_operands = 0 : i64, tpu.core_type = #tpu.core_type<tc>, window_params = [{transform_indices = @transform_0, window_bounds = array<i64: 4, 1, 1024>}, {pipeline_mode = #tpu.pipeline_mode<synchronous>, transform_indices = @transform_1, window_bounds = array<i64: 32, 1>}, {pipeline_mode = #tpu.pipeline_mode<synchronous>, transform_indices = @transform_2, window_bounds = array<i64: 32, 1>}, {pipeline_mode = #tpu.pipeline_mode<synchronous>, transform_indices = @transform_3, window_bounds = array<i64: 12, 32>}, {pipeline_mode = #tpu.pipeline_mode<synchronous>, transform_indices = @transform_4, window_bounds = array<i64: 12, 1>}, {pipeline_mode = #tpu.pipeline_mode<synchronous>, transform_indices = @transform_5, window_bounds = array<i64: 2, 1024>}, {transform_indices = @transform_6, window_bounds = array<i64: 4, 4, 1024>}, {transform_indices = @transform_7, window_bounds = array<i64: 4, 4, 4>}, {transform_indices = @transform_8, window_bounds = array<i64: 4, 8, 1>}]} {
    %c0 = arith.constant 0 : index
    %c0_0 = arith.constant 0 : index
    %c0_1 = arith.constant 0 : index
    %0 = vector.load %arg1[%c0, %c0_0, %c0_1] : memref<4x1x1024xf32, #tpu.memory_space<vmem>>, vector<4x1x1024xf32>
    %c0_2 = arith.constant 0 : index
    %c0_3 = arith.constant 0 : index
    %1 = vector.load %arg2[%c0_2, %c0_3] : memref<32x1xf32, #tpu.memory_space<vmem>>, vector<32x1xf32>
    %c0_4 = arith.constant 0 : index
    %c0_5 = arith.constant 0 : index
    %2 = vector.load %arg3[%c0_4, %c0_5] : memref<32x1xf32, #tpu.memory_space<vmem>>, vector<32x1xf32>
    %c0_6 = arith.constant 0 : index
    %c0_7 = arith.constant 0 : index
    %3 = vector.load %arg4[%c0_6, %c0_7] : memref<12x32xf32, #tpu.memory_space<vmem>>, vector<12x32xf32>
    %c0_8 = arith.constant 0 : index
    %c0_9 = arith.constant 0 : index
    %4 = vector.load %arg5[%c0_8, %c0_9] : memref<12x1xf32, #tpu.memory_space<vmem>>, vector<12x1xf32>
    %c0_10 = arith.constant 0 : index
    %c0_11 = arith.constant 0 : index
    %5 = vector.load %arg6[%c0_10, %c0_11] : memref<2x1024xf32, #tpu.memory_space<vmem>>, vector<1x1024xf32>
    %c1 = arith.constant 1 : index
    %c0_12 = arith.constant 0 : index
    %6 = vector.load %arg6[%c1, %c0_12] : memref<2x1024xf32, #tpu.memory_space<vmem>>, vector<1x1024xf32>
    %7 = vector.extract_strided_slice %0 {offsets = [0, 0, 0], sizes = [1, 1, 1024], strides = [1, 1, 1]} : vector<4x1x1024xf32> to vector<1x1x1024xf32>
    %8 = vector.shape_cast %7 : vector<1x1x1024xf32> to vector<1x1024xf32>
    %9 = vector.broadcast %1 : vector<32x1xf32> to vector<32x1024xf32>
    %10 = vector.broadcast %8 : vector<1x1024xf32> to vector<32x1024xf32>
    %11 = arith.mulf %9, %10 : vector<32x1024xf32>
    %12 = vector.broadcast %2 : vector<32x1xf32> to vector<32x1024xf32>
    %13 = arith.addf %11, %12 : vector<32x1024xf32>
    %cst = arith.constant 0.000000e+00 : f32
    %14 = vector.broadcast %cst : f32 to vector<32x1024xf32>
    %15 = arith.maximumf %13, %14 : vector<32x1024xf32>
    %cst_13 = arith.constant dense<0.000000e+00> : vector<12x1024xf32>
    %16 = tpu.matmul %3, %15, %cst_13 {dimension_numbers = #tpu.dot_dimension_numbers<[1], [0], [0], [1], [0, 0, 1, 1], [], []>} : vector<12x32xf32>, vector<32x1024xf32>, vector<12x1024xf32> -> vector<12x1024xf32>
    %17 = vector.broadcast %4 : vector<12x1xf32> to vector<12x1024xf32>
    %18 = arith.addf %16, %17 : vector<12x1024xf32>
    %19 = vector.extract_strided_slice %18 {offsets = [0, 0], sizes = [4, 1024], strides = [1, 1]} : vector<12x1024xf32> to vector<4x1024xf32>
    %20 = vector.extract_strided_slice %18 {offsets = [4, 0], sizes = [8, 1024], strides = [1, 1]} : vector<12x1024xf32> to vector<8x1024xf32>
    %cst_14 = arith.constant dense<0.000000e+00> : vector<8xf32>
    %21 = vector.multi_reduction <add>, %20, %cst_14 [1] : vector<8x1024xf32> to vector<8xf32>
    %22 = vector.shape_cast %21 : vector<8xf32> to vector<8x1xf32>
    %cst_15 = arith.constant 1.024000e+03 : f32
    %23 = vector.broadcast %cst_15 : f32 to vector<8x1xf32>
    %24 = arith.divf %22, %23 : vector<8x1xf32>
    %cst_16 = arith.constant dense<0xFF800000> : vector<4xf32>
    %25 = vector.multi_reduction <maximumf>, %19, %cst_16 [1] : vector<4x1024xf32> to vector<4xf32>
    %26 = vector.shape_cast %25 : vector<4xf32> to vector<4x1xf32>
    %27 = vector.broadcast %26 : vector<4x1xf32> to vector<4x1024xf32>
    %28 = arith.subf %19, %27 : vector<4x1024xf32>
    %cst_17 = arith.constant 2.000000e+01 : f32
    %29 = vector.broadcast %cst_17 : f32 to vector<4x1024xf32>
    %30 = arith.mulf %28, %29 : vector<4x1024xf32>
    %31 = math.exp %30 : vector<4x1024xf32>
    %cst_18 = arith.constant dense<0.000000e+00> : vector<4xf32>
    %32 = vector.multi_reduction <add>, %31, %cst_18 [1] : vector<4x1024xf32> to vector<4xf32>
    %33 = vector.shape_cast %32 : vector<4xf32> to vector<4x1xf32>
    %34 = tpu.reciprocal %33 : vector<4x1xf32> -> vector<4x1xf32>
    %35 = vector.broadcast %5 : vector<1x1024xf32> to vector<4x1024xf32>
    %36 = arith.mulf %31, %35 : vector<4x1024xf32>
    %cst_19 = arith.constant dense<0.000000e+00> : vector<4xf32>
    %37 = vector.multi_reduction <add>, %36, %cst_19 [1] : vector<4x1024xf32> to vector<4xf32>
    %38 = vector.shape_cast %37 : vector<4xf32> to vector<4x1xf32>
    %39 = arith.mulf %38, %34 : vector<4x1xf32>
    %40 = vector.broadcast %6 : vector<1x1024xf32> to vector<4x1024xf32>
    %41 = arith.mulf %31, %40 : vector<4x1024xf32>
    %cst_20 = arith.constant dense<0.000000e+00> : vector<4xf32>
    %42 = vector.multi_reduction <add>, %41, %cst_20 [1] : vector<4x1024xf32> to vector<4xf32>
    %43 = vector.shape_cast %42 : vector<4xf32> to vector<4x1xf32>
    %44 = arith.mulf %43, %34 : vector<4x1xf32>
    %cst_21 = arith.constant 1.000000e+00 : f32
    %45 = vector.broadcast %cst_21 : f32 to vector<4x1xf32>
    %46 = tpu.concatenate %39, %44, %45, %26 in 1 : vector<4x1xf32>, vector<4x1xf32>, vector<4x1xf32>, vector<4x1xf32> -> vector<4x4xf32>
    %47 = vector.extract_strided_slice %0 {offsets = [1, 0, 0], sizes = [1, 1, 1024], strides = [1, 1, 1]} : vector<4x1x1024xf32> to vector<1x1x1024xf32>
    %48 = vector.shape_cast %47 : vector<1x1x1024xf32> to vector<1x1024xf32>
    %49 = vector.broadcast %1 : vector<32x1xf32> to vector<32x1024xf32>
    %50 = vector.broadcast %48 : vector<1x1024xf32> to vector<32x1024xf32>
    %51 = arith.mulf %49, %50 : vector<32x1024xf32>
    %52 = vector.broadcast %2 : vector<32x1xf32> to vector<32x1024xf32>
    %53 = arith.addf %51, %52 : vector<32x1024xf32>
    %cst_22 = arith.constant 0.000000e+00 : f32
    %54 = vector.broadcast %cst_22 : f32 to vector<32x1024xf32>
    %55 = arith.maximumf %53, %54 : vector<32x1024xf32>
    %cst_23 = arith.constant dense<0.000000e+00> : vector<12x1024xf32>
    %56 = tpu.matmul %3, %55, %cst_23 {dimension_numbers = #tpu.dot_dimension_numbers<[1], [0], [0], [1], [0, 0, 1, 1], [], []>} : vector<12x32xf32>, vector<32x1024xf32>, vector<12x1024xf32> -> vector<12x1024xf32>
    %57 = vector.broadcast %4 : vector<12x1xf32> to vector<12x1024xf32>
    %58 = arith.addf %56, %57 : vector<12x1024xf32>
    %59 = vector.extract_strided_slice %58 {offsets = [0, 0], sizes = [4, 1024], strides = [1, 1]} : vector<12x1024xf32> to vector<4x1024xf32>
    %60 = vector.extract_strided_slice %58 {offsets = [4, 0], sizes = [8, 1024], strides = [1, 1]} : vector<12x1024xf32> to vector<8x1024xf32>
    %cst_24 = arith.constant dense<0.000000e+00> : vector<8xf32>
    %61 = vector.multi_reduction <add>, %60, %cst_24 [1] : vector<8x1024xf32> to vector<8xf32>
    %62 = vector.shape_cast %61 : vector<8xf32> to vector<8x1xf32>
    %cst_25 = arith.constant 1.024000e+03 : f32
    %63 = vector.broadcast %cst_25 : f32 to vector<8x1xf32>
    %64 = arith.divf %62, %63 : vector<8x1xf32>
    %cst_26 = arith.constant dense<0xFF800000> : vector<4xf32>
    %65 = vector.multi_reduction <maximumf>, %59, %cst_26 [1] : vector<4x1024xf32> to vector<4xf32>
    %66 = vector.shape_cast %65 : vector<4xf32> to vector<4x1xf32>
    %67 = vector.broadcast %66 : vector<4x1xf32> to vector<4x1024xf32>
    %68 = arith.subf %59, %67 : vector<4x1024xf32>
    %cst_27 = arith.constant 2.000000e+01 : f32
    %69 = vector.broadcast %cst_27 : f32 to vector<4x1024xf32>
    %70 = arith.mulf %68, %69 : vector<4x1024xf32>
    %71 = math.exp %70 : vector<4x1024xf32>
    %cst_28 = arith.constant dense<0.000000e+00> : vector<4xf32>
    %72 = vector.multi_reduction <add>, %71, %cst_28 [1] : vector<4x1024xf32> to vector<4xf32>
    %73 = vector.shape_cast %72 : vector<4xf32> to vector<4x1xf32>
    %74 = tpu.reciprocal %73 : vector<4x1xf32> -> vector<4x1xf32>
    %75 = vector.broadcast %5 : vector<1x1024xf32> to vector<4x1024xf32>
    %76 = arith.mulf %71, %75 : vector<4x1024xf32>
    %cst_29 = arith.constant dense<0.000000e+00> : vector<4xf32>
    %77 = vector.multi_reduction <add>, %76, %cst_29 [1] : vector<4x1024xf32> to vector<4xf32>
    %78 = vector.shape_cast %77 : vector<4xf32> to vector<4x1xf32>
    %79 = arith.mulf %78, %74 : vector<4x1xf32>
    %80 = vector.broadcast %6 : vector<1x1024xf32> to vector<4x1024xf32>
    %81 = arith.mulf %71, %80 : vector<4x1024xf32>
    %cst_30 = arith.constant dense<0.000000e+00> : vector<4xf32>
    %82 = vector.multi_reduction <add>, %81, %cst_30 [1] : vector<4x1024xf32> to vector<4xf32>
    %83 = vector.shape_cast %82 : vector<4xf32> to vector<4x1xf32>
    %84 = arith.mulf %83, %74 : vector<4x1xf32>
    %cst_31 = arith.constant 1.000000e+00 : f32
    %85 = vector.broadcast %cst_31 : f32 to vector<4x1xf32>
    %86 = tpu.concatenate %79, %84, %85, %66 in 1 : vector<4x1xf32>, vector<4x1xf32>, vector<4x1xf32>, vector<4x1xf32> -> vector<4x4xf32>
    %87 = vector.extract_strided_slice %0 {offsets = [2, 0, 0], sizes = [1, 1, 1024], strides = [1, 1, 1]} : vector<4x1x1024xf32> to vector<1x1x1024xf32>
    %88 = vector.shape_cast %87 : vector<1x1x1024xf32> to vector<1x1024xf32>
    %89 = vector.broadcast %1 : vector<32x1xf32> to vector<32x1024xf32>
    %90 = vector.broadcast %88 : vector<1x1024xf32> to vector<32x1024xf32>
    %91 = arith.mulf %89, %90 : vector<32x1024xf32>
    %92 = vector.broadcast %2 : vector<32x1xf32> to vector<32x1024xf32>
    %93 = arith.addf %91, %92 : vector<32x1024xf32>
    %cst_32 = arith.constant 0.000000e+00 : f32
    %94 = vector.broadcast %cst_32 : f32 to vector<32x1024xf32>
    %95 = arith.maximumf %93, %94 : vector<32x1024xf32>
    %cst_33 = arith.constant dense<0.000000e+00> : vector<12x1024xf32>
    %96 = tpu.matmul %3, %95, %cst_33 {dimension_numbers = #tpu.dot_dimension_numbers<[1], [0], [0], [1], [0, 0, 1, 1], [], []>} : vector<12x32xf32>, vector<32x1024xf32>, vector<12x1024xf32> -> vector<12x1024xf32>
    %97 = vector.broadcast %4 : vector<12x1xf32> to vector<12x1024xf32>
    %98 = arith.addf %96, %97 : vector<12x1024xf32>
    %99 = vector.extract_strided_slice %98 {offsets = [0, 0], sizes = [4, 1024], strides = [1, 1]} : vector<12x1024xf32> to vector<4x1024xf32>
    %100 = vector.extract_strided_slice %98 {offsets = [4, 0], sizes = [8, 1024], strides = [1, 1]} : vector<12x1024xf32> to vector<8x1024xf32>
    %cst_34 = arith.constant dense<0.000000e+00> : vector<8xf32>
    %101 = vector.multi_reduction <add>, %100, %cst_34 [1] : vector<8x1024xf32> to vector<8xf32>
    %102 = vector.shape_cast %101 : vector<8xf32> to vector<8x1xf32>
    %cst_35 = arith.constant 1.024000e+03 : f32
    %103 = vector.broadcast %cst_35 : f32 to vector<8x1xf32>
    %104 = arith.divf %102, %103 : vector<8x1xf32>
    %cst_36 = arith.constant dense<0xFF800000> : vector<4xf32>
    %105 = vector.multi_reduction <maximumf>, %99, %cst_36 [1] : vector<4x1024xf32> to vector<4xf32>
    %106 = vector.shape_cast %105 : vector<4xf32> to vector<4x1xf32>
    %107 = vector.broadcast %106 : vector<4x1xf32> to vector<4x1024xf32>
    %108 = arith.subf %99, %107 : vector<4x1024xf32>
    %cst_37 = arith.constant 2.000000e+01 : f32
    %109 = vector.broadcast %cst_37 : f32 to vector<4x1024xf32>
    %110 = arith.mulf %108, %109 : vector<4x1024xf32>
    %111 = math.exp %110 : vector<4x1024xf32>
    %cst_38 = arith.constant dense<0.000000e+00> : vector<4xf32>
    %112 = vector.multi_reduction <add>, %111, %cst_38 [1] : vector<4x1024xf32> to vector<4xf32>
    %113 = vector.shape_cast %112 : vector<4xf32> to vector<4x1xf32>
    %114 = tpu.reciprocal %113 : vector<4x1xf32> -> vector<4x1xf32>
    %115 = vector.broadcast %5 : vector<1x1024xf32> to vector<4x1024xf32>
    %116 = arith.mulf %111, %115 : vector<4x1024xf32>
    %cst_39 = arith.constant dense<0.000000e+00> : vector<4xf32>
    %117 = vector.multi_reduction <add>, %116, %cst_39 [1] : vector<4x1024xf32> to vector<4xf32>
    %118 = vector.shape_cast %117 : vector<4xf32> to vector<4x1xf32>
    %119 = arith.mulf %118, %114 : vector<4x1xf32>
    %120 = vector.broadcast %6 : vector<1x1024xf32> to vector<4x1024xf32>
    %121 = arith.mulf %111, %120 : vector<4x1024xf32>
    %cst_40 = arith.constant dense<0.000000e+00> : vector<4xf32>
    %122 = vector.multi_reduction <add>, %121, %cst_40 [1] : vector<4x1024xf32> to vector<4xf32>
    %123 = vector.shape_cast %122 : vector<4xf32> to vector<4x1xf32>
    %124 = arith.mulf %123, %114 : vector<4x1xf32>
    %cst_41 = arith.constant 1.000000e+00 : f32
    %125 = vector.broadcast %cst_41 : f32 to vector<4x1xf32>
    %126 = tpu.concatenate %119, %124, %125, %106 in 1 : vector<4x1xf32>, vector<4x1xf32>, vector<4x1xf32>, vector<4x1xf32> -> vector<4x4xf32>
    %127 = vector.extract_strided_slice %0 {offsets = [3, 0, 0], sizes = [1, 1, 1024], strides = [1, 1, 1]} : vector<4x1x1024xf32> to vector<1x1x1024xf32>
    %128 = vector.shape_cast %127 : vector<1x1x1024xf32> to vector<1x1024xf32>
    %129 = vector.broadcast %1 : vector<32x1xf32> to vector<32x1024xf32>
    %130 = vector.broadcast %128 : vector<1x1024xf32> to vector<32x1024xf32>
    %131 = arith.mulf %129, %130 : vector<32x1024xf32>
    %132 = vector.broadcast %2 : vector<32x1xf32> to vector<32x1024xf32>
    %133 = arith.addf %131, %132 : vector<32x1024xf32>
    %cst_42 = arith.constant 0.000000e+00 : f32
    %134 = vector.broadcast %cst_42 : f32 to vector<32x1024xf32>
    %135 = arith.maximumf %133, %134 : vector<32x1024xf32>
    %cst_43 = arith.constant dense<0.000000e+00> : vector<12x1024xf32>
    %136 = tpu.matmul %3, %135, %cst_43 {dimension_numbers = #tpu.dot_dimension_numbers<[1], [0], [0], [1], [0, 0, 1, 1], [], []>} : vector<12x32xf32>, vector<32x1024xf32>, vector<12x1024xf32> -> vector<12x1024xf32>
    %137 = vector.broadcast %4 : vector<12x1xf32> to vector<12x1024xf32>
    %138 = arith.addf %136, %137 : vector<12x1024xf32>
    %139 = vector.extract_strided_slice %138 {offsets = [0, 0], sizes = [4, 1024], strides = [1, 1]} : vector<12x1024xf32> to vector<4x1024xf32>
    %140 = vector.extract_strided_slice %138 {offsets = [4, 0], sizes = [8, 1024], strides = [1, 1]} : vector<12x1024xf32> to vector<8x1024xf32>
    %cst_44 = arith.constant dense<0.000000e+00> : vector<8xf32>
    %141 = vector.multi_reduction <add>, %140, %cst_44 [1] : vector<8x1024xf32> to vector<8xf32>
    %142 = vector.shape_cast %141 : vector<8xf32> to vector<8x1xf32>
    %cst_45 = arith.constant 1.024000e+03 : f32
    %143 = vector.broadcast %cst_45 : f32 to vector<8x1xf32>
    %144 = arith.divf %142, %143 : vector<8x1xf32>
    %cst_46 = arith.constant dense<0xFF800000> : vector<4xf32>
    %145 = vector.multi_reduction <maximumf>, %139, %cst_46 [1] : vector<4x1024xf32> to vector<4xf32>
    %146 = vector.shape_cast %145 : vector<4xf32> to vector<4x1xf32>
    %147 = vector.broadcast %146 : vector<4x1xf32> to vector<4x1024xf32>
    %148 = arith.subf %139, %147 : vector<4x1024xf32>
    %cst_47 = arith.constant 2.000000e+01 : f32
    %149 = vector.broadcast %cst_47 : f32 to vector<4x1024xf32>
    %150 = arith.mulf %148, %149 : vector<4x1024xf32>
    %151 = math.exp %150 : vector<4x1024xf32>
    %cst_48 = arith.constant dense<0.000000e+00> : vector<4xf32>
    %152 = vector.multi_reduction <add>, %151, %cst_48 [1] : vector<4x1024xf32> to vector<4xf32>
    %153 = vector.shape_cast %152 : vector<4xf32> to vector<4x1xf32>
    %154 = tpu.reciprocal %153 : vector<4x1xf32> -> vector<4x1xf32>
    %155 = vector.broadcast %5 : vector<1x1024xf32> to vector<4x1024xf32>
    %156 = arith.mulf %151, %155 : vector<4x1024xf32>
    %cst_49 = arith.constant dense<0.000000e+00> : vector<4xf32>
    %157 = vector.multi_reduction <add>, %156, %cst_49 [1] : vector<4x1024xf32> to vector<4xf32>
    %158 = vector.shape_cast %157 : vector<4xf32> to vector<4x1xf32>
    %159 = arith.mulf %158, %154 : vector<4x1xf32>
    %160 = vector.broadcast %6 : vector<1x1024xf32> to vector<4x1024xf32>
    %161 = arith.mulf %151, %160 : vector<4x1024xf32>
    %cst_50 = arith.constant dense<0.000000e+00> : vector<4xf32>
    %162 = vector.multi_reduction <add>, %161, %cst_50 [1] : vector<4x1024xf32> to vector<4xf32>
    %163 = vector.shape_cast %162 : vector<4xf32> to vector<4x1xf32>
    %164 = arith.mulf %163, %154 : vector<4x1xf32>
    %cst_51 = arith.constant 1.000000e+00 : f32
    %165 = vector.broadcast %cst_51 : f32 to vector<4x1xf32>
    %166 = tpu.concatenate %159, %164, %165, %146 in 1 : vector<4x1xf32>, vector<4x1xf32>, vector<4x1xf32>, vector<4x1xf32> -> vector<4x4xf32>
    %167 = vector.shape_cast %19 : vector<4x1024xf32> to vector<1x4x1024xf32>
    %168 = vector.shape_cast %59 : vector<4x1024xf32> to vector<1x4x1024xf32>
    %169 = vector.shape_cast %99 : vector<4x1024xf32> to vector<1x4x1024xf32>
    %170 = vector.shape_cast %139 : vector<4x1024xf32> to vector<1x4x1024xf32>
    %171 = tpu.concatenate %167, %168, %169, %170 in 0 : vector<1x4x1024xf32>, vector<1x4x1024xf32>, vector<1x4x1024xf32>, vector<1x4x1024xf32> -> vector<4x4x1024xf32>
    %c0_52 = arith.constant 0 : index
    %c0_53 = arith.constant 0 : index
    %c0_54 = arith.constant 0 : index
    %172 = vector.load %arg7[%c0_52, %c0_53, %c0_54] : memref<4x4x1024xf32, #tpu.memory_space<vmem>>, vector<4x4x1024xf32>
    tpu.vector_store %arg7[%c0_52, %c0_53, %c0_54], %171 {strides = array<i32>} : memref<4x4x1024xf32, #tpu.memory_space<vmem>>, vector<4x4x1024xf32>,
    %173 = vector.shape_cast %46 : vector<4x4xf32> to vector<1x4x4xf32>
    %174 = vector.shape_cast %86 : vector<4x4xf32> to vector<1x4x4xf32>
    %175 = vector.shape_cast %126 : vector<4x4xf32> to vector<1x4x4xf32>
    %176 = vector.shape_cast %166 : vector<4x4xf32> to vector<1x4x4xf32>
    %177 = tpu.concatenate %173, %174, %175, %176 in 0 : vector<1x4x4xf32>, vector<1x4x4xf32>, vector<1x4x4xf32>, vector<1x4x4xf32> -> vector<4x4x4xf32>
    %c0_55 = arith.constant 0 : index
    %c0_56 = arith.constant 0 : index
    %c0_57 = arith.constant 0 : index
    %178 = vector.load %arg8[%c0_55, %c0_56, %c0_57] : memref<4x4x4xf32, #tpu.memory_space<vmem>>, vector<4x4x4xf32>
    tpu.vector_store %arg8[%c0_55, %c0_56, %c0_57], %177 {strides = array<i32>} : memref<4x4x4xf32, #tpu.memory_space<vmem>>, vector<4x4x4xf32>,
    %179 = vector.shape_cast %24 : vector<8x1xf32> to vector<1x8x1xf32>
    %180 = vector.shape_cast %64 : vector<8x1xf32> to vector<1x8x1xf32>
    %181 = vector.shape_cast %104 : vector<8x1xf32> to vector<1x8x1xf32>
    %182 = vector.shape_cast %144 : vector<8x1xf32> to vector<1x8x1xf32>
    %183 = tpu.concatenate %179, %180, %181, %182 in 0 : vector<1x8x1xf32>, vector<1x8x1xf32>, vector<1x8x1xf32>, vector<1x8x1xf32> -> vector<4x8x1xf32>
    %c0_58 = arith.constant 0 : index
    %c0_59 = arith.constant 0 : index
    %c0_60 = arith.constant 0 : index
    %184 = vector.load %arg9[%c0_58, %c0_59, %c0_60] : memref<4x8x1xf32, #tpu.memory_space<vmem>>, vector<4x8x1xf32>
    tpu.vector_store %arg9[%c0_58, %c0_59, %c0_60], %183 {strides = array<i32>} : memref<4x8x1xf32, #tpu.memory_space<vmem>>, vector<4x8x1xf32>,
    return
  }
  func.func @transform_0(%arg0: i32) -> (i32, i32, i32) {
    %c0_i32 = arith.constant 0 : i32
    %c0_i32_0 = arith.constant 0 : i32
    %c0_i32_1 = arith.constant 0 : i32
    return %arg0, %c0_i32, %c0_i32_0 : i32, i32, i32
  }
  func.func @transform_1(%arg0: i32) -> (i32, i32) {
    %c0_i32 = arith.constant 0 : i32
    %c0_i32_0 = arith.constant 0 : i32
    %c0_i32_1 = arith.constant 0 : i32
    return %c0_i32, %c0_i32_0 : i32, i32
  }
  func.func @transform_2(%arg0: i32) -> (i32, i32) {
    %c0_i32 = arith.constant 0 : i32
    %c0_i32_0 = arith.constant 0 : i32
    %c0_i32_1 = arith.constant 0 : i32
    return %c0_i32, %c0_i32_0 : i32, i32
  }
  func.func @transform_3(%arg0: i32) -> (i32, i32) {
    %c0_i32 = arith.constant 0 : i32
    %c0_i32_0 = arith.constant 0 : i32
    %c0_i32_1 = arith.constant 0 : i32
    return %c0_i32, %c0_i32_0 : i32, i32
  }
  func.func @transform_4(%arg0: i32) -> (i32, i32) {
    %c0_i32 = arith.constant 0 : i32
    %c0_i32_0 = arith.constant 0 : i32
    %c0_i32_1 = arith.constant 0 : i32
    return %c0_i32, %c0_i32_0 : i32, i32
  }
  func.func @transform_5(%arg0: i32) -> (i32, i32) {
    %c0_i32 = arith.constant 0 : i32
    %c0_i32_0 = arith.constant 0 : i32
    %c0_i32_1 = arith.constant 0 : i32
    return %c0_i32, %c0_i32_0 : i32, i32
  }
  func.func @transform_6(%arg0: i32) -> (i32, i32, i32) {
    %c0_i32 = arith.constant 0 : i32
    %c0_i32_0 = arith.constant 0 : i32
    %c0_i32_1 = arith.constant 0 : i32
    return %arg0, %c0_i32, %c0_i32_0 : i32, i32, i32
  }
  func.func @transform_7(%arg0: i32) -> (i32, i32, i32) {
    %c0_i32 = arith.constant 0 : i32
    %c0_i32_0 = arith.constant 0 : i32
    %c0_i32_1 = arith.constant 0 : i32
    return %arg0, %c0_i32, %c0_i32_0 : i32, i32, i32
  }
  func.func @transform_8(%arg0: i32) -> (i32, i32, i32) {
    %c0_i32 = arith.constant 0 : i32
    %c0_i32_0 = arith.constant 0 : i32
    %c0_i32_1 = arith.constant 0 : i32
    return %arg0, %c0_i32, %c0_i32_0 : i32, i32, i32
  }
}

module attributes {stable_mosaic.version = 11 : i64} {
  func.func @_fuse_softargmax_kernel(%arg0: i32, %arg1: memref<4x4x1024xf32, #tpu.memory_space<vmem>>, %arg2: memref<4x4x2xf32, #tpu.memory_space<vmem>>, %arg3: memref<2x1024xf32, #tpu.memory_space<vmem>>, %arg4: memref<4x4x1024xf32, #tpu.memory_space<vmem>>, %arg5: memref<4x4x3xf32, #tpu.memory_space<vmem>>) attributes {dimension_semantics = [#tpu.dimension_semantics<parallel>], iteration_bounds = array<i64: 1>, scalar_prefetch = 0 : i64, scratch_operands = 0 : i64, tpu.core_type = #tpu.core_type<tc>, window_params = [{transform_indices = @transform_0, window_bounds = array<i64: 4, 4, 1024>}, {transform_indices = @transform_1, window_bounds = array<i64: 4, 4, 2>}, {pipeline_mode = #tpu.pipeline_mode<synchronous>, transform_indices = @transform_2, window_bounds = array<i64: 2, 1024>}, {transform_indices = @transform_3, window_bounds = array<i64: 4, 4, 1024>}, {transform_indices = @transform_4, window_bounds = array<i64: 4, 4, 3>}]} {
    %c0 = arith.constant 0 : index
    %c0_0 = arith.constant 0 : index
    %c0_1 = arith.constant 0 : index
    %0 = vector.load %arg1[%c0, %c0_0, %c0_1] : memref<4x4x1024xf32, #tpu.memory_space<vmem>>, vector<4x4x1024xf32>
    %c0_2 = arith.constant 0 : index
    %c0_3 = arith.constant 0 : index
    %c0_4 = arith.constant 0 : index
    %1 = vector.load %arg2[%c0_2, %c0_3, %c0_4] : memref<4x4x2xf32, #tpu.memory_space<vmem>>, vector<4x4x2xf32>
    %c0_5 = arith.constant 0 : index
    %c0_6 = arith.constant 0 : index
    %2 = vector.load %arg3[%c0_5, %c0_6] : memref<2x1024xf32, #tpu.memory_space<vmem>>, vector<1x1024xf32>
    %c1 = arith.constant 1 : index
    %c0_7 = arith.constant 0 : index
    %3 = vector.load %arg3[%c1, %c0_7] : memref<2x1024xf32, #tpu.memory_space<vmem>>, vector<1x1024xf32>
    %4 = vector.extract_strided_slice %0 {offsets = [0, 0, 0], sizes = [1, 4, 1024], strides = [1, 1, 1]} : vector<4x4x1024xf32> to vector<1x4x1024xf32>
    %5 = vector.shape_cast %4 : vector<1x4x1024xf32> to vector<4x1024xf32>
    %6 = vector.extract_strided_slice %1 {offsets = [0, 0, 0], sizes = [1, 4, 1], strides = [1, 1, 1]} : vector<4x4x2xf32> to vector<1x4x1xf32>
    %7 = vector.shape_cast %6 : vector<1x4x1xf32> to vector<4x1xf32>
    %8 = vector.broadcast %7 : vector<4x1xf32> to vector<4x1024xf32>
    %9 = arith.mulf %5, %8 : vector<4x1024xf32>
    %10 = vector.extract_strided_slice %0 {offsets = [1, 0, 0], sizes = [1, 4, 1024], strides = [1, 1, 1]} : vector<4x4x1024xf32> to vector<1x4x1024xf32>
    %11 = vector.shape_cast %10 : vector<1x4x1024xf32> to vector<4x1024xf32>
    %12 = vector.extract_strided_slice %1 {offsets = [0, 0, 1], sizes = [1, 4, 1], strides = [1, 1, 1]} : vector<4x4x2xf32> to vector<1x4x1xf32>
    %13 = vector.shape_cast %12 : vector<1x4x1xf32> to vector<4x1xf32>
    %14 = vector.broadcast %13 : vector<4x1xf32> to vector<4x1024xf32>
    %15 = arith.mulf %11, %14 : vector<4x1024xf32>
    %16 = arith.addf %9, %15 : vector<4x1024xf32>
    %cst = arith.constant dense<0xFF800000> : vector<4xf32>
    %17 = vector.multi_reduction <maximumf>, %16, %cst [1] : vector<4x1024xf32> to vector<4xf32>
    %18 = vector.shape_cast %17 : vector<4xf32> to vector<4x1xf32>
    %19 = vector.broadcast %18 : vector<4x1xf32> to vector<4x1024xf32>
    %20 = arith.subf %16, %19 : vector<4x1024xf32>
    %cst_8 = arith.constant 2.000000e+01 : f32
    %21 = vector.broadcast %cst_8 : f32 to vector<4x1024xf32>
    %22 = arith.mulf %20, %21 : vector<4x1024xf32>
    %23 = math.exp %22 : vector<4x1024xf32>
    %cst_9 = arith.constant dense<0.000000e+00> : vector<4xf32>
    %24 = vector.multi_reduction <add>, %23, %cst_9 [1] : vector<4x1024xf32> to vector<4xf32>
    %25 = vector.shape_cast %24 : vector<4xf32> to vector<4x1xf32>
    %26 = tpu.reciprocal %25 : vector<4x1xf32> -> vector<4x1xf32>
    %27 = vector.broadcast %2 : vector<1x1024xf32> to vector<4x1024xf32>
    %28 = arith.mulf %23, %27 : vector<4x1024xf32>
    %cst_10 = arith.constant dense<0.000000e+00> : vector<4xf32>
    %29 = vector.multi_reduction <add>, %28, %cst_10 [1] : vector<4x1024xf32> to vector<4xf32>
    %30 = vector.shape_cast %29 : vector<4xf32> to vector<4x1xf32>
    %31 = arith.mulf %30, %26 : vector<4x1xf32>
    %32 = vector.broadcast %3 : vector<1x1024xf32> to vector<4x1024xf32>
    %33 = arith.mulf %23, %32 : vector<4x1024xf32>
    %cst_11 = arith.constant dense<0.000000e+00> : vector<4xf32>
    %34 = vector.multi_reduction <add>, %33, %cst_11 [1] : vector<4x1024xf32> to vector<4xf32>
    %35 = vector.shape_cast %34 : vector<4xf32> to vector<4x1xf32>
    %36 = arith.mulf %35, %26 : vector<4x1xf32>
    %cst_12 = arith.constant 1.000000e+00 : f32
    %37 = vector.broadcast %cst_12 : f32 to vector<4x1xf32>
    %38 = tpu.concatenate %31, %36, %37 in 1 : vector<4x1xf32>, vector<4x1xf32>, vector<4x1xf32> -> vector<4x3xf32>
    %39 = vector.extract_strided_slice %0 {offsets = [1, 0, 0], sizes = [1, 4, 1024], strides = [1, 1, 1]} : vector<4x4x1024xf32> to vector<1x4x1024xf32>
    %40 = vector.shape_cast %39 : vector<1x4x1024xf32> to vector<4x1024xf32>
    %41 = vector.extract_strided_slice %1 {offsets = [1, 0, 0], sizes = [1, 4, 1], strides = [1, 1, 1]} : vector<4x4x2xf32> to vector<1x4x1xf32>
    %42 = vector.shape_cast %41 : vector<1x4x1xf32> to vector<4x1xf32>
    %43 = vector.broadcast %42 : vector<4x1xf32> to vector<4x1024xf32>
    %44 = arith.mulf %40, %43 : vector<4x1024xf32>
    %45 = vector.extract_strided_slice %0 {offsets = [0, 0, 0], sizes = [1, 4, 1024], strides = [1, 1, 1]} : vector<4x4x1024xf32> to vector<1x4x1024xf32>
    %46 = vector.shape_cast %45 : vector<1x4x1024xf32> to vector<4x1024xf32>
    %47 = vector.extract_strided_slice %1 {offsets = [1, 0, 1], sizes = [1, 4, 1], strides = [1, 1, 1]} : vector<4x4x2xf32> to vector<1x4x1xf32>
    %48 = vector.shape_cast %47 : vector<1x4x1xf32> to vector<4x1xf32>
    %49 = vector.broadcast %48 : vector<4x1xf32> to vector<4x1024xf32>
    %50 = arith.mulf %46, %49 : vector<4x1024xf32>
    %51 = arith.addf %44, %50 : vector<4x1024xf32>
    %cst_13 = arith.constant dense<0xFF800000> : vector<4xf32>
    %52 = vector.multi_reduction <maximumf>, %51, %cst_13 [1] : vector<4x1024xf32> to vector<4xf32>
    %53 = vector.shape_cast %52 : vector<4xf32> to vector<4x1xf32>
    %54 = vector.broadcast %53 : vector<4x1xf32> to vector<4x1024xf32>
    %55 = arith.subf %51, %54 : vector<4x1024xf32>
    %cst_14 = arith.constant 2.000000e+01 : f32
    %56 = vector.broadcast %cst_14 : f32 to vector<4x1024xf32>
    %57 = arith.mulf %55, %56 : vector<4x1024xf32>
    %58 = math.exp %57 : vector<4x1024xf32>
    %cst_15 = arith.constant dense<0.000000e+00> : vector<4xf32>
    %59 = vector.multi_reduction <add>, %58, %cst_15 [1] : vector<4x1024xf32> to vector<4xf32>
    %60 = vector.shape_cast %59 : vector<4xf32> to vector<4x1xf32>
    %61 = tpu.reciprocal %60 : vector<4x1xf32> -> vector<4x1xf32>
    %62 = vector.broadcast %2 : vector<1x1024xf32> to vector<4x1024xf32>
    %63 = arith.mulf %58, %62 : vector<4x1024xf32>
    %cst_16 = arith.constant dense<0.000000e+00> : vector<4xf32>
    %64 = vector.multi_reduction <add>, %63, %cst_16 [1] : vector<4x1024xf32> to vector<4xf32>
    %65 = vector.shape_cast %64 : vector<4xf32> to vector<4x1xf32>
    %66 = arith.mulf %65, %61 : vector<4x1xf32>
    %67 = vector.broadcast %3 : vector<1x1024xf32> to vector<4x1024xf32>
    %68 = arith.mulf %58, %67 : vector<4x1024xf32>
    %cst_17 = arith.constant dense<0.000000e+00> : vector<4xf32>
    %69 = vector.multi_reduction <add>, %68, %cst_17 [1] : vector<4x1024xf32> to vector<4xf32>
    %70 = vector.shape_cast %69 : vector<4xf32> to vector<4x1xf32>
    %71 = arith.mulf %70, %61 : vector<4x1xf32>
    %cst_18 = arith.constant 1.000000e+00 : f32
    %72 = vector.broadcast %cst_18 : f32 to vector<4x1xf32>
    %73 = tpu.concatenate %66, %71, %72 in 1 : vector<4x1xf32>, vector<4x1xf32>, vector<4x1xf32> -> vector<4x3xf32>
    %74 = vector.extract_strided_slice %0 {offsets = [2, 0, 0], sizes = [1, 4, 1024], strides = [1, 1, 1]} : vector<4x4x1024xf32> to vector<1x4x1024xf32>
    %75 = vector.shape_cast %74 : vector<1x4x1024xf32> to vector<4x1024xf32>
    %76 = vector.extract_strided_slice %1 {offsets = [2, 0, 0], sizes = [1, 4, 1], strides = [1, 1, 1]} : vector<4x4x2xf32> to vector<1x4x1xf32>
    %77 = vector.shape_cast %76 : vector<1x4x1xf32> to vector<4x1xf32>
    %78 = vector.broadcast %77 : vector<4x1xf32> to vector<4x1024xf32>
    %79 = arith.mulf %75, %78 : vector<4x1024xf32>
    %80 = vector.extract_strided_slice %0 {offsets = [3, 0, 0], sizes = [1, 4, 1024], strides = [1, 1, 1]} : vector<4x4x1024xf32> to vector<1x4x1024xf32>
    %81 = vector.shape_cast %80 : vector<1x4x1024xf32> to vector<4x1024xf32>
    %82 = vector.extract_strided_slice %1 {offsets = [2, 0, 1], sizes = [1, 4, 1], strides = [1, 1, 1]} : vector<4x4x2xf32> to vector<1x4x1xf32>
    %83 = vector.shape_cast %82 : vector<1x4x1xf32> to vector<4x1xf32>
    %84 = vector.broadcast %83 : vector<4x1xf32> to vector<4x1024xf32>
    %85 = arith.mulf %81, %84 : vector<4x1024xf32>
    %86 = arith.addf %79, %85 : vector<4x1024xf32>
    %cst_19 = arith.constant dense<0xFF800000> : vector<4xf32>
    %87 = vector.multi_reduction <maximumf>, %86, %cst_19 [1] : vector<4x1024xf32> to vector<4xf32>
    %88 = vector.shape_cast %87 : vector<4xf32> to vector<4x1xf32>
    %89 = vector.broadcast %88 : vector<4x1xf32> to vector<4x1024xf32>
    %90 = arith.subf %86, %89 : vector<4x1024xf32>
    %cst_20 = arith.constant 2.000000e+01 : f32
    %91 = vector.broadcast %cst_20 : f32 to vector<4x1024xf32>
    %92 = arith.mulf %90, %91 : vector<4x1024xf32>
    %93 = math.exp %92 : vector<4x1024xf32>
    %cst_21 = arith.constant dense<0.000000e+00> : vector<4xf32>
    %94 = vector.multi_reduction <add>, %93, %cst_21 [1] : vector<4x1024xf32> to vector<4xf32>
    %95 = vector.shape_cast %94 : vector<4xf32> to vector<4x1xf32>
    %96 = tpu.reciprocal %95 : vector<4x1xf32> -> vector<4x1xf32>
    %97 = vector.broadcast %2 : vector<1x1024xf32> to vector<4x1024xf32>
    %98 = arith.mulf %93, %97 : vector<4x1024xf32>
    %cst_22 = arith.constant dense<0.000000e+00> : vector<4xf32>
    %99 = vector.multi_reduction <add>, %98, %cst_22 [1] : vector<4x1024xf32> to vector<4xf32>
    %100 = vector.shape_cast %99 : vector<4xf32> to vector<4x1xf32>
    %101 = arith.mulf %100, %96 : vector<4x1xf32>
    %102 = vector.broadcast %3 : vector<1x1024xf32> to vector<4x1024xf32>
    %103 = arith.mulf %93, %102 : vector<4x1024xf32>
    %cst_23 = arith.constant dense<0.000000e+00> : vector<4xf32>
    %104 = vector.multi_reduction <add>, %103, %cst_23 [1] : vector<4x1024xf32> to vector<4xf32>
    %105 = vector.shape_cast %104 : vector<4xf32> to vector<4x1xf32>
    %106 = arith.mulf %105, %96 : vector<4x1xf32>
    %cst_24 = arith.constant 1.000000e+00 : f32
    %107 = vector.broadcast %cst_24 : f32 to vector<4x1xf32>
    %108 = tpu.concatenate %101, %106, %107 in 1 : vector<4x1xf32>, vector<4x1xf32>, vector<4x1xf32> -> vector<4x3xf32>
    %109 = vector.extract_strided_slice %0 {offsets = [3, 0, 0], sizes = [1, 4, 1024], strides = [1, 1, 1]} : vector<4x4x1024xf32> to vector<1x4x1024xf32>
    %110 = vector.shape_cast %109 : vector<1x4x1024xf32> to vector<4x1024xf32>
    %111 = vector.extract_strided_slice %1 {offsets = [3, 0, 0], sizes = [1, 4, 1], strides = [1, 1, 1]} : vector<4x4x2xf32> to vector<1x4x1xf32>
    %112 = vector.shape_cast %111 : vector<1x4x1xf32> to vector<4x1xf32>
    %113 = vector.broadcast %112 : vector<4x1xf32> to vector<4x1024xf32>
    %114 = arith.mulf %110, %113 : vector<4x1024xf32>
    %115 = vector.extract_strided_slice %0 {offsets = [2, 0, 0], sizes = [1, 4, 1024], strides = [1, 1, 1]} : vector<4x4x1024xf32> to vector<1x4x1024xf32>
    %116 = vector.shape_cast %115 : vector<1x4x1024xf32> to vector<4x1024xf32>
    %117 = vector.extract_strided_slice %1 {offsets = [3, 0, 1], sizes = [1, 4, 1], strides = [1, 1, 1]} : vector<4x4x2xf32> to vector<1x4x1xf32>
    %118 = vector.shape_cast %117 : vector<1x4x1xf32> to vector<4x1xf32>
    %119 = vector.broadcast %118 : vector<4x1xf32> to vector<4x1024xf32>
    %120 = arith.mulf %116, %119 : vector<4x1024xf32>
    %121 = arith.addf %114, %120 : vector<4x1024xf32>
    %cst_25 = arith.constant dense<0xFF800000> : vector<4xf32>
    %122 = vector.multi_reduction <maximumf>, %121, %cst_25 [1] : vector<4x1024xf32> to vector<4xf32>
    %123 = vector.shape_cast %122 : vector<4xf32> to vector<4x1xf32>
    %124 = vector.broadcast %123 : vector<4x1xf32> to vector<4x1024xf32>
    %125 = arith.subf %121, %124 : vector<4x1024xf32>
    %cst_26 = arith.constant 2.000000e+01 : f32
    %126 = vector.broadcast %cst_26 : f32 to vector<4x1024xf32>
    %127 = arith.mulf %125, %126 : vector<4x1024xf32>
    %128 = math.exp %127 : vector<4x1024xf32>
    %cst_27 = arith.constant dense<0.000000e+00> : vector<4xf32>
    %129 = vector.multi_reduction <add>, %128, %cst_27 [1] : vector<4x1024xf32> to vector<4xf32>
    %130 = vector.shape_cast %129 : vector<4xf32> to vector<4x1xf32>
    %131 = tpu.reciprocal %130 : vector<4x1xf32> -> vector<4x1xf32>
    %132 = vector.broadcast %2 : vector<1x1024xf32> to vector<4x1024xf32>
    %133 = arith.mulf %128, %132 : vector<4x1024xf32>
    %cst_28 = arith.constant dense<0.000000e+00> : vector<4xf32>
    %134 = vector.multi_reduction <add>, %133, %cst_28 [1] : vector<4x1024xf32> to vector<4xf32>
    %135 = vector.shape_cast %134 : vector<4xf32> to vector<4x1xf32>
    %136 = arith.mulf %135, %131 : vector<4x1xf32>
    %137 = vector.broadcast %3 : vector<1x1024xf32> to vector<4x1024xf32>
    %138 = arith.mulf %128, %137 : vector<4x1024xf32>
    %cst_29 = arith.constant dense<0.000000e+00> : vector<4xf32>
    %139 = vector.multi_reduction <add>, %138, %cst_29 [1] : vector<4x1024xf32> to vector<4xf32>
    %140 = vector.shape_cast %139 : vector<4xf32> to vector<4x1xf32>
    %141 = arith.mulf %140, %131 : vector<4x1xf32>
    %cst_30 = arith.constant 1.000000e+00 : f32
    %142 = vector.broadcast %cst_30 : f32 to vector<4x1xf32>
    %143 = tpu.concatenate %136, %141, %142 in 1 : vector<4x1xf32>, vector<4x1xf32>, vector<4x1xf32> -> vector<4x3xf32>
    %144 = vector.shape_cast %16 : vector<4x1024xf32> to vector<1x4x1024xf32>
    %145 = vector.shape_cast %51 : vector<4x1024xf32> to vector<1x4x1024xf32>
    %146 = vector.shape_cast %86 : vector<4x1024xf32> to vector<1x4x1024xf32>
    %147 = vector.shape_cast %121 : vector<4x1024xf32> to vector<1x4x1024xf32>
    %148 = tpu.concatenate %144, %145, %146, %147 in 0 : vector<1x4x1024xf32>, vector<1x4x1024xf32>, vector<1x4x1024xf32>, vector<1x4x1024xf32> -> vector<4x4x1024xf32>
    %c0_31 = arith.constant 0 : index
    %c0_32 = arith.constant 0 : index
    %c0_33 = arith.constant 0 : index
    %149 = vector.load %arg4[%c0_31, %c0_32, %c0_33] : memref<4x4x1024xf32, #tpu.memory_space<vmem>>, vector<4x4x1024xf32>
    tpu.vector_store %arg4[%c0_31, %c0_32, %c0_33], %148 {strides = array<i32>} : memref<4x4x1024xf32, #tpu.memory_space<vmem>>, vector<4x4x1024xf32>,
    %150 = vector.shape_cast %38 : vector<4x3xf32> to vector<1x4x3xf32>
    %151 = vector.shape_cast %73 : vector<4x3xf32> to vector<1x4x3xf32>
    %152 = vector.shape_cast %108 : vector<4x3xf32> to vector<1x4x3xf32>
    %153 = vector.shape_cast %143 : vector<4x3xf32> to vector<1x4x3xf32>
    %154 = tpu.concatenate %150, %151, %152, %153 in 0 : vector<1x4x3xf32>, vector<1x4x3xf32>, vector<1x4x3xf32>, vector<1x4x3xf32> -> vector<4x4x3xf32>
    %c0_34 = arith.constant 0 : index
    %c0_35 = arith.constant 0 : index
    %c0_36 = arith.constant 0 : index
    %155 = vector.load %arg5[%c0_34, %c0_35, %c0_36] : memref<4x4x3xf32, #tpu.memory_space<vmem>>, vector<4x4x3xf32>
    tpu.vector_store %arg5[%c0_34, %c0_35, %c0_36], %154 {strides = array<i32>} : memref<4x4x3xf32, #tpu.memory_space<vmem>>, vector<4x4x3xf32>,
    return
  }
  func.func @transform_0(%arg0: i32) -> (i32, i32, i32) {
    %c0_i32 = arith.constant 0 : i32
    %c0_i32_0 = arith.constant 0 : i32
    %c0_i32_1 = arith.constant 0 : i32
    return %arg0, %c0_i32, %c0_i32_0 : i32, i32, i32
  }
  func.func @transform_1(%arg0: i32) -> (i32, i32, i32) {
    %c0_i32 = arith.constant 0 : i32
    %c0_i32_0 = arith.constant 0 : i32
    %c0_i32_1 = arith.constant 0 : i32
    return %arg0, %c0_i32, %c0_i32_0 : i32, i32, i32
  }
  func.func @transform_2(%arg0: i32) -> (i32, i32) {
    %c0_i32 = arith.constant 0 : i32
    %c0_i32_0 = arith.constant 0 : i32
    %c0_i32_1 = arith.constant 0 : i32
    return %c0_i32, %c0_i32_0 : i32, i32
  }
  func.func @transform_3(%arg0: i32) -> (i32, i32, i32) {
    %c0_i32 = arith.constant 0 : i32
    %c0_i32_0 = arith.constant 0 : i32
    %c0_i32_1 = arith.constant 0 : i32
    return %arg0, %c0_i32, %c0_i32_0 : i32, i32, i32
  }
  func.func @transform_4(%arg0: i32) -> (i32, i32, i32) {
    %c0_i32 = arith.constant 0 : i32
    %c0_i32_0 = arith.constant 0 : i32
    %c0_i32_1 = arith.constant 0 : i32
    return %arg0, %c0_i32, %c0_i32_0 : i32, i32, i32
  }
}

</mosaic_0001>

<bundles_post_ra>
// kernel: custom-call.22
= control target key start
LH: loop header
LB: loop body
LE: loop exit
PB: predicated region body
PF: predicated region fallthrough
CT: control target
= control target key end

     0   :  { %5 = vsyncpa [#allocation2], 0  ;;  %s563_s0 = inlined_call_operand.hbm [shape: f32[3,3], index: 0, kind: input, shape index: {}]   ;;  %s564_s1 = inlined_call_operand.vmem [shape: f32[3,3], index: 1, kind: output, shape index: {0}]   ;;  %s565_s2 = inlined_call_operand.hbm [shape: s32[3], index: 2, kind: output, shape index: {1}]   ;;  %s566_s3 = inlined_call_operand.vmem [shape: s32[3], index: 3, kind: output, shape index: {2}]  }
   0x1   :  { %6 = vsyncpa [#allocation3], 0  ;;  %s474_s12 = smov [#allocation1]   ;;  %s418_s16 = scalar_lea.hbm %s563_s0, 64 }
   0x2   :  { %s10_s13 = sshll.u32 %s474_s12, 4  ;;  %p419_p0 = scmp.ne.s32.totalorder %s563_s0, %s418_s16  ;;  %s11_s13 = int_to_ptr.vmem [resolvable:$true] %s10_s13 }
   0x3   :  { %p422_p1 = scmp.lt.u32.totalorder %s418_s16, %s563_s0 }
   0x5   :  { %p424_p2 = pnand %p422_p1, %p419_p0 }
   0x7   :  { %427 = shalt.err (!%p424_p2)
}
   0x8   :  { %s428_s21 = scalar_lea.vmem %s11_s13, 64  ;;  %p433_p4 = scmp.lt.s32.totalorder %s11_s13, %s11_s13 }
   0x9   :  { %p429_p3 = scmp.ne.s32.totalorder %s11_s13, %s428_s21  ;;  %p434_p5 = scmp.lt.s32.totalorder %s428_s21, %s428_s21 }
   0xb   :  { %p435_p6 = por %p434_p5, %p433_p4 }
   0xd   :  { %p436_p7 = pnand %p435_p6, %p429_p3 }
   0xf   :  { %439 = shalt.err (!%p436_p7)
}
  0x10   :  { %13 = dma.hbm_to_vmem [thread:$0]  %s563_s0, 64, %s11_s13, [#allocation2]  }
  0x11   :  { %466 = dma.done.wait [#allocation2], 64  }
  0x12   :  { %467 = vsyncadd [#allocation2], 4294967232  ;;  %v22_v0 = vlaneseq  ;;  %v475_v1 = vmov 0   ;;  %v17_v3 = vld [vmem:[#allocation1] sm:$0xf]  ;;  %s513_s24 = smov 0  }
  0x13   :  { %21 = vst [vmem:[#allocation6] sm:$0x1] %v475_v1  ;;  %18 = vst [vmem:[#allocation0] sm:$0xf] %v17_v3 }
  0x14   :  { %v510_v2 = vshrl.u32 %v22_v0, 7 }
  0x16   :  { %26 = vst [vmem:[#allocation10] sm:$0xff] %v510_v2 }
  0x1a   :  { %v19_v4 = vld [vmem:[#allocation0] sm:$0xff] }
  0x1b   :  { %20 = vst [vmem:[#allocation4] sm:$0xff] %v19_v4 }
  0x1c LB: > { %vm42_vm0 = vcmp.lt.s32.totalorder %v510_v2, 3  ;;  %v520_v7 = vstv %s472_s24  ;;  %s83_s0 = ssub.s32 128, %s472_s24  ;;  %v89_v37 = vand.u32 127, %v22_v0  ;;  %v92_v39 = vld [vmem:[#allocation6] ss:$0 sm:$0xff]  ;;  %s95_s25 = scalar_lea.vmem [#allocation4], %s472_s24  ;;  %s472_s24 = sphi %s513_s24, %s32_s24  }
  0x1d   : > { %vm41_vm1 = vcmp.ge.s32.totalorder %v510_v2, %v520_v7  ;;  %s101_s27 = scalar_lea.vmem [#allocation10], %s472_s24  ;;  %vm121_vm15 = vcmp.gt.s32.totalorder %v510_v2, %v520_v7  ;;  %s32_s24 = sadd.s32 1, %s472_s24  }
  0x1e   : > { %vm43_vm3 = vmand %vm41_vm1, %vm42_vm0  ;;  %vm113_vm12 = vcmp.gt.s32.totalorder %v89_v37, %v520_v7  ;;  %vm90_vm13 = vcmp.eq.s32.totalorder %v89_v37, %v520_v7  ;;  %v103_v41 = vld [vmem:[%s101_s27] ss:$0 sm:$0xff]  ;;  %p29_p8 = scmp.ge.s32.totalorder %s32_s24, 3  }
  0x1f   : > { %vm125_vm1 = vmand %vm121_vm15, %vm90_vm13  ;;  %s476_s30 = smov (%p29_p8), [#allocation7]  }
  0x20   :  { %s266_s4 = sshll.u32 (%p29_p8), %s476_s30, 4  ;;  %s267_s4 = int_to_ptr.vmem [resolvable:$true] %s266_s4 }
  0x21   :  { %s440_s7 = scalar_lea.vmem (%p29_p8), %s267_s4, 16  ;;  %s444_s8 = scalar_lea.vmem (%p29_p8), %s267_s4, 32 }
  0x22   : > { %v37_v5 = vld [vmem:[#allocation4] sm:$0xff]  ;;  %v97_v40 = vld [vmem:[%s95_s25] ss:$0 sm:$0xff]  ;;  %p441_p9 = scmp.ne.s32.totalorder (%p29_p8), %s267_s4, %s440_s7  ;;  %p445_p10 = scmp.lt.s32.totalorder (%p29_p8), %s267_s4, %s267_s4 }
  0x23   : > { %v38_v6 = vand.u32 2147483647, %v37_v5  ;;  %p446_p11 = scmp.lt.s32.totalorder (%p29_p8), %s444_s8, %s440_s7 }
  0x25   : > { %vm396_vm2 = vcmp.gt.f32.partialorder %v38_v6, -inf  ;;  %p447_p12 = por (%p29_p8), %p446_p11, %p445_p10 }
  0x26   : > { %vm45_vm4 = vmand %vm43_vm3, %vm396_vm2 }
  0x27   : > { %v46_v8 = vsel %vm45_vm4, %v510_v2, %v520_v7  ;;  %v47_v9 = vsel %vm45_vm4, %v38_v6, -inf  ;;  %p448_p13 = pnand (%p29_p8), %p447_p12, %p441_p9 }
  0x28   : > { %v48_v10 = vrot.slane %v47_v9, 1  ;;  %v49_v11 = vrot.slane %v46_v8, 1 }
  0x2a   : > { %vm50_vm5 = vcmp.ge.f32.partialorder %v48_v10, %v47_v9  ;;  %v53_v12 = vrot.slane %v48_v10, 1  ;;  %v54_v13 = vrot.slane %v49_v11, 1 }
  0x2b   : > { %v51_v14 = vsel %vm50_vm5, %v48_v10, %v47_v9  ;;  %v52_v15 = vsel %vm50_vm5, %v49_v11, %v46_v8 }
  0x2c   : > { %vm55_vm6 = vcmp.ge.f32.partialorder %v53_v12, %v51_v14  ;;  %v58_v16 = vrot.slane %v53_v12, 1  ;;  %v59_v17 = vrot.slane %v54_v13, 1 }
  0x2d   : > { %v56_v18 = vsel %vm55_vm6, %v53_v12, %v51_v14  ;;  %v57_v19 = vsel %vm55_vm6, %v54_v13, %v52_v15 }
  0x2e   : > { %vm60_vm7 = vcmp.ge.f32.partialorder %v58_v16, %v56_v18  ;;  %v63_v20 = vrot.slane %v58_v16, 1  ;;  %v64_v21 = vrot.slane %v59_v17, 1 }
  0x2f   : > { %v61_v22 = vsel %vm60_vm7, %v58_v16, %v56_v18  ;;  %v62_v23 = vsel %vm60_vm7, %v59_v17, %v57_v19 }
  0x30   : > { %vm65_vm8 = vcmp.ge.f32.partialorder %v63_v20, %v61_v22  ;;  %v68_v24 = vrot.slane %v63_v20, 1  ;;  %v69_v25 = vrot.slane %v64_v21, 1 }
  0x31   : > { %v66_v26 = vsel %vm65_vm8, %v63_v20, %v61_v22  ;;  %v67_v27 = vsel %vm65_vm8, %v64_v21, %v62_v23 }
  0x32   : > { %vm70_vm9 = vcmp.ge.f32.partialorder %v68_v24, %v66_v26  ;;  %v73_v28 = vrot.slane %v68_v24, 1  ;;  %v74_v29 = vrot.slane %v69_v25, 1 }
  0x33   : > { %v71_v30 = vsel %vm70_vm9, %v68_v24, %v66_v26  ;;  %v72_v31 = vsel %vm70_vm9, %v69_v25, %v67_v27 }
  0x34   : > { %vm75_vm10 = vcmp.ge.f32.partialorder %v73_v28, %v71_v30  ;;  %v78_v32 = vrot.slane %v73_v28, 1  ;;  %v79_v33 = vrot.slane %v74_v29, 1 }
  0x35   : > { %v76_v34 = vsel %vm75_vm10, %v73_v28, %v71_v30  ;;  %v77_v35 = vsel %vm75_vm10, %v74_v29, %v72_v31 }
  0x36   : > { %vm80_vm11 = vcmp.ge.f32.partialorder %v78_v32, %v76_v34 }
  0x37   : > { %v82_v36 = vsel %vm80_vm11, %v79_v33, %v77_v35 }
  0x38   : > { %84 = vrot.lane.b32.xlu0 %v82_v36, %s83_s0 }
  0xaa   : > { %v85_v38 = vpop.permute.xlu0 %84 }
  0xab   : > { %403 = vpush %v85_v38 }
  0xdc   : > { %s404_s26 = spop %403 }
  0xdd   : > { %v91_v42 = vstv %s404_s26  ;;  %s96_s28 = scalar_lea.vmem [#allocation4], %s404_s26  ;;  %s102_s29 = scalar_lea.vmem [#allocation10], %s404_s26 }
  0xde   : > { %v98_v43 = vld [vmem:[%s96_s28] ss:$0 sm:$0xff]  ;;  %v93_v45 = vsel %vm90_vm13, %v91_v42, %v92_v39 }
  0xdf   : > { %v104_v44 = vld [vmem:[%s102_s29] ss:$0 sm:$0xff]  ;;  %99 = vst [vmem:[%s96_s28] sm:$0x1] %v97_v40  ;;  %vm107_vm14 = vcmp.ne.f32.partialorder %v98_v43, 0.0  ;;  %94 = vst [vmem:[#allocation6] sm:$0x1] %v93_v45 }
  0xe0   : > { %105 = vst [vmem:[%s102_s29] sm:$0x1] %v103_v41  ;;  %100 = vst [vmem:[%s95_s25] sm:$0x1] %v98_v43  ;;  %v114_v52 = vsel %vm113_vm12, %v98_v43, 0.0 }
  0xe1   : > { %106 = vst [vmem:[%s101_s27] sm:$0x1] %v104_v44  ;;  %vm108_vm0 = vmand %vm90_vm13, %vm107_vm14 }
  0xe2   : > { %v109_v46 = vsel %vm108_vm0, %v98_v43, 1.0 }
  0xe3   : > { %v122_v47 = vsel %vm121_vm15, %v109_v46, 1.0 }
  0xe4   : > { %416 = vrcp.f32 %v122_v47 }
  0xe6   :  { %v190_v58 = vld [vmem:[#allocation6] sm:$0x1] (%p29_p8) }
  0xe7   : > { %v118_v49 = vld [vmem:[#allocation4] sm:$0xff]  ;;  %192 = vst [vmem:[#allocation7] sm:$0x1] (%p29_p8), %v190_v58 }
  0xe8   :  { %v132_v56 = vld [vmem:[#allocation10] sm:$0xff] (%p29_p8) }
  0xee   : > { %v417_v48 = vpop.eup %416 }
  0xef   : > { %v124_v50 = vmul.f32 %v417_v48, %v118_v49 }
  0xf1   : > { %v126_v51 = vsel %vm125_vm1, %v124_v50, 0.0 }
  0xf2   : > { %127 = vadd.xlane.f32.xlu0 %v126_v51 }
 0x11f   :  { %148 = vxpose.xlu0.b32.start.end [1/1] (short) (narrow) (%p29_p8), %v132_v56, 8 }
 0x17e   :  { %31 = sbr.rel (!%p29_p8) target bundleno = 28 (0x1c), region = 112 }
 0x17f   : > { %v128_v53 = vpop.xlane.xlu0 %127 }
 0x180   : > { %v129_v54 = vmul.f32 %v128_v53, %v114_v52 }
 0x182   : > { %v130_v55 = vsub.f32 %v124_v50, %v129_v54 }
 0x184   : > { %131 = vst [vmem:[#allocation4] sm:$0xff] %v130_v55 }
 0x18b   :  { %v184_v57 = vld [vmem:[#allocation4] sm:$0xf] }
 0x18c   :  { %186 = vst [vmem:[#allocation5] sm:$0xf] %v184_v57 }
 0x193   :  { %v259_v59 = vld [vmem:[#allocation5] sm:$0xf] }
 0x194   :  { %260 = vst [vmem:[%s564_s1] sm:$0xf] %v259_v59 }
 0x195   :  { %451 = shalt.err (!%p448_p13)
}
 0x196   :  { %s452_s11 = scalar_lea.hbm %s565_s2, 16 }
 0x197   :  { %p453_p0 = scmp.ne.s32.totalorder %s565_s2, %s452_s11  ;;  %p456_p1 = scmp.lt.u32.totalorder %s452_s11, %s565_s2 }
 0x199   :  { %p458_p2 = pnand %p456_p1, %p453_p0 }
 0x19b   :  { %461 = shalt.err (!%p458_p2)
}
 0x19c   :  { %269 = dma.vmem_to_hbm [thread:$0]  %s267_s4, 16, %s565_s2, [#allocation3]  }
 0x19f   :  { %v164_v60 = vpop.trf.xlu0 }
 0x1a0   :  { %180 = vst [vmem:[#allocation8] sm:$0x1] %v164_v60 }
 0x1a7   :  { %v196_v61 = vld [vmem:[#allocation8] sm:$0x1] }
 0x1a8   :  { %198 = vst [vmem:[#allocation9] sm:$0x1] %v196_v61 }
 0x1af   :  { %v332_v62 = vld [vmem:[#allocation9] sm:$0x1] }
 0x1b0   :  { %333 = vst [vmem:[%s566_s3] sm:$0x1] %v332_v62 }
 0x1b1   :  { %468 = dma.done.wait [#allocation3], 16  }
 0x1b2   :  { %469 = vsyncadd [#allocation3], 4294967280 }
 0x1b3   :  { %339 = vsyncpa [#allocation2], 1 }
 0x1b4   :  { %340 = vsyncpa [#allocation3], 1 }

// kernel: custom-call.24
= control target key start
LH: loop header
LB: loop body
LE: loop exit
PB: predicated region body
PF: predicated region fallthrough
CT: control target
= control target key end

     0   :  { %v37_v1 = vlaneseq  ;;  %v138_v11 = vmov -1.0   ;;  %s155_s0 = inlined_call_operand.vmem [shape: f32[1,3,3], index: 0, kind: input, shape index: {}]   ;;  %s156_s1 = inlined_call_operand.vmem [shape: f32[1,3,3], index: 1, kind: output, shape index: {}]  }
   0x1   :  { %v17_v0 = vld [vmem:[%s155_s0] sm:$0xf] }
   0x2   :  { %18 = vst [vmem:[#allocation1] sm:$0xf] %v17_v0  ;;  %v38_v3 = vand.u32 127, %v37_v1  ;;  %v41_v4 = vshrl.u32 %v37_v1, 7 }
   0x4   :  { %vm39_vm0 = vcmp.lt.s32.totalorder %v38_v3, 3  ;;  %vm48_vm1 = vcmp.ge.s32.totalorder %v41_v4, %v38_v3  ;;  %vm43_vm2 = vcmp.eq.s32.totalorder %v41_v4, %v38_v3  ;;  %vm62_vm4 = vcmp.eq.s32.totalorder %v38_v3, 0 }
   0x5   :  { %vm49_vm3 = vmand %vm48_vm1, %vm39_vm0  ;;  %vm59_vm5 = vcmp.eq.s32.totalorder %v38_v3, %v41_v4  ;;  %v63_v12 = vsel %vm62_vm4, 1.0, %v138_v11  ;;  %vm70_vm6 = vcmp.eq.s32.totalorder %v38_v3, 1  ;;  %vm80_vm7 = vcmp.eq.s32.totalorder %v38_v3, 2 }
   0x6   :  { %v64_v13 = vsel %vm59_vm5, %v63_v12, 0.0 }
   0x9   :  { %v35_v2 = vld [vmem:[#allocation1] sm:$0xf] }
   0xa   :  { %36 = vst [vmem:[#allocation0] sm:$0xf] %v35_v2 }
  0x11   :  { %v44_v5 = vld [vmem:[#allocation0] sm:$0xff] }
  0x12   :  { %v45_v6 = vsel %vm43_vm2, %v44_v5, 0.0  ;;  %v50_v7 = vsel %vm49_vm3, %v44_v5, 0.0 }
  0x13   :  { %46 = vadd.xlane.f32.xlu0 %v45_v6 }
  0xa0   :  { %v47_v8 = vpop.xlane.xlu0 %46 }
  0xa1   :  { %136 = vrcp.f32 %v47_v8  ;;  %vm87_vm8 = vweird.f32 %v47_v8 }
  0xab   :  { %v137_v9 = vpop.eup %136 }
  0xac   :  { %v52_v10 = vmul.f32 %v137_v9, %v50_v7 }
  0xae   :  { %53 = vst [vmem:[#allocation4] sm:$0xff] %v52_v10 }
  0xb5   :  { %v66_v14 = vld [vmem:[#allocation4 + $0x1] ss:$0 sm:$0xff]  ;;  %v76_v17 = vld [vmem:[#allocation4 + $0x2] ss:$0 sm:$0xff] }
  0xb6   :  { %v67_v15 = vxor.u32 2147483648, %v66_v14  ;;  %v77_v19 = vxor.u32 2147483648, %v76_v17 }
  0xb8   :  { %v71_v16 = vmul.f32 %v67_v15, %v64_v13 }
  0xba   :  { %72 = vadd.xlane.f32.xlu0 %v71_v16 }
 0x147   :  { %v73_v18 = vpop.xlane.xlu0 %72 }
 0x148   :  { %v74_v20 = vsel %vm70_vm6, %v73_v18, %v64_v13 }
 0x149   :  { %v81_v21 = vmul.f32 %v77_v19, %v74_v20 }
 0x14b   :  { %82 = vadd.xlane.f32.xlu1 %v81_v21 }
 0x1d8   :  { %v83_v22 = vpop.xlane.xlu1 %82 }
 0x1d9   :  { %v84_v23 = vsel %vm80_vm7, %v83_v22, %v74_v20 }
 0x1da   :  { %v86_v24 = vmul.f32 %v137_v9, %v84_v23 }
 0x1dc   :  { %v88_v25 = vsel %vm87_vm8, %v84_v23, %v86_v24 }
 0x1dd   :  { %89 = vst [vmem:[#allocation2] sm:$0xff] %v88_v25 }
 0x1e4   :  { %v93_v26 = vld [vmem:[#allocation2] sm:$0xf] }
 0x1e5   :  { %95 = vst [vmem:[#allocation3] sm:$0xf] %v93_v26 }
 0x1ec   :  { %v111_v27 = vld [vmem:[#allocation3] sm:$0xf] }
 0x1ed   :  { %112 = vst [vmem:[%s156_s1] sm:$0xf] %v111_v27 }

// kernel: custom-call.23
= control target key start
LH: loop header
LB: loop body
LE: loop exit
PB: predicated region body
PF: predicated region fallthrough
CT: control target
= control target key end

     0   :  { %v37_v1 = vlaneseq  ;;  %v137_v11 = vmov -1.0   ;;  %s154_s0 = inlined_call_operand.vmem [shape: f32[1,3,3], index: 0, kind: input, shape index: {}]   ;;  %s155_s1 = inlined_call_operand.vmem [shape: f32[1,3,3], index: 1, kind: output, shape index: {}]  }
   0x1   :  { %v17_v0 = vld [vmem:[%s154_s0] sm:$0xf] }
   0x2   :  { %18 = vst [vmem:[#allocation1] sm:$0xf] %v17_v0  ;;  %v38_v3 = vand.u32 127, %v37_v1  ;;  %v41_v4 = vshrl.u32 %v37_v1, 7 }
   0x4   :  { %vm39_vm0 = vcmp.lt.s32.totalorder %v38_v3, 3  ;;  %vm48_vm1 = vcmp.le.s32.totalorder %v41_v4, %v38_v3  ;;  %vm43_vm2 = vcmp.eq.s32.totalorder %v41_v4, %v38_v3  ;;  %vm62_vm4 = vcmp.eq.s32.totalorder %v38_v3, 2 }
   0x5   :  { %vm49_vm3 = vmand %vm48_vm1, %vm39_vm0  ;;  %vm59_vm5 = vcmp.eq.s32.totalorder %v38_v3, %v41_v4  ;;  %v63_v12 = vsel %vm62_vm4, 1.0, %v137_v11  ;;  %vm70_vm6 = vcmp.eq.s32.totalorder %v38_v3, 1  ;;  %vm79_vm7 = vcmp.eq.s32.totalorder %v38_v3, 0 }
   0x6   :  { %v64_v13 = vsel %vm59_vm5, %v63_v12, 0.0 }
   0x9   :  { %v35_v2 = vld [vmem:[#allocation1] sm:$0xf] }
   0xa   :  { %36 = vst [vmem:[#allocation0] sm:$0xf] %v35_v2 }
  0x11   :  { %v44_v5 = vld [vmem:[#allocation0] sm:$0xff] }
  0x12   :  { %v45_v6 = vsel %vm43_vm2, %v44_v5, 0.0  ;;  %v50_v7 = vsel %vm49_vm3, %v44_v5, 0.0 }
  0x13   :  { %46 = vadd.xlane.f32.xlu0 %v45_v6 }
  0xa0   :  { %v47_v8 = vpop.xlane.xlu0 %46 }
  0xa1   :  { %135 = vrcp.f32 %v47_v8  ;;  %vm86_vm8 = vweird.f32 %v47_v8 }
  0xab   :  { %v136_v9 = vpop.eup %135 }
  0xac   :  { %v52_v10 = vmul.f32 %v136_v9, %v50_v7 }
  0xae   :  { %53 = vst [vmem:[#allocation4] sm:$0xff] %v52_v10 }
  0xb5   :  { %v66_v14 = vld [vmem:[#allocation4 + $0x1] ss:$0 sm:$0xff]  ;;  %v75_v17 = vld [vmem:[#allocation4] ss:$0 sm:$0xff] }
  0xb6   :  { %v67_v15 = vxor.u32 2147483648, %v66_v14  ;;  %v76_v19 = vxor.u32 2147483648, %v75_v17 }
  0xb8   :  { %v71_v16 = vmul.f32 %v67_v15, %v64_v13 }
  0xba   :  { %72 = vadd.xlane.f32.xlu0 %v71_v16 }
 0x147   :  { %v73_v18 = vpop.xlane.xlu0 %72 }
 0x148   :  { %v74_v20 = vsel %vm70_vm6, %v73_v18, %v64_v13 }
 0x149   :  { %v80_v21 = vmul.f32 %v76_v19, %v74_v20 }
 0x14b   :  { %81 = vadd.xlane.f32.xlu1 %v80_v21 }
 0x1d8   :  { %v82_v22 = vpop.xlane.xlu1 %81 }
 0x1d9   :  { %v83_v23 = vsel %vm79_vm7, %v82_v22, %v74_v20 }
 0x1da   :  { %v85_v24 = vmul.f32 %v136_v9, %v83_v23 }
 0x1dc   :  { %v87_v25 = vsel %vm86_vm8, %v83_v23, %v85_v24 }
 0x1dd   :  { %88 = vst [vmem:[#allocation2] sm:$0xff] %v87_v25 }
 0x1e4   :  { %v92_v26 = vld [vmem:[#allocation2] sm:$0xf] }
 0x1e5   :  { %94 = vst [vmem:[#allocation3] sm:$0xf] %v92_v26 }
 0x1ec   :  { %v110_v27 = vld [vmem:[#allocation3] sm:$0xf] }
 0x1ed   :  { %111 = vst [vmem:[%s155_s1] sm:$0xf] %v110_v27 }

// kernel: custom-call.36
= control target key start
LH: loop header
LB: loop body
LE: loop exit
PB: predicated region body
PF: predicated region fallthrough
CT: control target
= control target key end

     0   :  { %5 = vsyncpa [#allocation5], 0  ;;  %s884_s0 = inlined_call_operand.vmem [shape: f32[8,3,3], index: 0, kind: input, shape index: {}]   ;;  %s885_s1 = inlined_call_operand.vmem [shape: f32[8,3,3], index: 1, kind: output, shape index: {0}]   ;;  %s886_s2 = inlined_call_operand.hbm [shape: s32[8,3], index: 2, kind: output, shape index: {1}]   ;;  %s887_s3 = inlined_call_operand.vmem [shape: s32[8,3], index: 3, kind: output, shape index: {2}]  }
   0x1   :  { %7 = vsyncpa [#allocation5 + $0x1], 0  ;;  %s704_s12 = smov 0   ;;  %s706_s13 = smov 0  }
   0x2   :  { %s708_s14 = smov 0   ;;  %s710_s15 = smov 0  }
   0x3 LB: > { %s725_s16 = sadd.s32 4294967295, %s676_s15   ;;  %s539_s17 = sadd.s32 4294967294, %s676_s15   ;;  %s676_s15 = sphi %s710_s15, %s895_s15   ;;  %s672_s14 = sphi %s708_s14, %s894_s14   ;;  %s668_s13 = sphi %s706_s13, %s893_s13   ;;  %s664_s12 = sphi %s704_s12, %s892_s12  }
   0x4   : > { %s729_s18 = sadd.s32 1, %s676_s15   ;;  %s17_s19 = sshrl.u32 %s676_s15, 3 }
   0x5   : > { %s18_s20 = sshrl.u32 %s729_s18, 3  ;;  %s22_s21 = sadd.s32 1, %s672_s14 }
   0x6   : > { %s19_s22 = ssub.s32 %s17_s19, %s18_s20  ;;  %p32_p0 = scmp.ne.s32.totalorder %s672_s14, %s668_s13 }
   0x7   : > { %p20_p1 = scmp.eq.s32.totalorder %s19_s22, 0  ;;  %p33_p2 = scmp.eq.s32.totalorder %s725_s16, 7 }
   0x8   : > { %p38_p3 = scmp.ne.s32.totalorder %s668_s13, %s664_s12  ;;  %p39_p4 = scmp.eq.s32.totalorder %s539_s17, 7 }
   0x9   : > { %s740_s23 = scalar_select %p20_p1, %s672_s14, %s22_s21  }
   0xa   : > { %p742_p5 = por %p33_p2, %p32_p0  ;;  %p746_p6 = por %p39_p4, %p38_p3 }
   0xb   : > { %p541_p7 = scmp.ge.s32.totalorder %s676_s15, 8 }
   0xc   : > { %s85_s26 = sand.u32 (!%p541_p7), 1, %s676_s15   ;;  %s543_s27 = sshll.u32 (!%p541_p7), %s676_s15, 2 }
   0xd   : > { %83 = sbr.rel (%p541_p7) target bundleno = 20 (0x14), region = 16  ;;  %s542_s28 = sshll.u32 (!%p541_p7), %s85_s26, 2 }
   0xe   : > { %s89_s4 = scalar_lea.vmem (!%p541_p7), %s884_s0, %s543_s27  ;;  %s87_s5 = scalar_lea.vmem (!%p541_p7), [#allocation1], %s542_s28 }
   0xf   : > { %v105_v0 = vld [vmem:[%s89_s4] sm:$0xf] (!%p541_p7) }
  0x10   : > { %106 = vst [vmem:[%s87_s5] sm:$0xf] (!%p541_p7), %v105_v0 }
  0x14 PF: > { %p544_p8 = scmp.ge.s32.totalorder %s676_s15, 1  ;;  %p122_p9 = scmp.lt.s32.totalorder %s676_s15, 9 }
  0x16   : > { %p123_p10 = pnand %p544_p8, %p122_p9 }
  0x18   : > { %126 = sbr.rel (%p123_p10) target bundleno = 441 (0x1b9), region = 50 }
  0x1f   : > { %s133_s6 = sand.u32 1, %s725_s16   ;;  %s144_s7 = sand.u32 1, %s668_s13   ;;  %v166_v1 = vlaneseq  ;;  %v682_v4 = vmov 0  }
  0x20   : > { %s760_s8 = sshll.u32 %s133_s6, 2  ;;  %s764_s9 = sshll.u32 %s144_s7, 3 }
  0x21   : > { %v767_v2 = vshrl.u32 %v166_v1, 7  ;;  %s135_s10 = scalar_lea.vmem [#allocation1], %s760_s8  ;;  %s161_s11 = sand.u32 7, %s725_s16  }
  0x22   : > { %v155_v3 = vld [vmem:[%s135_s10] sm:$0xf]  ;;  %s146_s17 = scalar_lea.vmem [#allocation4], %s764_s9  ;;  %s888_s20 = scalar_lea.vmem [#allocation6], %s764_s9 }
  0x23   : > { %156 = vst [vmem:[#allocation0] sm:$0xf] %v155_v3  ;;  %170 = vst [vmem:[#allocation7] sm:$0xff] %v767_v2  ;;  %s775_s19 = scalar_lea.vmem %s146_s17, %s161_s11 [#allocation4]  ;;  %s780_s21 = scalar_lea.vmem %s888_s20, %s161_s11 [#allocation6] }
  0x24   : > { %165 = vst [vmem:[%s775_s19] sm:$0x1] %v682_v4  ;;  %s139_s22 = scalar_lea.vmem [#allocation3], %s760_s8  ;;  %s784_s26 = smov 0  }
  0x2a   : > { %v159_v5 = vld [vmem:[#allocation0] sm:$0xff] }
  0x2b   : > { %160 = vst [vmem:[#allocation2] sm:$0xff] %v159_v5 }
  0x2c LB: >> { %vm186_vm0 = vcmp.lt.s32.totalorder %v767_v2, 3  ;;  %v791_v8 = vstv %s680_s26  ;;  %s227_s27 = ssub.s32 128, %s680_s26  ;;  %v233_v38 = vand.u32 127, %v166_v1  ;;  %v236_v40 = vld [vmem:[%s775_s19] ss:$0 sm:$0xff]  ;;  %s239_s28 = scalar_lea.vmem [#allocation2], %s680_s26  ;;  %s680_s26 = sphi %s784_s26, %s176_s26  }
  0x2d   : >> { %vm185_vm1 = vcmp.ge.s32.totalorder %v767_v2, %v791_v8  ;;  %s245_s30 = scalar_lea.vmem [#allocation7], %s680_s26  ;;  %vm265_vm15 = vcmp.gt.s32.totalorder %v767_v2, %v791_v8  ;;  %s176_s26 = sadd.s32 1, %s680_s26  }
  0x2e   : >> { %vm187_vm3 = vmand %vm185_vm1, %vm186_vm0  ;;  %vm257_vm12 = vcmp.gt.s32.totalorder %v233_v38, %v791_v8  ;;  %vm234_vm13 = vcmp.eq.s32.totalorder %v233_v38, %v791_v8  ;;  %v247_v42 = vld [vmem:[%s245_s30] ss:$0 sm:$0xff]  ;;  %p173_p11 = scmp.ge.s32.totalorder %s176_s26, 3  }
  0x2f   : >> { %vm269_vm1 = vmand %vm265_vm15, %vm234_vm13  ;;  %s380_s6 = sshrl.u32 (%p173_p11), %s725_s16, 3  ;;  %s553_s10 = sshll.u32 (%p173_p11), %s725_s16, 2 }
  0x30   : > { %s554_s11 = sshll.u32 (%p173_p11), %s380_s6, 7 }
  0x32   : >> { %v181_v6 = vld [vmem:[#allocation2] sm:$0xff]  ;;  %v241_v41 = vld [vmem:[%s239_s28] ss:$0 sm:$0xff] }
  0x33   : >> { %v182_v7 = vand.u32 2147483647, %v181_v6 }
  0x35   : >> { %vm549_vm2 = vcmp.gt.f32.partialorder %v182_v7, -inf }
  0x36   : >> { %vm189_vm4 = vmand %vm187_vm3, %vm549_vm2 }
  0x37   : >> { %v190_v9 = vsel %vm189_vm4, %v767_v2, %v791_v8  ;;  %v191_v10 = vsel %vm189_vm4, %v182_v7, -inf }
  0x38   : >> { %v192_v11 = vrot.slane %v191_v10, 1  ;;  %v193_v12 = vrot.slane %v190_v9, 1 }
  0x3a   : >> { %vm194_vm5 = vcmp.ge.f32.partialorder %v192_v11, %v191_v10  ;;  %v197_v13 = vrot.slane %v192_v11, 1  ;;  %v198_v14 = vrot.slane %v193_v12, 1 }
  0x3b   : >> { %v195_v15 = vsel %vm194_vm5, %v192_v11, %v191_v10  ;;  %v196_v16 = vsel %vm194_vm5, %v193_v12, %v190_v9 }
  0x3c   : >> { %vm199_vm6 = vcmp.ge.f32.partialorder %v197_v13, %v195_v15  ;;  %v202_v17 = vrot.slane %v197_v13, 1  ;;  %v203_v18 = vrot.slane %v198_v14, 1 }
  0x3d   : >> { %v200_v19 = vsel %vm199_vm6, %v197_v13, %v195_v15  ;;  %v201_v20 = vsel %vm199_vm6, %v198_v14, %v196_v16 }
  0x3e   : >> { %vm204_vm7 = vcmp.ge.f32.partialorder %v202_v17, %v200_v19  ;;  %v207_v21 = vrot.slane %v202_v17, 1  ;;  %v208_v22 = vrot.slane %v203_v18, 1 }
  0x3f   : >> { %v205_v23 = vsel %vm204_vm7, %v202_v17, %v200_v19  ;;  %v206_v24 = vsel %vm204_vm7, %v203_v18, %v201_v20 }
  0x40   : >> { %vm209_vm8 = vcmp.ge.f32.partialorder %v207_v21, %v205_v23  ;;  %v212_v25 = vrot.slane %v207_v21, 1  ;;  %v213_v26 = vrot.slane %v208_v22, 1 }
  0x41   : >> { %v210_v27 = vsel %vm209_vm8, %v207_v21, %v205_v23  ;;  %v211_v28 = vsel %vm209_vm8, %v208_v22, %v206_v24 }
  0x42   : >> { %vm214_vm9 = vcmp.ge.f32.partialorder %v212_v25, %v210_v27  ;;  %v217_v29 = vrot.slane %v212_v25, 1  ;;  %v218_v30 = vrot.slane %v213_v26, 1 }
  0x43   : >> { %v215_v31 = vsel %vm214_vm9, %v212_v25, %v210_v27  ;;  %v216_v32 = vsel %vm214_vm9, %v213_v26, %v211_v28 }
  0x44   : >> { %vm219_vm10 = vcmp.ge.f32.partialorder %v217_v29, %v215_v31  ;;  %v222_v33 = vrot.slane %v217_v29, 1  ;;  %v223_v34 = vrot.slane %v218_v30, 1 }
  0x45   : >> { %v220_v35 = vsel %vm219_vm10, %v217_v29, %v215_v31  ;;  %v221_v36 = vsel %vm219_vm10, %v218_v30, %v216_v32 }
  0x46   : >> { %vm224_vm11 = vcmp.ge.f32.partialorder %v222_v33, %v220_v35 }
  0x47   : >> { %v226_v37 = vsel %vm224_vm11, %v223_v34, %v221_v36 }
  0x48   : >> { %228 = vrot.lane.b32.xlu0 %v226_v37, %s227_s27  ;;  %s387_s27 = sshll.u32 (%p173_p11), %s146_s17, 4  ;;  %s388_s27 = int_to_ptr.vmem [resolvable:$true] %s387_s27 }
  0xba   : >> { %v229_v39 = vpop.permute.xlu0 %228 }
  0xbb   : >> { %558 = vpush %v229_v39 }
  0xec   : >> { %s559_s29 = spop %558 }
  0xed   : >> { %v235_v43 = vstv %s559_s29  ;;  %s240_s4 = scalar_lea.vmem [#allocation2], %s559_s29  ;;  %s246_s5 = scalar_lea.vmem [#allocation7], %s559_s29 }
  0xee   : >> { %v242_v44 = vld [vmem:[%s240_s4] ss:$0 sm:$0xff]  ;;  %v237_v46 = vsel %vm234_vm13, %v235_v43, %v236_v40  ;;  %s336_s29 = scalar_lea.sflag (%p173_p11), [#allocation5], %s144_s7 }
  0xef   : >> { %v248_v45 = vld [vmem:[%s246_s5] ss:$0 sm:$0xff]  ;;  %243 = vst [vmem:[%s240_s4] sm:$0x1] %v241_v41  ;;  %vm251_vm14 = vcmp.ne.f32.partialorder %v242_v44, 0.0  ;;  %238 = vst [vmem:[%s775_s19] sm:$0x1] %v237_v46  ;;  %v258_v53 = vsel %vm257_vm12, %v242_v44, 0.0  ;;  %s829_s19 = scalar_lea.hbm (%p173_p11), %s886_s2, %s554_s11 }
  0xf0   : >> { %249 = vst [vmem:[%s246_s5] sm:$0x1] %v247_v42  ;;  %244 = vst [vmem:[%s239_s28] sm:$0x1] %v242_v44  ;;  %s683_s4 = smov (%p173_p11), [#allocation4]  }
  0xf1   : >> { %250 = vst [vmem:[%s245_s30] sm:$0x1] %v248_v45  ;;  %vm252_vm0 = vmand %vm234_vm13, %vm251_vm14  ;;  %s610_s30 = scalar_lea.vmem (%p173_p11), %s388_s27, 128  ;;  %s614_s5 = sshll.u32 (%p173_p11), %s683_s4, 4  ;;  %s615_s5 = int_to_ptr.vmem [resolvable:$false] %s614_s5 }
  0xf2   : >> { %v253_v47 = vsel %vm252_vm0, %v242_v44, 1.0  ;;  %p611_p12 = scmp.ne.s32.totalorder (%p173_p11), %s388_s27, %s610_s30  ;;  %s616_s20 = scalar_lea.vmem (%p173_p11), %s615_s5, 256 }
  0xf3   : >> { %v266_v48 = vsel %vm265_vm15, %v253_v47, 1.0  ;;  %p617_p1 = scmp.lt.s32.totalorder (%p173_p11), %s388_s27, %s615_s5  ;;  %p618_p2 = scmp.lt.s32.totalorder (%p173_p11), %s616_s20, %s610_s30 }
  0xf4   : >> { %608 = vrcp.f32 %v266_v48  ;;  %p612_p13 = pnand (%p173_p11), %p611_p12, %p742_p5 }
  0xf5   : > { %p619_p3 = por (%p173_p11), %p618_p2, %p617_p1 }
  0xf6   : > { %p613_p0 = pneg (%p173_p11), %p612_p13 }
  0xf7   : >> { %v262_v50 = vld [vmem:[#allocation2] sm:$0xff] }
  0xf8   : > { %v276_v57 = vld [vmem:[#allocation7] sm:$0xff] (%p173_p11)  ;;  %p620_p4 = pnand (%p173_p11), %p619_p3, %p613_p0 }
  0xfe   : >> { %v609_v49 = vpop.eup %608 }
  0xff   : >> { %v268_v51 = vmul.f32 %v609_v49, %v262_v50 }
 0x101   : >> { %v270_v52 = vsel %vm269_vm1, %v268_v51, 0.0 }
 0x102   : >> { %271 = vadd.xlane.f32.xlu0 %v270_v52 }
 0x12f   : > { %292 = vxpose.xlu0.b32.start.end [1/1] (short) (narrow) (%p173_p11), %v276_v57, 8 }
 0x18e   : > { %175 = sbr.rel (!%p173_p11) target bundleno = 44 (0x2c), region = 206 }
 0x18f   : >> { %v272_v54 = vpop.xlane.xlu0 %271 }
 0x190   : >> { %v273_v55 = vmul.f32 %v272_v54, %v258_v53 }
 0x192   : >> { %v274_v56 = vsub.f32 %v268_v51, %v273_v55 }
 0x194   : >> { %275 = vst [vmem:[#allocation2] sm:$0xff] %v274_v56 }
 0x19b   : > { %v328_v58 = vld [vmem:[#allocation2] sm:$0xf] }
 0x19c   : > { %330 = vst [vmem:[%s139_s22] sm:$0xf] %v328_v58 }
 0x19d   : > { %623 = shalt.err (!%p620_p4)
}
 0x19e   : > { %s624_s7 = scalar_lea.hbm %s829_s19, 128  ;;  %s628_s26 = scalar_lea.hbm %s886_s2, 128 }
 0x19f   : > { %p625_p7 = scmp.ne.s32.totalorder %s829_s19, %s624_s7  ;;  %p629_p10 = scmp.lt.u32.totalorder %s829_s19, %s886_s2 }
 0x1a0   : > { %p630_p11 = scmp.lt.u32.totalorder %s628_s26, %s624_s7  ;;  %p632_p13 = scmp.lt.u32.totalorder %s624_s7, %s829_s19 }
 0x1a1   : > { %p626_p8 = pnand %p625_p7, %p742_p5 }
 0x1a2   : > { %p631_p12 = por %p630_p11, %p629_p10 }
 0x1a3   : > { %p627_p9 = pneg %p626_p8 }
 0x1a4   : > { %p633_p0 = por %p632_p13, %p631_p12 }
 0x1a6   : > { %p634_p1 = pnand %p633_p0, %p627_p9 }
 0x1a8   : > { %637 = shalt.err (!%p634_p1)
}
 0x1a9   : > { %560 = dma.vmem_to_hbm [thread:$0]  (%p742_p5), %s388_s27, 128, %s829_s19, %s336_s29   ;;  %v361_v59 = vld [vmem:[%s139_s22] sm:$0xf] }
 0x1aa   : > { %s345_s5 = scalar_lea.vmem %s885_s1, %s553_s10  ;;  %393 = sbr.rel (!%p742_p5) target bundleno = 441 (0x1b9), region = 96 }
 0x1ab   : > { %362 = vst [vmem:[%s345_s5] sm:$0xf] %v361_v59  ;;  %s555_s7 = sshll.u32 (%p742_p5), %s380_s6, 3  ;;  %s891_s17 = scalar_lea.vmem (%p742_p5), [#allocation6], %s764_s9 }
 0x1ac   : > { %s396_s29 = scalar_lea.vmem (%p742_p5), %s887_s3, %s555_s7 }
 0x1af   : > { %v308_v60 = vpop.trf.xlu0 }
 0x1b0   : > { %324 = vst [vmem:[%s780_s21] sm:$0x1] %v308_v60 }
 0x1b7   : > { %v424_v61 = vld [vmem:[%s891_s17] sm:$0xff] }
 0x1b8   : > { %425 = vst [vmem:[%s396_s29] sm:$0xff] %v424_v61 }
 0x1b9 PF: > { %p566_p2 = scmp.ge.s32.totalorder %s676_s15, 2  ;;  %s441_s8 = sand.u32 1, %s664_s12  }
 0x1ba   : > { %s442_s24 = scalar_lea.sflag [#allocation5], %s441_s8 }
 0x1bb   : > { %p563_p5 = pnand %p566_p2, %p746_p6 }
 0x1bd   : > { %659 = dma.done.wait (!%p563_p5), %s442_s24, 128  }
 0x1be   : > { %661 = vsyncadd (!%p563_p5), %s442_s24, 4294967168  ;;  %p10_p3 = scmp.ge.s32.totalorder %s729_s18, 10   ;;  %s892_s12 = smov %s668_s13 }
 0x1bf   : > { %s893_s13 = smov %s672_s14  ;;  %s894_s14 = smov %s740_s23 }
 0x1c0   : > { %s895_s15 = smov %s729_s18  ;;  %12 = sbr.rel (!%p10_p3) target bundleno = 3 (0x3), region = 217 }
 0x1c7   :  { %454 = vsyncpa [#allocation5], 1 }
 0x1c8   :  { %456 = vsyncpa [#allocation5 + $0x1], 1 }

// kernel: _lambda_.2
= control target key start
LH: loop header
LB: loop body
LE: loop exit
PB: predicated region body
PF: predicated region fallthrough
CT: control target
= control target key end

     0   :  { %v2946_v0 = vmov 0   ;;  %v4676_v10 = vmov 0.0   ;;  %v66_v11 = vlaneseq  ;;  %vm232_vm0 = vcmask 261120   ;;  %s4667_s2 = inlined_call_operand.vmem [shape: f32[32,1], index: 2, kind: input, shape index: {}]   ;;  %s4668_s1 = inlined_call_operand.vmem [shape: f32[32,1], index: 1, kind: input, shape index: {}]   ;;  %s4669_s4 = inlined_call_operand.vmem [shape: f32[12,1], index: 4, kind: input, shape index: {}]   ;;  %s4670_s0 = inlined_call_operand.vmem [shape: f32[4,1,1024], index: 0, kind: input, shape index: {}]   ;;  %s4671_s3 = inlined_call_operand.vmem [shape: f32[12,32], index: 3, kind: input, shape index: {}]   ;;  %s4672_s6 = inlined_call_operand.vmem [shape: f32[4,4,1024], index: 6, kind: output, shape index: {0}]   ;;  %s4673_s5 = inlined_call_operand.vmem [shape: f32[2,1024], index: 5, kind: input, shape index: {}]   ;;  %s4674_s8 = inlined_call_operand.vmem [shape: f32[4,8,1], index: 8, kind: output, shape index: {2}]   ;;  %s4675_s7 = inlined_call_operand.vmem [shape: f32[4,4,4], index: 7, kind: output, shape index: {1}]  }
   0x1   :  { %2873 = vset.pattern.permute.xlu1 %v2946_v0  ;;  %2872 = vset.pattern.permute.xlu0 %v2946_v0  ;;  %v34_v1 = vld [vmem:[%s4667_s2] sm:$0xff]  ;;  %v35_v3 = vld [vmem:[%s4667_s2 + $0x8] sm:$0xff]  ;;  %v33_v5 = vld [vmem:[%s4668_s1 + $0x18] sm:$0xff]  ;;  %vm565_vm1 = vcmask 1043456   ;;  %vm547_vm2 = vcmask 1047556   ;;  %vm2687_vm3 = vcmask 7172  }
   0x2   :  { %v30_v2 = vld [vmem:[%s4668_s1] sm:$0xff]  ;;  %140 = vperm.xlu1 %2873, %v34_v1   ;;  %v31_v4 = vld [vmem:[%s4668_s1 + $0x8] sm:$0xff]  ;;  %v32_v6 = vld [vmem:[%s4668_s1 + $0x10] sm:$0xff]  ;;  %303 = vmatprep.mubr.f32.mxu0 %v4676_v10  ;;  %v67_v12 = vshrl.u32 %v66_v11, 7  ;;  %vm2689_vm4 = vcmask 3072   ;;  %vm787_vm5 = vcmask 7168  }
   0x3   :  { %47 = vperm.xlu0 %2872, %v30_v2   ;;  %v37_v7 = vld [vmem:[%s4667_s2 + $0x18] sm:$0xff]  ;;  %v36_v8 = vld [vmem:[%s4667_s2 + $0x10] sm:$0xff]  ;;  %v40_v9 = vld [vmem:[%s4669_s4] sm:$0xff]  ;;  %380 = vmatprep.mubr.f32.mxu1 %v4676_v10  ;;  %vm789_vm6 = vcmask 15360   ;;  %vm791_vm7 = vcmask 23552   ;;  %vm2682_vm8 = vcmask 27648  }
   0x4   :  { %v3022_v13 = vsub.s32 1, %v67_v12  ;;  %v3024_v14 = vsub.s32 3, %v67_v12  ;;  %v3026_v15 = vsub.s32 0, %v67_v12  ;;  %v26_v16 = vld [vmem:[%s4670_s0] sm:$0xff]  ;;  %v3031_v17 = vsub.s32 2, %v67_v12  ;;  %v27_v22 = vld [vmem:[%s4670_s0 + $0x8] sm:$0xff] }
   0x5   :  { %v3033_v18 = vsub.s32 5, %v67_v12  ;;  %v3035_v19 = vsub.s32 7, %v67_v12  ;;  %v3037_v20 = vsub.s32 4, %v67_v12  ;;  %v3039_v21 = vsub.s32 6, %v67_v12  ;;  %v28_v30 = vld [vmem:[%s4670_s0 + $0x10] sm:$0xff]  ;;  %v29_v39 = vld [vmem:[%s4670_s0 + $0x18] sm:$0xff] }
   0x6   :  { %145 = vperm.xlu1 %2873, %v35_v3   ;;  %4708 = vst [vmem:[#allocation2_spill] sm:$0xff] %v3022_v13  ;;  %4709 = vst [vmem:[#allocation3_spill] sm:$0xff] %v3024_v14  ;;  %v3045_v23 = vrot.slane %v26_v16, %v3022_v13  ;;  %v3048_v24 = vrot.slane %v26_v16, %v3024_v14  ;;  %v3051_v25 = vrot.slane %v26_v16, %v3026_v15 }
   0x7   :  { %52 = vperm.xlu0 %2872, %v31_v4   ;;  %4710 = vst [vmem:[#allocation4_spill] sm:$0xff] %v3026_v15  ;;  %4711 = vst [vmem:[#allocation5_spill] sm:$0xff] %v3031_v17  ;;  %v3054_v26 = vrot.slane %v26_v16, %v3031_v17  ;;  %v3057_v27 = vrot.slane %v26_v16, %v3033_v18  ;;  %v3060_v28 = vrot.slane %v26_v16, %v3035_v19 }
   0x8   :  { %4712 = vst [vmem:[#allocation6_spill] sm:$0xff] %v3033_v18  ;;  %4713 = vst [vmem:[#allocation7_spill] sm:$0xff] %v3035_v19  ;;  %v3063_v29 = vrot.slane %v26_v16, %v3037_v20  ;;  %v3069_v31 = vrot.slane %v26_v16, %v3039_v21  ;;  %v3072_v32 = vrot.slane %v27_v22, %v3022_v13 }
   0x9   :  { %4714 = vst [vmem:[#allocation8_spill] sm:$0xff] %v3037_v20  ;;  %4715 = vst [vmem:[#allocation9_spill] sm:$0xff] %v3039_v21  ;;  %v3075_v33 = vrot.slane %v27_v22, %v3024_v14  ;;  %v3078_v34 = vrot.slane %v27_v22, %v3026_v15  ;;  %v3081_v35 = vrot.slane %v27_v22, %v3031_v17 }
   0xa   :  { %62 = vperm.xlu1 %2873, %v33_v5   ;;  %v3084_v36 = vrot.slane %v27_v22, %v3033_v18  ;;  %v3087_v37 = vrot.slane %v27_v22, %v3035_v19  ;;  %v3090_v38 = vrot.slane %v27_v22, %v3037_v20  ;;  %v3096_v40 = vrot.slane %v27_v22, %v3039_v21 }
   0xb   :  { %57 = vperm.xlu0 %2872, %v32_v6   ;;  %v3099_v41 = vrot.slane %v28_v30, %v3022_v13  ;;  %v3102_v42 = vrot.slane %v28_v30, %v3024_v14  ;;  %v3105_v43 = vrot.slane %v28_v30, %v3026_v15  ;;  %v3108_v44 = vrot.slane %v28_v30, %v3031_v17 }
   0xc   :  { %v3111_v45 = vrot.slane %v28_v30, %v3033_v18  ;;  %v3114_v46 = vrot.slane %v28_v30, %v3035_v19  ;;  %v3117_v47 = vrot.slane %v28_v30, %v3037_v20  ;;  %v3120_v48 = vrot.slane %v28_v30, %v3039_v21 }
   0xd   :  { %v3123_v49 = vrot.slane %v29_v39, %v3022_v13  ;;  %v3126_v50 = vrot.slane %v29_v39, %v3024_v14  ;;  %v3129_v51 = vrot.slane %v29_v39, %v3026_v15  ;;  %v3136_v54 = vrot.slane %v29_v39, %v3031_v17 }
   0xe   :  { %155 = vperm.xlu1 %2873, %v37_v7   ;;  %v3139_v55 = vrot.slane %v29_v39, %v3033_v18  ;;  %v3142_v56 = vrot.slane %v29_v39, %v3035_v19  ;;  %v3145_v57 = vrot.slane %v29_v39, %v3037_v20  ;;  %v3181_v12 = vrot.slane %v29_v39, %v3039_v21 }
   0xf   :  { %150 = vperm.xlu0 %2872, %v36_v8  }
  0x10   :  { %4716 = vst [vmem:[#allocation10_spill] sm:$0xff] %v3145_v57  ;;  %4717 = vst [vmem:[#allocation11_spill] sm:$0xff] %v3181_v12 }
  0x13   :  { %224 = vperm.xlu0 %2872, %v40_v9  }
  0x81   :  { %v3131_v52 = vpop.permute.xlu1 %140 }
  0x82   :  { %v3133_v53 = vpop.permute.xlu0 %47 }
  0x83   :  { %v107_v58 = vmul.f32 %v3045_v23, %v3133_v53  ;;  %v109_v59 = vmul.f32 %v3048_v24, %v3133_v53  ;;  %v106_v60 = vmul.f32 %v3051_v25, %v3133_v53  ;;  %v108_v61 = vmul.f32 %v3054_v26, %v3133_v53 }
  0x84   :  { %v111_v62 = vmul.f32 %v3057_v27, %v3133_v53  ;;  %v113_v63 = vmul.f32 %v3060_v28, %v3133_v53  ;;  %v110_v0 = vmul.f32 %v3063_v29, %v3133_v53  ;;  %v112_v1 = vmul.f32 %v3069_v31, %v3133_v53 }
  0x85   :  { %v159_v2 = vadd.f32 %v3131_v52, %v107_v58  ;;  %v161_v3 = vadd.f32 %v3131_v52, %v109_v59  ;;  %v158_v4 = vadd.f32 %v3131_v52, %v106_v60  ;;  %v160_v5 = vadd.f32 %v3131_v52, %v108_v61  ;;  %v3167_v6 = vpop.permute.xlu1 %145 }
  0x86   :  { %v3169_v7 = vpop.permute.xlu0 %52  ;;  %v3172_v8 = vadd.f32 %v3131_v52, %v111_v62  ;;  %v3175_v9 = vadd.f32 %v3131_v52, %v113_v63  ;;  %v3178_v11 = vadd.f32 %v3131_v52, %v110_v0  ;;  %v3188_v58 = vadd.f32 %v3131_v52, %v112_v1 }
  0x87   :  { %v115_v16 = vmul.f32 %v3045_v23, %v3169_v7  ;;  %v191_v22 = vmax.f32 %v159_v2, 0.0  ;;  %v117_v30 = vmul.f32 %v3048_v24, %v3169_v7  ;;  %v193_v59 = vmax.f32 %v161_v3, 0.0 }
  0x88   :  { %v114_v60 = vmul.f32 %v3051_v25, %v3169_v7  ;;  %v190_v61 = vmax.f32 %v158_v4, 0.0  ;;  %v116_v62 = vmul.f32 %v3054_v26, %v3169_v7  ;;  %v192_v0 = vmax.f32 %v160_v5, 0.0 }
  0x89   :  { %v167_v39 = vadd.f32 %v3167_v6, %v115_v16  ;;  %v169_v63 = vadd.f32 %v3167_v6, %v117_v30  ;;  %v119_v2 = vmul.f32 %v3057_v27, %v3169_v7  ;;  %v3198_v10 = vpop.permute.xlu1 %62  ;;  %v195_v4 = vmax.f32 %v3172_v8, 0.0 }
  0x8a   :  { %v3200_v1 = vpop.permute.xlu0 %57  ;;  %v166_v3 = vadd.f32 %v3167_v6, %v114_v60  ;;  %v168_v19 = vadd.f32 %v3167_v6, %v116_v62  ;;  %v121_v21 = vmul.f32 %v3060_v28, %v3169_v7  ;;  %v131_v30 = vmul.f32 %v3045_v23, %v3198_v10 }
  0x8b   :  { %v199_v16 = vmax.f32 %v167_v39, 0.0  ;;  %v201_v18 = vmax.f32 %v169_v63, 0.0  ;;  %v123_v5 = vmul.f32 %v3045_v23, %v3200_v1  ;;  %v125_v60 = vmul.f32 %v3048_v24, %v3200_v1 }
  0x8c   :  { %v198_v20 = vmax.f32 %v166_v3, 0.0  ;;  %v200_v14 = vmax.f32 %v168_v19, 0.0  ;;  %v133_v62 = vmul.f32 %v3048_v24, %v3198_v10  ;;  %v122_v39 = vmul.f32 %v3051_v25, %v3200_v1 }
  0x8d   :  { %v2742_v8 = vpack.c.bf16 %v199_v16, %v191_v22  ;;  %v2750_v17 = vpack.c.bf16 %v201_v18, %v193_v59  ;;  %v130_v63 = vmul.f32 %v3051_v25, %v3198_v10  ;;  %v3219_v13 = vpop.permute.xlu1 %155  ;;  %v124_v3 = vmul.f32 %v3054_v26, %v3200_v1 }
  0x8e   :  { %v3221_v15 = vpop.permute.xlu0 %150  ;;  %v2744_v23 = vpack.c.bf16 %v198_v20, %v190_v61  ;;  %v2752_v19 = vpack.c.bf16 %v200_v14, %v192_v0  ;;  %v132_v24 = vmul.f32 %v3054_v26, %v3198_v10  ;;  %v183_v22 = vadd.f32 %v3219_v13, %v131_v30 }
  0x8f   :  { %2743 = vmatprep.subr.bf16.mxu0 %v2742_v8  ;;  %2751 = vmatprep.subr.bf16.mxu1 %v2750_v17  ;;  %v175_v18 = vadd.f32 %v3221_v15, %v123_v5  ;;  %v177_v25 = vadd.f32 %v3221_v15, %v125_v60  ;;  %v197_v59 = vmax.f32 %v3175_v9, 0.0  ;;  %v185_v14 = vadd.f32 %v3219_v13, %v133_v62 }
  0x90   :  { %2745 = vmatpush1.bf16.msra.mxu0 %v2744_v23  ;;  %2753 = vmatpush1.bf16.msra.mxu1 %v2752_v19  ;;  %v174_v20 = vadd.f32 %v3221_v15, %v122_v39  ;;  %v182_v61 = vadd.f32 %v3219_v13, %v130_v63  ;;  %v194_v26 = vmax.f32 %v3178_v11, 0.0  ;;  %v215_v0 = vmax.f32 %v183_v22, 0.0 }
  0x91   :  { %v207_v17 = vmax.f32 %v175_v18, 0.0  ;;  %v209_v16 = vmax.f32 %v177_v25, 0.0  ;;  %v176_v5 = vadd.f32 %v3221_v15, %v124_v3  ;;  %v217_v30 = vmax.f32 %v185_v14, 0.0 }
  0x92   :  { %v206_v60 = vmax.f32 %v174_v20, 0.0  ;;  %v214_v8 = vmax.f32 %v182_v61, 0.0  ;;  %v184_v9 = vadd.f32 %v3219_v13, %v132_v24  ;;  %v171_v62 = vadd.f32 %v3167_v6, %v119_v2 }
  0x93   :  { %v2746_v23 = vpack.c.bf16 %v215_v0, %v207_v17  ;;  %v208_v19 = vmax.f32 %v176_v5, 0.0  ;;  %v173_v39 = vadd.f32 %v3167_v6, %v121_v21  ;;  %v2754_v12 = vpack.c.bf16 %v217_v30, %v209_v16  ;;  %v3252_v17 = vld [vmem:[%s4671_s3] sm:$0xff] }
  0x94   :  { %v2748_v63 = vpack.c.bf16 %v214_v8, %v206_v60  ;;  %v216_v57 = vmax.f32 %v184_v9, 0.0  ;;  %v118_v11 = vmul.f32 %v3063_v29, %v3169_v7  ;;  %v203_v18 = vmax.f32 %v171_v62, 0.0  ;;  %v3275_v62 = vld [vmem:[%s4671_s3 + $0x8] sm:$0xf] }
  0x95   :  { %2747 = vmatprep.subr.bf16.mxu0 %v2746_v23  ;;  %v205_v3 = vmax.f32 %v173_v39, 0.0  ;;  %v120_v22 = vmul.f32 %v3069_v31, %v3169_v7  ;;  %v127_v24 = vmul.f32 %v3057_v27, %v3200_v1  ;;  %2755 = vmatprep.subr.bf16.mxu1 %v2754_v12  ;;  %v196_v25 = vmax.f32 %v3188_v58, 0.0 }
  0x96   :  { %2749 = vmatpush1.bf16.msra.mxu0 %v2748_v63  ;;  %v2756_v2 = vpack.c.bf16 %v216_v57, %v208_v19  ;;  %v170_v21 = vadd.f32 %v3167_v6, %v118_v11  ;;  %v135_v14 = vmul.f32 %v3057_v27, %v3198_v10  ;;  %v2758_v20 = vpack.c.bf16 %v203_v18, %v195_v4 }
  0x97   :  { %v2766_v61 = vpack.c.bf16 %v205_v3, %v197_v59  ;;  %v172_v0 = vadd.f32 %v3167_v6, %v120_v22  ;;  %v179_v12 = vadd.f32 %v3221_v15, %v127_v24  ;;  %v129_v58 = vmul.f32 %v3060_v28, %v3200_v1 }
  0x98   :  { %2757 = vmatpush1.bf16.msra.mxu1 %v2756_v2  ;;  %v202_v57 = vmax.f32 %v170_v21, 0.0  ;;  %v187_v16 = vadd.f32 %v3219_v13, %v135_v14  ;;  %v137_v27 = vmul.f32 %v3060_v28, %v3198_v10  ;;  %2759 = vmatprep.subr.bf16.mxu0 %v2758_v20  ;;  %v126_v5 = vmul.f32 %v3063_v29, %v3200_v1 }
  0x99   :  { %2767 = vmatprep.subr.bf16.mxu1 %v2766_v61  ;;  %v204_v4 = vmax.f32 %v172_v0, 0.0  ;;  %v211_v59 = vmax.f32 %v179_v12, 0.0  ;;  %v134_v30 = vmul.f32 %v3063_v29, %v3198_v10  ;;  %2710 = vmatmul.mubr.msk.f32.vlgmr.msra.gmra.mrb[0].mxu0 %vm232_vm0, %v3252_v17  ;;  %v181_v9 = vadd.f32 %v3221_v15, %v129_v58 }
  0x9a   :  { %v2760_v60 = vpack.c.bf16 %v202_v57, %v194_v26  ;;  %v219_v8 = vmax.f32 %v187_v16, 0.0  ;;  %v189_v23 = vadd.f32 %v3219_v13, %v137_v27  ;;  %v4718_v19 = vmov 0.0  }
  0x9b   :  { %2712 = vmatmul.mubr.msk.f32.vlgmr.msra.gmra.mrb[0].mxu1 %vm232_vm0, %v3252_v17  ;;  %v2768_v28 = vpack.c.bf16 %v204_v4, %v196_v25  ;;  %309 = vmatprep.mubr.f32.mxu0 %v4718_v19  ;;  %v178_v29 = vadd.f32 %v3221_v15, %v126_v5  ;;  %v186_v26 = vadd.f32 %v3219_v13, %v134_v30  ;;  %v213_v63 = vmax.f32 %v181_v9, 0.0 }
  0x9c   :  { %2761 = vmatpush1.bf16.msra.mxu0 %v2760_v60  ;;  %v2762_v39 = vpack.c.bf16 %v219_v8, %v211_v59  ;;  %v221_v11 = vmax.f32 %v189_v23, 0.0  ;;  %386 = vmatprep.mubr.f32.mxu1 %v4718_v19  ;;  %v128_v18 = vmul.f32 %v3069_v31, %v3200_v1  ;;  %v136_v24 = vmul.f32 %v3069_v31, %v3198_v10 }
  0x9d   :  { %2769 = vmatpush1.bf16.msra.mxu1 %v2768_v28  ;;  %v210_v3 = vmax.f32 %v178_v29, 0.0  ;;  %v218_v22 = vmax.f32 %v186_v26, 0.0  ;;  %v835_v2 = vmul.f32 %v3072_v32, %v3133_v53  ;;  %2711 = vmatmul.mubr.msk.f32.gmra.mrb[2].mxu0 %vm232_vm0, %v3275_v62  ;;  %v843_v14 = vmul.f32 %v3072_v32, %v3169_v7 }
  0x9e   :  { %2763 = vmatprep.subr.bf16.mxu0 %v2762_v39  ;;  %v2770_v21 = vpack.c.bf16 %v221_v11, %v213_v63  ;;  %v180_v25 = vadd.f32 %v3221_v15, %v128_v18  ;;  %v188_v61 = vadd.f32 %v3219_v13, %v136_v24  ;;  %v837_v0 = vmul.f32 %v3075_v33, %v3133_v53 }
  0x9f   :  { %2713 = vmatmul.mubr.msk.f32.gmra.mrb[2].mxu1 %vm232_vm0, %v3275_v62  ;;  %v2764_v20 = vpack.c.bf16 %v218_v22, %v210_v3  ;;  %v867_v31 = vadd.f32 %v835_v2, %v3131_v52  ;;  %v875_v57 = vadd.f32 %v843_v14, %v3167_v6  ;;  %v845_v16 = vmul.f32 %v3075_v33, %v3169_v7 }
  0xa0   :  { %2771 = vmatprep.subr.bf16.mxu1 %v2770_v21  ;;  %v212_v12 = vmax.f32 %v180_v25, 0.0  ;;  %457 = vmatprep.mubr.f32.mxu0 %v4718_v19  ;;  %v834_v58 = vmul.f32 %v3078_v34, %v3133_v53  ;;  %v220_v27 = vmax.f32 %v188_v61, 0.0  ;;  %v869_v59 = vadd.f32 %v837_v0, %v3131_v52 }
  0xa1   :  { %2765 = vmatpush1.bf16.msra.mxu0 %v2764_v20  ;;  %v899_v4 = vmax.f32 %v867_v31, 0.0  ;;  %534 = vmatprep.mubr.f32.mxu1 %v4718_v19  ;;  %v842_v5 = vmul.f32 %v3078_v34, %v3169_v7  ;;  %v907_v30 = vmax.f32 %v875_v57, 0.0  ;;  %v877_v60 = vadd.f32 %v845_v16, %v3167_v6 }
  0xa2   :  { %v866_v8 = vadd.f32 %v834_v58, %v3131_v52  ;;  %v836_v9 = vmul.f32 %v3081_v35, %v3133_v53  ;;  %v2772_v23 = vpack.c.bf16 %v220_v27, %v212_v12  ;;  %v901_v28 = vmax.f32 %v869_v59, 0.0 }
  0xa3   :  { %v874_v29 = vadd.f32 %v842_v5, %v3167_v6  ;;  %v844_v26 = vmul.f32 %v3081_v35, %v3169_v7  ;;  %v2774_v39 = vpack.c.bf16 %v907_v30, %v899_v4  ;;  %v909_v63 = vmax.f32 %v877_v60, 0.0 }
  0xa4   :  { %2714 = vmatmul.mubr.msk.f32.vlgmr.msra.gmra.mrb[4].mxu0 %vm232_vm0, %v3252_v17  ;;  %v898_v11 = vmax.f32 %v866_v8, 0.0  ;;  %v868_v18 = vadd.f32 %v836_v9, %v3131_v52  ;;  %2773 = vmatpush1.bf16.msra.mxu1 %v2772_v23  ;;  %v851_v24 = vmul.f32 %v3072_v32, %v3200_v1  ;;  %v859_v2 = vmul.f32 %v3072_v32, %v3198_v10 }
  0xa5   :  { %v906_v3 = vmax.f32 %v874_v29, 0.0  ;;  %v876_v22 = vadd.f32 %v844_v26, %v3167_v6  ;;  %463 = vmatprep.mubr.f32.mxu0 %v4718_v19  ;;  %2775 = vmatprep.subr.bf16.mxu0 %v2774_v39  ;;  %v2782_v21 = vpack.c.bf16 %v909_v63, %v901_v28  ;;  %v853_v14 = vmul.f32 %v3075_v33, %v3200_v1 }
  0xa6   :  { %v900_v25 = vmax.f32 %v868_v18, 0.0  ;;  %v861_v20 = vmul.f32 %v3075_v33, %v3198_v10  ;;  %v883_v0 = vadd.f32 %v851_v24, %v3221_v15  ;;  %v891_v12 = vadd.f32 %v859_v2, %v3219_v13 }
  0xa7   :  { %v2776_v61 = vpack.c.bf16 %v906_v3, %v898_v11  ;;  %v908_v31 = vmax.f32 %v876_v22, 0.0  ;;  %2783 = vmatprep.subr.bf16.mxu1 %v2782_v21  ;;  %2716 = vmatmul.mubr.msk.f32.vlgmr.msra.gmra.mrb[4].mxu1 %vm232_vm0, %v3252_v17  ;;  %v885_v32 = vadd.f32 %v853_v14, %v3221_v15  ;;  %v850_v16 = vmul.f32 %v3078_v34, %v3200_v1 }
  0xa8   :  { %v893_v57 = vadd.f32 %v861_v20, %v3219_v13  ;;  %v915_v33 = vmax.f32 %v883_v0, 0.0  ;;  %v923_v27 = vmax.f32 %v891_v12, 0.0  ;;  %540 = vmatprep.mubr.f32.mxu1 %v4718_v19  ;;  %v858_v4 = vmul.f32 %v3078_v34, %v3198_v10  ;;  %2715 = vmatmul.mubr.msk.f32.gmra.mrb[6].mxu0 %vm232_vm0, %v3275_v62 }
  0xa9   :  { %2777 = vmatpush1.bf16.msra.mxu0 %v2776_v61  ;;  %v2784_v58 = vpack.c.bf16 %v908_v31, %v900_v25  ;;  %v917_v59 = vmax.f32 %v885_v32, 0.0  ;;  %v882_v30 = vadd.f32 %v850_v16, %v3221_v15  ;;  %v852_v60 = vmul.f32 %v3081_v35, %v3200_v1  ;;  %994 = vmatprep.mubr.f32.mxu0 %v4718_v19 }
  0xaa   :  { %v925_v5 = vmax.f32 %v893_v57, 0.0  ;;  %v2778_v8 = vpack.c.bf16 %v923_v27, %v915_v33  ;;  %v890_v9 = vadd.f32 %v858_v4, %v3219_v13  ;;  %v860_v23 = vmul.f32 %v3081_v35, %v3198_v10 }
  0xab   :  { %2785 = vmatpush1.bf16.msra.mxu1 %v2784_v58  ;;  %v839_v34 = vmul.f32 %v3084_v36, %v3133_v53  ;;  %v914_v29 = vmax.f32 %v882_v30, 0.0  ;;  %v884_v26 = vadd.f32 %v852_v60, %v3221_v15  ;;  %v847_v39 = vmul.f32 %v3084_v36, %v3169_v7 }
  0xac   :  { %v2786_v28 = vpack.c.bf16 %v925_v5, %v917_v59  ;;  %2717 = vmatmul.mubr.msk.f32.gmra.mrb[6].mxu1 %vm232_vm0, %v3275_v62  ;;  %2779 = vmatprep.subr.bf16.mxu0 %v2778_v8  ;;  %v922_v63 = vmax.f32 %v890_v9, 0.0  ;;  %v892_v11 = vadd.f32 %v860_v23, %v3219_v13  ;;  %v841_v18 = vmul.f32 %v3087_v37, %v3133_v53 }
  0xad   :  { %v871_v35 = vadd.f32 %v839_v34, %v3131_v52  ;;  %1071 = vmatprep.mubr.f32.mxu1 %v4718_v19  ;;  %v916_v3 = vmax.f32 %v884_v26, 0.0  ;;  %v879_v22 = vadd.f32 %v847_v39, %v3167_v6  ;;  %v849_v24 = vmul.f32 %v3087_v37, %v3169_v7 }
  0xae   :  { %2787 = vmatprep.subr.bf16.mxu1 %v2786_v28  ;;  %v838_v2 = vmul.f32 %v3090_v38, %v3133_v53  ;;  %v2780_v21 = vpack.c.bf16 %v922_v63, %v914_v29  ;;  %v924_v25 = vmax.f32 %v892_v11, 0.0  ;;  %v873_v20 = vadd.f32 %v841_v18, %v3131_v52 }
  0xaf   :  { %v903_v14 = vmax.f32 %v871_v35, 0.0  ;;  %v911_v61 = vmax.f32 %v879_v22, 0.0  ;;  %v881_v31 = vadd.f32 %v849_v24, %v3167_v6  ;;  %v846_v0 = vmul.f32 %v3090_v38, %v3169_v7 }
  0xb0   :  { %v870_v12 = vadd.f32 %v838_v2, %v3131_v52  ;;  %2781 = vmatpush1.bf16.msra.mxu0 %v2780_v21  ;;  %v2788_v32 = vpack.c.bf16 %v924_v25, %v916_v3  ;;  %v905_v57 = vmax.f32 %v873_v20, 0.0  ;;  %v840_v16 = vmul.f32 %v3096_v40, %v3133_v53 }
  0xb1   :  { %v848_v58 = vmul.f32 %v3096_v40, %v3169_v7  ;;  %v2790_v33 = vpack.c.bf16 %v911_v61, %v903_v14  ;;  %v913_v27 = vmax.f32 %v881_v31, 0.0  ;;  %v878_v4 = vadd.f32 %v846_v0, %v3167_v6 }
  0xb2   :  { %v902_v59 = vmax.f32 %v870_v12, 0.0  ;;  %2789 = vmatpush1.bf16.msra.mxu1 %v2788_v32  ;;  %v872_v5 = vadd.f32 %v840_v16, %v3131_v52  ;;  %v855_v60 = vmul.f32 %v3084_v36, %v3200_v1  ;;  %v863_v8 = vmul.f32 %v3084_v36, %v3198_v10 }
  0xb3   :  { %v880_v30 = vadd.f32 %v848_v58, %v3167_v6  ;;  %2791 = vmatprep.subr.bf16.mxu0 %v2790_v33  ;;  %v2798_v9 = vpack.c.bf16 %v913_v27, %v905_v57  ;;  %2718 = vmatmul.mubr.msk.f32.vlgmr.msra.gmra.mrb[8].mxu0 %vm232_vm0, %v3252_v17  ;;  %v910_v23 = vmax.f32 %v878_v4, 0.0  ;;  %v857_v34 = vmul.f32 %v3087_v37, %v3200_v1 }
  0xb4   :  { %v865_v28 = vmul.f32 %v3087_v37, %v3198_v10  ;;  %v904_v29 = vmax.f32 %v872_v5, 0.0  ;;  %v887_v39 = vadd.f32 %v855_v60, %v3221_v15  ;;  %v895_v63 = vadd.f32 %v863_v8, %v3219_v13  ;;  %1000 = vmatprep.mubr.f32.mxu0 %v4718_v19 }
  0xb5   :  { %v912_v26 = vmax.f32 %v880_v30, 0.0  ;;  %2799 = vmatprep.subr.bf16.mxu1 %v2798_v9  ;;  %2720 = vmatmul.mubr.msk.f32.vlgmr.msra.gmra.mrb[8].mxu1 %vm232_vm0, %v3252_v17  ;;  %v2792_v36 = vpack.c.bf16 %v910_v23, %v902_v59  ;;  %v889_v11 = vadd.f32 %v857_v34, %v3221_v15  ;;  %v854_v22 = vmul.f32 %v3090_v38, %v3200_v1 }
  0xb6   :  { %v897_v35 = vadd.f32 %v865_v28, %v3219_v13  ;;  %v919_v3 = vmax.f32 %v887_v39, 0.0  ;;  %v927_v37 = vmax.f32 %v895_v63, 0.0  ;;  %1077 = vmatprep.mubr.f32.mxu1 %v4718_v19  ;;  %v862_v21 = vmul.f32 %v3090_v38, %v3198_v10 }
  0xb7   :  { %v2800_v18 = vpack.c.bf16 %v912_v26, %v904_v29  ;;  %2793 = vmatpush1.bf16.msra.mxu0 %v2792_v36  ;;  %v921_v24 = vmax.f32 %v889_v11, 0.0  ;;  %v856_v25 = vmul.f32 %v3096_v40, %v3200_v1  ;;  %v886_v20 = vadd.f32 %v854_v22, %v3221_v15 }
  0xb8   :  { %v929_v2 = vmax.f32 %v897_v35, 0.0  ;;  %v2794_v14 = vpack.c.bf16 %v927_v37, %v919_v3  ;;  %2719 = vmatmul.mubr.msk.f32.gmra.mrb[10].mxu0 %vm232_vm0, %v3275_v62  ;;  %v864_v61 = vmul.f32 %v3096_v40, %v3198_v10  ;;  %v894_v0 = vadd.f32 %v862_v21, %v3219_v13 }
  0xb9   :  { %2801 = vmatpush1.bf16.msra.mxu1 %v2800_v18  ;;  %v888_v38 = vadd.f32 %v856_v25, %v3221_v15  ;;  %v1438_v12 = vmul.f32 %v3099_v41, %v3133_v53  ;;  %v918_v32 = vmax.f32 %v886_v20, 0.0  ;;  %v1446_v16 = vmul.f32 %v3099_v41, %v3169_v7  ;;  %1148 = vmatprep.mubr.f32.mxu0 %v4718_v19 }
  0xba   :  { %v2802_v31 = vpack.c.bf16 %v929_v2, %v921_v24  ;;  %2721 = vmatmul.mubr.msk.f32.gmra.mrb[10].mxu1 %vm232_vm0, %v3275_v62  ;;  %2795 = vmatprep.subr.bf16.mxu0 %v2794_v14  ;;  %v896_v57 = vadd.f32 %v864_v61, %v3219_v13  ;;  %v1440_v40 = vmul.f32 %v3102_v42, %v3133_v53  ;;  %v926_v58 = vmax.f32 %v894_v0, 0.0 }
  0xbb   :  { %v920_v33 = vmax.f32 %v888_v38, 0.0  ;;  %v1470_v27 = vadd.f32 %v1438_v12, %v3131_v52  ;;  %v1448_v4 = vmul.f32 %v3102_v42, %v3169_v7  ;;  %1225 = vmatprep.mubr.f32.mxu1 %v4718_v19  ;;  %v1478_v5 = vadd.f32 %v1446_v16, %v3167_v6 }
  0xbc   :  { %2803 = vmatprep.subr.bf16.mxu1 %v2802_v31  ;;  %v928_v59 = vmax.f32 %v896_v57, 0.0  ;;  %v1472_v30 = vadd.f32 %v1440_v40, %v3131_v52  ;;  %v1437_v60 = vmul.f32 %v3105_v43, %v3133_v53  ;;  %v2796_v8 = vpack.c.bf16 %v926_v58, %v918_v32 }
  0xbd   :  { %v1502_v9 = vmax.f32 %v1470_v27, 0.0  ;;  %v1480_v23 = vadd.f32 %v1448_v4, %v3167_v6  ;;  %v1445_v34 = vmul.f32 %v3105_v43, %v3169_v7  ;;  %v1510_v29 = vmax.f32 %v1478_v5, 0.0 }
  0xbe   :  { %v2804_v28 = vpack.c.bf16 %v928_v59, %v920_v33  ;;  %v1504_v26 = vmax.f32 %v1472_v30, 0.0  ;;  %v1469_v39 = vadd.f32 %v1437_v60, %v3131_v52  ;;  %2797 = vmatpush1.bf16.msra.mxu0 %v2796_v8  ;;  %v1439_v11 = vmul.f32 %v3108_v44, %v3133_v53 }
  0xbf   :  { %v1512_v63 = vmax.f32 %v1480_v23, 0.0  ;;  %v1477_v36 = vadd.f32 %v1445_v34, %v3167_v6  ;;  %v1447_v35 = vmul.f32 %v3108_v44, %v3169_v7  ;;  %v2806_v18 = vpack.c.bf16 %v1510_v29, %v1502_v9 }
  0xc0   :  { %2805 = vmatpush1.bf16.msra.mxu1 %v2804_v28  ;;  %v1501_v3 = vmax.f32 %v1469_v39, 0.0  ;;  %v1454_v37 = vmul.f32 %v3099_v41, %v3200_v1  ;;  %v1462_v22 = vmul.f32 %v3099_v41, %v3198_v10  ;;  %v1471_v21 = vadd.f32 %v1439_v11, %v3131_v52 }
  0xc1   :  { %v2814_v24 = vpack.c.bf16 %v1512_v63, %v1504_v26  ;;  %v1509_v2 = vmax.f32 %v1477_v36, 0.0  ;;  %v1479_v25 = vadd.f32 %v1447_v35, %v3167_v6  ;;  %2807 = vmatprep.subr.bf16.mxu0 %v2806_v18  ;;  %2722 = vmatmul.mubr.msk.f32.vlgmr.msra.gmra.mrb[12].mxu0 %vm232_vm0, %v3252_v17  ;;  %v1456_v61 = vmul.f32 %v3102_v42, %v3200_v1 }
  0xc2   :  { %v1486_v14 = vadd.f32 %v1454_v37, %v3221_v15  ;;  %v1494_v20 = vadd.f32 %v1462_v22, %v3219_v13  ;;  %v1503_v31 = vmax.f32 %v1471_v21, 0.0  ;;  %v1464_v38 = vmul.f32 %v3102_v42, %v3198_v10  ;;  %1154 = vmatprep.mubr.f32.mxu0 %v4718_v19 }
  0xc3   :  { %2815 = vmatprep.subr.bf16.mxu1 %v2814_v24  ;;  %2724 = vmatmul.mubr.msk.f32.vlgmr.msra.gmra.mrb[12].mxu1 %vm232_vm0, %v3252_v17  ;;  %v2808_v41 = vpack.c.bf16 %v1509_v2, %v1501_v3  ;;  %v1511_v0 = vmax.f32 %v1479_v25, 0.0  ;;  %v1488_v57 = vadd.f32 %v1456_v61, %v3221_v15  ;;  %v1453_v16 = vmul.f32 %v3105_v43, %v3200_v1 }
  0xc4   :  { %v1518_v12 = vmax.f32 %v1486_v14, 0.0  ;;  %v1526_v32 = vmax.f32 %v1494_v20, 0.0  ;;  %1231 = vmatprep.mubr.f32.mxu1 %v4718_v19  ;;  %v1496_v58 = vadd.f32 %v1464_v38, %v3219_v13  ;;  %v1461_v33 = vmul.f32 %v3105_v43, %v3198_v10 }
  0xc5   :  { %2809 = vmatpush1.bf16.msra.mxu0 %v2808_v41  ;;  %v2816_v40 = vpack.c.bf16 %v1511_v0, %v1503_v31  ;;  %v1455_v42 = vmul.f32 %v3108_v44, %v3200_v1  ;;  %v1520_v4 = vmax.f32 %v1488_v57, 0.0  ;;  %v1485_v59 = vadd.f32 %v1453_v16, %v3221_v15 }
  0xc6   :  { %v2810_v27 = vpack.c.bf16 %v1526_v32, %v1518_v12  ;;  %2723 = vmatmul.mubr.msk.f32.gmra.mrb[14].mxu0 %vm232_vm0, %v3275_v62  ;;  %v1463_v5 = vmul.f32 %v3108_v44, %v3198_v10  ;;  %v1528_v30 = vmax.f32 %v1496_v58, 0.0  ;;  %v1493_v60 = vadd.f32 %v1461_v33, %v3219_v13 }
  0xc7   :  { %2817 = vmatpush1.bf16.msra.mxu1 %v2816_v40  ;;  %v1487_v8 = vadd.f32 %v1455_v42, %v3221_v15  ;;  %v1442_v43 = vmul.f32 %v3111_v45, %v3133_v53  ;;  %1597 = vmatprep.mubr.f32.mxu0 %v4718_v19  ;;  %v1517_v9 = vmax.f32 %v1485_v59, 0.0  ;;  %v1450_v44 = vmul.f32 %v3111_v45, %v3169_v7 }
  0xc8   :  { %2811 = vmatprep.subr.bf16.mxu0 %v2810_v27  ;;  %2725 = vmatmul.mubr.msk.f32.gmra.mrb[14].mxu1 %vm232_vm0, %v3275_v62  ;;  %v1495_v23 = vadd.f32 %v1463_v5, %v3219_v13  ;;  %v1444_v34 = vmul.f32 %v3114_v46, %v3133_v53  ;;  %v2818_v28 = vpack.c.bf16 %v1528_v30, %v1520_v4  ;;  %v1525_v29 = vmax.f32 %v1493_v60, 0.0 }
  0xc9   :  { %v1519_v26 = vmax.f32 %v1487_v8, 0.0  ;;  %v1474_v39 = vadd.f32 %v1442_v43, %v3131_v52  ;;  %1674 = vmatprep.mubr.f32.mxu1 %v4718_v19  ;;  %v1482_v36 = vadd.f32 %v1450_v44, %v3167_v6  ;;  %v1452_v11 = vmul.f32 %v3114_v46, %v3169_v7 }
  0xca   :  { %v1527_v63 = vmax.f32 %v1495_v23, 0.0  ;;  %v1476_v35 = vadd.f32 %v1444_v34, %v3131_v52  ;;  %2819 = vmatprep.subr.bf16.mxu1 %v2818_v28  ;;  %v2812_v18 = vpack.c.bf16 %v1525_v29, %v1517_v9  ;;  %v1441_v37 = vmul.f32 %v3117_v47, %v3133_v53 }
  0xcb   :  { %v1506_v3 = vmax.f32 %v1474_v39, 0.0  ;;  %v1449_v22 = vmul.f32 %v3117_v47, %v3169_v7  ;;  %v1514_v2 = vmax.f32 %v1482_v36, 0.0  ;;  %v1484_v21 = vadd.f32 %v1452_v11, %v3167_v6 }
  0xcc   :  { %v2820_v24 = vpack.c.bf16 %v1527_v63, %v1519_v26  ;;  %v1508_v25 = vmax.f32 %v1476_v35, 0.0  ;;  %2813 = vmatpush1.bf16.msra.mxu0 %v2812_v18  ;;  %v1473_v14 = vadd.f32 %v1441_v37, %v3131_v52  ;;  %v1443_v61 = vmul.f32 %v3120_v48, %v3133_v53 }
  0xcd   :  { %v1481_v20 = vadd.f32 %v1449_v22, %v3167_v6  ;;  %v1451_v41 = vmul.f32 %v3120_v48, %v3169_v7  ;;  %v2822_v31 = vpack.c.bf16 %v1514_v2, %v1506_v3  ;;  %v1516_v0 = vmax.f32 %v1484_v21, 0.0 }
  0xce   :  { %2821 = vmatpush1.bf16.msra.mxu1 %v2820_v24  ;;  %v1458_v38 = vmul.f32 %v3111_v45, %v3200_v1  ;;  %v1466_v12 = vmul.f32 %v3111_v45, %v3198_v10  ;;  %v1505_v32 = vmax.f32 %v1473_v14, 0.0  ;;  %v1475_v16 = vadd.f32 %v1443_v61, %v3131_v52 }
  0xcf   :  { %v1513_v57 = vmax.f32 %v1481_v20, 0.0  ;;  %v1483_v40 = vadd.f32 %v1451_v41, %v3167_v6  ;;  %2823 = vmatprep.subr.bf16.mxu0 %v2822_v31  ;;  %v2830_v58 = vpack.c.bf16 %v1516_v0, %v1508_v25  ;;  %2726 = vmatmul.mubr.msk.f32.vlgmr.msra.gmra.mrb[16].mxu0 %vm232_vm0, %v3252_v17  ;;  %v1460_v59 = vmul.f32 %v3114_v46, %v3200_v1 }
  0xd0   :  { %v1490_v33 = vadd.f32 %v1458_v38, %v3221_v15  ;;  %v1498_v42 = vadd.f32 %v1466_v12, %v3219_v13  ;;  %v1507_v45 = vmax.f32 %v1475_v16, 0.0  ;;  %1603 = vmatprep.mubr.f32.mxu0 %v4718_v19  ;;  %v1468_v60 = vmul.f32 %v3114_v46, %v3198_v10 }
  0xd1   :  { %2728 = vmatmul.mubr.msk.f32.vlgmr.msra.gmra.mrb[16].mxu1 %vm232_vm0, %v3252_v17  ;;  %v2824_v27 = vpack.c.bf16 %v1513_v57, %v1505_v32  ;;  %v1515_v4 = vmax.f32 %v1483_v40, 0.0  ;;  %2831 = vmatprep.subr.bf16.mxu1 %v2830_v58  ;;  %v1457_v8 = vmul.f32 %v3117_v47, %v3200_v1  ;;  %v1492_v9 = vadd.f32 %v1460_v59, %v3221_v15 }
  0xd2   :  { %v1522_v5 = vmax.f32 %v1490_v33, 0.0  ;;  %v1530_v30 = vmax.f32 %v1498_v42, 0.0  ;;  %1680 = vmatprep.mubr.f32.mxu1 %v4718_v19  ;;  %v1465_v23 = vmul.f32 %v3117_v47, %v3198_v10  ;;  %v1459_v44 = vmul.f32 %v3120_v48, %v3200_v1 }
  0xd3   :  { %2825 = vmatpush1.bf16.msra.mxu0 %v2824_v27  ;;  %v2832_v43 = vpack.c.bf16 %v1515_v4, %v1507_v45  ;;  %v1500_v28 = vadd.f32 %v1468_v60, %v3219_v13  ;;  %v1489_v46 = vadd.f32 %v1457_v8, %v3221_v15  ;;  %v1467_v29 = vmul.f32 %v3120_v48, %v3198_v10 }
  0xd4   :  { %v2826_v34 = vpack.c.bf16 %v1530_v30, %v1522_v5  ;;  %2727 = vmatmul.mubr.msk.f32.gmra.mrb[18].mxu0 %vm232_vm0, %v3275_v62  ;;  %v1524_v26 = vmax.f32 %v1492_v9, 0.0  ;;  %v1497_v39 = vadd.f32 %v1465_v23, %v3219_v13  ;;  %v1491_v47 = vadd.f32 %v1459_v44, %v3221_v15 }
  0xd5   :  { %2833 = vmatpush1.bf16.msra.mxu1 %v2832_v43  ;;  %v2041_v63 = vmul.f32 %v3123_v49, %v3133_v53  ;;  %1751 = vmatprep.mubr.f32.mxu0 %v4718_v19  ;;  %v1532_v36 = vmax.f32 %v1500_v28, 0.0  ;;  %v1521_v11 = vmax.f32 %v1489_v46, 0.0  ;;  %v1499_v35 = vadd.f32 %v1467_v29, %v3219_v13 }
  0xd6   :  { %2827 = vmatprep.subr.bf16.mxu0 %v2826_v34  ;;  %2729 = vmatmul.mubr.msk.f32.gmra.mrb[18].mxu1 %vm232_vm0, %v3275_v62  ;;  %v2049_v48 = vmul.f32 %v3123_v49, %v3169_v7  ;;  %v1529_v18 = vmax.f32 %v1497_v39, 0.0  ;;  %v1523_v3 = vmax.f32 %v1491_v47, 0.0  ;;  %v2043_v22 = vmul.f32 %v3126_v50, %v3133_v53 }
  0xd7   :  { %v2073_v37 = vadd.f32 %v2041_v63, %v3131_v52  ;;  %1828 = vmatprep.mubr.f32.mxu1 %v4718_v19  ;;  %v2834_v24 = vpack.c.bf16 %v1532_v36, %v1524_v26  ;;  %v1531_v2 = vmax.f32 %v1499_v35, 0.0  ;;  %v2051_v25 = vmul.f32 %v3126_v50, %v3169_v7 }
  0xd8   :  { %v2081_v21 = vadd.f32 %v2049_v48, %v3167_v6  ;;  %v2828_v14 = vpack.c.bf16 %v1529_v18, %v1521_v11  ;;  %v2075_v61 = vadd.f32 %v2043_v22, %v3131_v52  ;;  %v2040_v41 = vmul.f32 %v3129_v51, %v3133_v53 }
  0xd9   :  { %v2105_v20 = vmax.f32 %v2073_v37, 0.0  ;;  %2835 = vmatprep.subr.bf16.mxu1 %v2834_v24  ;;  %v2836_v31 = vpack.c.bf16 %v1531_v2, %v1523_v3  ;;  %v2083_v38 = vadd.f32 %v2051_v25, %v3167_v6  ;;  %v2048_v12 = vmul.f32 %v3129_v51, %v3169_v7 }
  0xda   :  { %v2113_v0 = vmax.f32 %v2081_v21, 0.0  ;;  %2829 = vmatpush1.bf16.msra.mxu0 %v2828_v14  ;;  %v2107_v32 = vmax.f32 %v2075_v61, 0.0  ;;  %v2072_v57 = vadd.f32 %v2040_v41, %v3131_v52  ;;  %v2042_v16 = vmul.f32 %v3136_v54, %v3133_v53 }
  0xdb   :  { %v2050_v40 = vmul.f32 %v3136_v54, %v3169_v7  ;;  %2837 = vmatpush1.bf16.msra.mxu1 %v2836_v31  ;;  %v2115_v33 = vmax.f32 %v2083_v38, 0.0  ;;  %v2080_v42 = vadd.f32 %v2048_v12, %v3167_v6  ;;  %v2057_v27 = vmul.f32 %v3123_v49, %v3200_v1 }
  0xdc   :  { %v2838_v58 = vpack.c.bf16 %v2113_v0, %v2105_v20  ;;  %v2104_v45 = vmax.f32 %v2072_v57, 0.0  ;;  %v2074_v4 = vadd.f32 %v2042_v16, %v3131_v52  ;;  %v2065_v5 = vmul.f32 %v3123_v49, %v3198_v10 }
  0xdd   :  { %v2082_v59 = vadd.f32 %v2050_v40, %v3167_v6  ;;  %v2846_v30 = vpack.c.bf16 %v2115_v33, %v2107_v32  ;;  %2730 = vmatmul.mubr.msk.f32.vlgmr.msra.gmra.mrb[20].mxu0 %vm232_vm0, %v3252_v17  ;;  %v2112_v60 = vmax.f32 %v2080_v42, 0.0  ;;  %v2089_v8 = vadd.f32 %v2057_v27, %v3221_v15  ;;  %v4719_v32 = vld [vmem:[#allocation10_spill] sm:$0xff] }
  0xde   :  { %2839 = vmatprep.subr.bf16.mxu0 %v2838_v58  ;;  %v2059_v43 = vmul.f32 %v3126_v50, %v3200_v1  ;;  %2732 = vmatmul.mubr.msk.f32.vlgmr.msra.gmra.mrb[20].mxu1 %vm232_vm0, %v3252_v17  ;;  %v2106_v9 = vmax.f32 %v2074_v4, 0.0  ;;  %v2097_v44 = vadd.f32 %v2065_v5, %v3219_v13  ;;  %v2067_v49 = vmul.f32 %v3126_v50, %v3198_v10 }
  0xdf   :  { %v2114_v23 = vmax.f32 %v2082_v59, 0.0  ;;  %1757 = vmatprep.mubr.f32.mxu0 %v4718_v19  ;;  %2847 = vmatprep.subr.bf16.mxu1 %v2846_v30  ;;  %v2840_v34 = vpack.c.bf16 %v2112_v60, %v2104_v45  ;;  %v2121_v28 = vmax.f32 %v2089_v8, 0.0  ;;  %v2056_v29 = vmul.f32 %v3129_v51, %v3200_v1  ;;  %v4720_v45 = vld [vmem:[#allocation11_spill] sm:$0xff] }
  0xe0   :  { %v2091_v46 = vadd.f32 %v2059_v43, %v3221_v15  ;;  %1834 = vmatprep.mubr.f32.mxu1 %v4718_v19  ;;  %v2129_v39 = vmax.f32 %v2097_v44, 0.0  ;;  %v2099_v47 = vadd.f32 %v2067_v49, %v3219_v13  ;;  %v2064_v63 = vmul.f32 %v3129_v51, %v3198_v10 }
  0xe1   :  { %v2848_v26 = vpack.c.bf16 %v2114_v23, %v2106_v9  ;;  %2841 = vmatpush1.bf16.msra.mxu0 %v2840_v34  ;;  %v2088_v36 = vadd.f32 %v2056_v29, %v3221_v15  ;;  %v2058_v11 = vmul.f32 %v3136_v54, %v3200_v1  ;;  %v2066_v35 = vmul.f32 %v3136_v54, %v3198_v10 }
  0xe2   :  { %v2123_v50 = vmax.f32 %v2091_v46, 0.0  ;;  %v2842_v48 = vpack.c.bf16 %v2129_v39, %v2121_v28  ;;  %v2131_v18 = vmax.f32 %v2099_v47, 0.0  ;;  %2731 = vmatmul.mubr.msk.f32.gmra.mrb[22].mxu0 %vm232_vm0, %v3275_v62  ;;  %v2096_v3 = vadd.f32 %v2064_v63, %v3219_v13  ;;  %2733 = vmatmul.mubr.msk.f32.gmra.mrb[22].mxu1 %vm232_vm0, %v3275_v62 }
  0xe3   :  { %2849 = vmatpush1.bf16.msra.mxu1 %v2848_v26  ;;  %v2045_v51 = vmul.f32 %v3139_v55, %v3133_v53  ;;  %v2120_v37 = vmax.f32 %v2088_v36, 0.0  ;;  %v2090_v22 = vadd.f32 %v2058_v11, %v3221_v15  ;;  %v2098_v24 = vadd.f32 %v2066_v35, %v3219_v13  ;;  %2200 = vmatprep.mubr.f32.mxu0 %v4718_v19 }
  0xe4   :  { %v2053_v54 = vmul.f32 %v3139_v55, %v3169_v7  ;;  %2843 = vmatprep.subr.bf16.mxu0 %v2842_v48  ;;  %v2850_v2 = vpack.c.bf16 %v2131_v18, %v2123_v50  ;;  %v2128_v21 = vmax.f32 %v2096_v3, 0.0  ;;  %v2047_v14 = vmul.f32 %v3142_v56, %v3133_v53  ;;  %2277 = vmatprep.mubr.f32.mxu1 %v4718_v19 }
  0xe5   :  { %v2077_v25 = vadd.f32 %v2045_v51, %v3131_v52  ;;  %v2122_v20 = vmax.f32 %v2090_v22, 0.0  ;;  %v2130_v61 = vmax.f32 %v2098_v24, 0.0  ;;  %v2055_v31 = vmul.f32 %v3142_v56, %v3169_v7 }
  0xe6   :  { %v2085_v41 = vadd.f32 %v2053_v54, %v3167_v6  ;;  %2851 = vmatprep.subr.bf16.mxu1 %v2850_v2  ;;  %v2844_v0 = vpack.c.bf16 %v2128_v21, %v2120_v37  ;;  %v2079_v12 = vadd.f32 %v2047_v14, %v3131_v52  ;;  %v2044_v57 = vmul.f32 %v4719_v32, %v3133_v53 }
  0xe7   :  { %v2109_v38 = vmax.f32 %v2077_v25, 0.0  ;;  %v2852_v16 = vpack.c.bf16 %v2130_v61, %v2122_v20  ;;  %v2087_v58 = vadd.f32 %v2055_v31, %v3167_v6  ;;  %v2052_v33 = vmul.f32 %v4719_v32, %v3169_v7 }
  0xe8   :  { %v2117_v40 = vmax.f32 %v2085_v41, 0.0  ;;  %2845 = vmatpush1.bf16.msra.mxu0 %v2844_v0  ;;  %v2111_v42 = vmax.f32 %v2079_v12, 0.0  ;;  %v2076_v27 = vadd.f32 %v2044_v57, %v3131_v52  ;;  %v2046_v4 = vmul.f32 %v4720_v45, %v3133_v53 }
  0xe9   :  { %v2054_v59 = vmul.f32 %v4720_v45, %v3169_v7  ;;  %2853 = vmatpush1.bf16.msra.mxu1 %v2852_v16  ;;  %v2119_v30 = vmax.f32 %v2087_v58, 0.0  ;;  %v2084_v60 = vadd.f32 %v2052_v33, %v3167_v6  ;;  %v2061_v8 = vmul.f32 %v3139_v55, %v3200_v1 }
  0xea   :  { %v2854_v5 = vpack.c.bf16 %v2117_v40, %v2109_v38  ;;  %v2108_v43 = vmax.f32 %v2076_v27, 0.0  ;;  %v2078_v9 = vadd.f32 %v2046_v4, %v3131_v52  ;;  %v2069_v44 = vmul.f32 %v3139_v55, %v3198_v10 }
  0xeb   :  { %v2086_v23 = vadd.f32 %v2054_v59, %v3167_v6  ;;  %v2862_v53 = vpack.c.bf16 %v2119_v30, %v2111_v42  ;;  %2734 = vmatmul.mubr.msk.f32.vlgmr.msra.gmra.mrb[24].mxu0 %vm232_vm0, %v3252_v17  ;;  %v2116_v7 = vmax.f32 %v2084_v60, 0.0  ;;  %v2093_v49 = vadd.f32 %v2061_v8, %v3221_v15 }
  0xec   :  { %2855 = vmatprep.subr.bf16.mxu0 %v2854_v5  ;;  %v2063_v34 = vmul.f32 %v3142_v56, %v3200_v1  ;;  %2736 = vmatmul.mubr.msk.f32.vlgmr.msra.gmra.mrb[24].mxu1 %vm232_vm0, %v3252_v17  ;;  %v2110_v52 = vmax.f32 %v2078_v9, 0.0  ;;  %v2101_v6 = vadd.f32 %v2069_v44, %v3219_v13  ;;  %v2071_v55 = vmul.f32 %v3142_v56, %v3198_v10 }
  0xed   :  { %v2118_v28 = vmax.f32 %v2086_v23, 0.0  ;;  %2206 = vmatprep.mubr.f32.mxu0 %v4718_v19  ;;  %2863 = vmatprep.subr.bf16.mxu1 %v2862_v53  ;;  %v2856_v46 = vpack.c.bf16 %v2116_v7, %v2108_v43  ;;  %v2125_v29 = vmax.f32 %v2093_v49, 0.0  ;;  %v2060_v39 = vmul.f32 %v4719_v32, %v3200_v1 }
  0xee   :  { %v2095_v26 = vadd.f32 %v2063_v34, %v3221_v15  ;;  %2283 = vmatprep.mubr.f32.mxu1 %v4718_v19  ;;  %v2133_v63 = vmax.f32 %v2101_v6, 0.0  ;;  %v2103_v50 = vadd.f32 %v2071_v55, %v3219_v13  ;;  %v2068_v36 = vmul.f32 %v4719_v32, %v3198_v10 }
  0xef   :  { %v2864_v47 = vpack.c.bf16 %v2118_v28, %v2110_v52  ;;  %2857 = vmatpush1.bf16.msra.mxu0 %v2856_v46  ;;  %v2092_v11 = vadd.f32 %v2060_v39, %v3221_v15  ;;  %v2062_v35 = vmul.f32 %v4720_v45, %v3200_v1  ;;  %v2070_v48 = vmul.f32 %v4720_v45, %v3198_v10 }
  0xf0   :  { %v2127_v56 = vmax.f32 %v2095_v26, 0.0  ;;  %v2858_v18 = vpack.c.bf16 %v2133_v63, %v2125_v29  ;;  %v2135_v3 = vmax.f32 %v2103_v50, 0.0  ;;  %2735 = vmatmul.mubr.msk.f32.gmra.mrb[26].mxu0 %vm232_vm0, %v3275_v62  ;;  %v2100_v51 = vadd.f32 %v2068_v36, %v3219_v13  ;;  %2737 = vmatmul.mubr.msk.f32.gmra.mrb[26].mxu1 %vm232_vm0, %v3275_v62 }
  0xf1   :  { %2865 = vmatpush1.bf16.msra.mxu1 %v2864_v47  ;;  %v2124_v37 = vmax.f32 %v2092_v11, 0.0  ;;  %v2094_v22 = vadd.f32 %v2062_v35, %v3221_v15  ;;  %v2102_v24 = vadd.f32 %v2070_v48, %v3219_v13  ;;  %2354 = vmatprep.mubr.f32.mxu0 %v4718_v19  ;;  %v3662_v13 = vpop.permute.xlu0 %224 }
  0xf2   :  { %2859 = vmatprep.subr.bf16.mxu0 %v2858_v18  ;;  %v2866_v10 = vpack.c.bf16 %v2135_v3, %v2127_v56  ;;  %v2132_v1 = vmax.f32 %v2100_v51, 0.0  ;;  %2431 = vmatprep.mubr.f32.mxu1 %v4718_v19 }
  0xf3   :  { %v2126_v54 = vmax.f32 %v2094_v22, 0.0  ;;  %v2134_v2 = vmax.f32 %v2102_v24, 0.0 }
  0xf4   :  { %2867 = vmatprep.subr.bf16.mxu1 %v2866_v10  ;;  %v2860_v21 = vpack.c.bf16 %v2132_v1, %v2124_v37 }
  0xf5   :  { %v2868_v25 = vpack.c.bf16 %v2134_v2, %v2126_v54 }
  0xf6   :  { %2861 = vmatpush1.bf16.msra.mxu0 %v2860_v21 }
  0xf7   :  { %2869 = vmatpush1.bf16.msra.mxu1 %v2868_v25 }
  0xf9   :  { %2738 = vmatmul.mubr.msk.f32.vlgmr.msra.gmra.mrb[28].mxu0 %vm232_vm0, %v3252_v17 }
  0xfa   :  { %2740 = vmatmul.mubr.msk.f32.vlgmr.msra.gmra.mrb[28].mxu1 %vm232_vm0, %v3252_v17  ;;  %2360 = vmatprep.mubr.f32.mxu0 %v4718_v19 }
  0xfb   :  { %2437 = vmatprep.mubr.f32.mxu1 %v4718_v19 }
  0xfd   :  { %2739 = vmatmul.mubr.msk.f32.gmra.mrb[30].mxu0 %vm232_vm0, %v3275_v62 }
  0xfe   :  { %2741 = vmatmul.mubr.msk.f32.gmra.mrb[30].mxu1 %vm232_vm0, %v3275_v62 }
 0x16c   :  { %v305_v15 = vpop.f32.mrb[0].mxu0 }
 0x16d   :  { %v3665_v14 = vadd.f32 %v305_v15, %v3662_v13  ;;  %v307_v61 = vpop.f32.mrb[1].mxu0 }
 0x16e   :  { %v382_v20 = vpop.f32.mrb[0].mxu1  ;;  %v3671_v41 = vadd.f32 %v307_v61, %v3662_v13 }
 0x16f   :  { %v3668_v17 = vadd.f32 %v382_v20, %v3662_v13  ;;  %v384_v19 = vpop.f32.mrb[1].mxu1  ;;  %v586_v4 = vsel %vm565_vm1, %v3665_v14, -inf }
 0x170   :  { %v3674_v31 = vadd.f32 %v384_v19, %v3662_v13  ;;  %v2634_v62 = vcombine.low %v3665_v14, %v3671_v41  ;;  %v3678_v0 = vpop.f32.mrb[2].mxu0  ;;  %v587_v59 = vsel %vm565_vm1, %v3671_v41, -inf }
 0x171   :  { %v3684_v32 = vpop.f32.mrb[3].mxu0  ;;  %v588_v53 = vsel %vm565_vm1, %v3668_v17, -inf }
 0x172   :  { %v2635_v38 = vcombine.low %v3668_v17, %v3674_v31  ;;  %v3682_v12 = vpop.f32.mrb[2].mxu1  ;;  %2666 = vst [vmem:[%s4672_s6] sm:$0xff] %v2634_v62  ;;  %v589_v52 = vsel %vm565_vm1, %v3674_v31, -inf }
 0x173   :  { %v3689_v57 = vpop.f32.mrb[3].mxu1 }
 0x174   :  { %4721 = vst [vmem:[#allocation10_spill] sm:$0xff] %v3689_v57  ;;  %2667 = vst [vmem:[%s4672_s6 + $0x8] sm:$0xff] %v2635_v38 }
 0x177   :  { %v459_v16 = vpop.f32.mrb[4].mxu0 }
 0x178   :  { %v3695_v40 = vadd.f32 %v459_v16, %v3662_v13  ;;  %v461_v58 = vpop.f32.mrb[5].mxu0 }
 0x179   :  { %v3698_v33 = vadd.f32 %v461_v58, %v3662_v13 }
 0x17a   :  { %v590_v42 = vsel %vm565_vm1, %v3695_v40, -inf  ;;  %v536_v27 = vpop.f32.mrb[4].mxu1 }
 0x17b   :  { %v2636_v45 = vcombine.low %v3695_v40, %v3698_v33  ;;  %v592_v5 = vsel %vm565_vm1, %v3698_v33, -inf  ;;  %v3711_v30 = vadd.f32 %v536_v27, %v3662_v13  ;;  %v538_v60 = vpop.f32.mrb[5].mxu1  ;;  %v591_v8 = vmax.f32 %v586_v4, %v590_v42  ;;  %v3719_v23 = vpop.f32.mrb[6].mxu0 }
 0x17c   :  { %v593_v43 = vmax.f32 %v587_v59, %v592_v5  ;;  %v3717_v9 = vadd.f32 %v538_v60, %v3662_v13  ;;  %4722 = vst [vmem:[#allocation11_spill] sm:$0xff] %v3719_v23  ;;  %v3721_v44 = vpop.f32.mrb[7].mxu0 }
 0x17d   :  { %2668 = vst [vmem:[%s4672_s6 + $0x10] sm:$0xff] %v2636_v45  ;;  %4723 = vst [vmem:[#allocation12_spill] sm:$0xff] %v3721_v44  ;;  %v594_v7 = vsel %vm565_vm1, %v3711_v30, -inf }
 0x17e   :  { %v2637_v49 = vcombine.low %v3711_v30, %v3717_v9  ;;  %v595_v28 = vmax.f32 %v588_v53, %v594_v7  ;;  %v596_v6 = vsel %vm565_vm1, %v3717_v9, -inf  ;;  %v598_v29 = vmax.f32 %v591_v8, %v593_v43 }
 0x17f   :  { %v3729_v34 = vpop.f32.mrb[6].mxu1  ;;  %v597_v46 = vmax.f32 %v589_v52, %v596_v6 }
 0x180   :  { %4724 = vst [vmem:[#allocation13_spill] sm:$0xff] %v3729_v34  ;;  %v3735_v55 = vpop.f32.mrb[7].mxu1  ;;  %2669 = vst [vmem:[%s4672_s6 + $0x18] sm:$0xff] %v2637_v49 }
 0x181   :  { %4725 = vst [vmem:[#allocation14_spill] sm:$0xff] %v3735_v55  ;;  %v599_v26 = vmax.f32 %v595_v28, %v597_v46 }
 0x183   :  { %v600_v39 = vmax.f32 %v598_v29, %v599_v26 }
 0x185   :  { %601 = vmax.xlane.f32.xlu1 %v600_v39 }
 0x186   :  { %v996_v47 = vpop.f32.mrb[8].mxu0 }
 0x187   :  { %v3741_v63 = vadd.f32 %v996_v47, %v3662_v13  ;;  %v998_v50 = vpop.f32.mrb[9].mxu0 }
 0x188   :  { %v1073_v36 = vpop.f32.mrb[8].mxu1  ;;  %v3744_v56 = vadd.f32 %v998_v50, %v3662_v13 }
 0x189   :  { %v3747_v11 = vadd.f32 %v1073_v36, %v3662_v13  ;;  %v1075_v35 = vpop.f32.mrb[9].mxu1  ;;  %v1274_v20 = vsel %vm565_vm1, %v3741_v63, -inf }
 0x18a   :  { %v2638_v48 = vcombine.low %v3741_v63, %v3744_v56  ;;  %v3752_v18 = vadd.f32 %v1075_v35, %v3662_v13  ;;  %v1275_v61 = vsel %vm565_vm1, %v3744_v56, -inf }
 0x18b   :  { %v3754_v3 = vpop.f32.mrb[10].mxu0  ;;  %v1276_v62 = vsel %vm565_vm1, %v3747_v11, -inf }
 0x18c   :  { %4726 = vst [vmem:[#allocation15_spill] sm:$0xff] %v3754_v3  ;;  %2670 = vst [vmem:[%s4672_s6 + $0x20] sm:$0xff] %v2638_v48  ;;  %v2639_v51 = vcombine.low %v3747_v11, %v3752_v18  ;;  %v3763_v22 = vpop.f32.mrb[11].mxu0  ;;  %v1277_v38 = vsel %vm565_vm1, %v3752_v18, -inf }
 0x18d   :  { %v3761_v37 = vpop.f32.mrb[10].mxu1  ;;  %4728 = vst [vmem:[#allocation17_spill] sm:$0xff] %v3763_v22 }
 0x18e   :  { %4727 = vst [vmem:[#allocation16_spill] sm:$0xff] %v3761_v37  ;;  %v3765_v24 = vpop.f32.mrb[11].mxu1  ;;  %2671 = vst [vmem:[%s4672_s6 + $0x28] sm:$0xff] %v2639_v51 }
 0x18f   :  { %4729 = vst [vmem:[#allocation18_spill] sm:$0xff] %v3765_v24 }
 0x194   :  { %v1150_v10 = vpop.f32.mrb[12].mxu0 }
 0x195   :  { %v3771_v1 = vadd.f32 %v1150_v10, %v3662_v13  ;;  %v1152_v2 = vpop.f32.mrb[13].mxu0 }
 0x196   :  { %v1227_v54 = vpop.f32.mrb[12].mxu1  ;;  %v3777_v25 = vadd.f32 %v1152_v2, %v3662_v13 }
 0x197   :  { %v3774_v21 = vadd.f32 %v1227_v54, %v3662_v13  ;;  %v1229_v15 = vpop.f32.mrb[13].mxu1  ;;  %v1278_v16 = vsel %vm565_vm1, %v3771_v1, -inf }
 0x198   :  { %v3784_v19 = vadd.f32 %v1229_v15, %v3662_v13  ;;  %v2640_v58 = vcombine.low %v3771_v1, %v3777_v25  ;;  %v1279_v27 = vmax.f32 %v1274_v20, %v1278_v16  ;;  %v1280_v45 = vsel %vm565_vm1, %v3777_v25, -inf }
 0x199   :  { %v3794_v42 = vpop.f32.mrb[14].mxu0  ;;  %v1282_v4 = vsel %vm565_vm1, %v3774_v21, -inf  ;;  %v1281_v60 = vmax.f32 %v1275_v61, %v1280_v45 }
 0x19a   :  { %4730 = vst [vmem:[#allocation19_spill] sm:$0xff] %v3794_v42  ;;  %v2641_v59 = vcombine.low %v3774_v21, %v3784_v19  ;;  %v3802_v5 = vpop.f32.mrb[15].mxu0  ;;  %v1283_v8 = vmax.f32 %v1276_v62, %v1282_v4  ;;  %v1284_v43 = vsel %vm565_vm1, %v3784_v19, -inf  ;;  %2672 = vst [vmem:[%s4672_s6 + $0x30] sm:$0xff] %v2640_v58 }
 0x19b   :  { %4731 = vst [vmem:[#allocation20_spill] sm:$0xff] %v3802_v5  ;;  %v3809_v53 = vpop.f32.mrb[14].mxu1  ;;  %v1285_v7 = vmax.f32 %v1277_v38, %v1284_v43  ;;  %v1286_v52 = vmax.f32 %v1279_v27, %v1281_v60 }
 0x19c   :  { %4732 = vst [vmem:[#allocation21_spill] sm:$0xff] %v3809_v53  ;;  %2673 = vst [vmem:[%s4672_s6 + $0x38] sm:$0xff] %v2641_v59  ;;  %v3814_v49 = vpop.f32.mrb[15].mxu1  ;;  %v1238_v53 = vsel %vm547_vm2, %v3741_v63, 0.0 }
 0x19d   :  { %4733 = vst [vmem:[#allocation22_spill] sm:$0xff] %v3814_v49  ;;  %v1287_v28 = vmax.f32 %v1283_v8, %v1285_v7 }
 0x19f   :  { %v1288_v6 = vmax.f32 %v1286_v52, %v1287_v28 }
 0x1a1   :  { %1289 = vmax.xlane.f32.xlu0 %v1288_v6 }
 0x1a2   :  { %v1599_v46 = vpop.f32.mrb[16].mxu0 }
 0x1a3   :  { %v3817_v29 = vadd.f32 %v1599_v46, %v3662_v13  ;;  %v1601_v39 = vpop.f32.mrb[17].mxu0 }
 0x1a4   :  { %v1676_v26 = vpop.f32.mrb[16].mxu1  ;;  %v3823_v50 = vadd.f32 %v1601_v39, %v3662_v13 }
 0x1a5   :  { %v3820_v47 = vadd.f32 %v1676_v26, %v3662_v13  ;;  %v1678_v36 = vpop.f32.mrb[17].mxu1  ;;  %v1877_v45 = vsel %vm565_vm1, %v3817_v29, -inf }
 0x1a6   :  { %v3826_v35 = vadd.f32 %v1678_v36, %v3662_v13  ;;  %v2642_v48 = vcombine.low %v3817_v29, %v3823_v50  ;;  %v1878_v4 = vsel %vm565_vm1, %v3823_v50, -inf }
 0x1a7   :  { %v3830_v51 = vpop.f32.mrb[18].mxu0  ;;  %v1879_v60 = vsel %vm565_vm1, %v3820_v47, -inf }
 0x1a8   :  { %4734 = vst [vmem:[#allocation23_spill] sm:$0xff] %v3830_v51  ;;  %v2643_v10 = vcombine.low %v3820_v47, %v3826_v35  ;;  %v3834_v54 = vpop.f32.mrb[19].mxu0  ;;  %2674 = vst [vmem:[%s4672_s6 + $0x40] sm:$0xff] %v2642_v48  ;;  %v1880_v8 = vsel %vm565_vm1, %v3826_v35, -inf }
 0x1a9   :  { %4735 = vst [vmem:[#allocation24_spill] sm:$0xff] %v3834_v54  ;;  %v3839_v2 = vpop.f32.mrb[18].mxu1 }
 0x1aa   :  { %4736 = vst [vmem:[#allocation25_spill] sm:$0xff] %v3839_v2  ;;  %2675 = vst [vmem:[%s4672_s6 + $0x48] sm:$0xff] %v2643_v10  ;;  %v3844_v15 = vpop.f32.mrb[19].mxu1 }
 0x1ab   :  { %4737 = vst [vmem:[#allocation26_spill] sm:$0xff] %v3844_v15 }
 0x1b0   :  { %v1753_v20 = vpop.f32.mrb[20].mxu0 }
 0x1b1   :  { %v3847_v61 = vadd.f32 %v1753_v20, %v3662_v13  ;;  %v1830_v62 = vpop.f32.mrb[20].mxu1  ;;  %v1755_v38 = vpop.f32.mrb[21].mxu0 }
 0x1b2   :  { %v3850_v16 = vadd.f32 %v1830_v62, %v3662_v13  ;;  %v3853_v58 = vadd.f32 %v1755_v38, %v3662_v13  ;;  %v1832_v27 = vpop.f32.mrb[21].mxu1 }
 0x1b3   :  { %v3860_v59 = vadd.f32 %v1832_v27, %v3662_v13  ;;  %v1881_v43 = vsel %vm565_vm1, %v3847_v61, -inf }
 0x1b4   :  { %v2644_v7 = vcombine.low %v3847_v61, %v3853_v58  ;;  %v1882_v52 = vmax.f32 %v1877_v45, %v1881_v43  ;;  %v1883_v28 = vsel %vm565_vm1, %v3853_v58, -inf  ;;  %v1885_v6 = vsel %vm565_vm1, %v3850_v16, -inf }
 0x1b5   :  { %v2645_v46 = vcombine.low %v3850_v16, %v3860_v59  ;;  %v3876_v26 = vpop.f32.mrb[22].mxu0  ;;  %v1884_v39 = vmax.f32 %v1878_v4, %v1883_v28  ;;  %v1886_v36 = vmax.f32 %v1879_v60, %v1885_v6  ;;  %v1887_v48 = vsel %vm565_vm1, %v3860_v59, -inf  ;;  %v3883_v10 = vpop.f32.mrb[22].mxu1 }
 0x1b6   :  { %4738 = vst [vmem:[#allocation27_spill] sm:$0xff] %v3876_v26  ;;  %2676 = vst [vmem:[%s4672_s6 + $0x50] sm:$0xff] %v2644_v7  ;;  %v3885_v20 = vpop.f32.mrb[23].mxu0  ;;  %v1888_v62 = vmax.f32 %v1880_v8, %v1887_v48  ;;  %v3890_v38 = vpop.f32.mrb[23].mxu1  ;;  %v548_v60 = vsel %vm547_vm2, %v3665_v14, 0.0  ;;  %v549_v43 = vsel %vm547_vm2, %v3671_v41, 0.0 }
 0x1b7   :  { %4739 = vst [vmem:[#allocation28_spill] sm:$0xff] %v3883_v10  ;;  %4740 = vst [vmem:[#allocation29_spill] sm:$0xff] %v3885_v20  ;;  %v1889_v27 = vmax.f32 %v1882_v52, %v1884_v39 }
 0x1b8   :  { %2677 = vst [vmem:[%s4672_s6 + $0x58] sm:$0xff] %v2645_v46  ;;  %4741 = vst [vmem:[#allocation30_spill] sm:$0xff] %v3890_v38  ;;  %v1890_v45 = vmax.f32 %v1886_v36, %v1888_v62  ;;  %v550_v36 = vadd.f32 %v549_v43, %v548_v60 }
 0x1ba   :  { %v1891_v4 = vmax.f32 %v1889_v27, %v1890_v45 }
 0x1bc   :  { %1892 = vmax.xlane.f32.xlu0 %v1891_v4  ;;  %v551_v4 = vsel %vm547_vm2, %v3668_v17, 0.0 }
 0x1be   :  { %v2202_v7 = vpop.f32.mrb[24].mxu0 }
 0x1bf   :  { %v3897_v8 = vadd.f32 %v2202_v7, %v3662_v13  ;;  %v2279_v28 = vpop.f32.mrb[24].mxu1  ;;  %v2204_v6 = vpop.f32.mrb[25].mxu0 }
 0x1c0   :  { %v3900_v46 = vadd.f32 %v2279_v28, %v3662_v13  ;;  %v3903_v52 = vadd.f32 %v2204_v6, %v3662_v13  ;;  %v2281_v39 = vpop.f32.mrb[25].mxu1  ;;  %v552_v28 = vadd.f32 %v551_v4, %v550_v36  ;;  %v553_v6 = vsel %vm547_vm2, %v3674_v31, 0.0 }
 0x1c1   :  { %4742 = vst [vmem:[#allocation31_spill] sm:$0xff] %v3897_v8  ;;  %v3906_v48 = vadd.f32 %v2281_v39, %v3662_v13 }
 0x1c2   :  { %4743 = vst [vmem:[#allocation32_spill] sm:$0xff] %v3900_v46  ;;  %4744 = vst [vmem:[#allocation33_spill] sm:$0xff] %v3903_v52  ;;  %v2646_v62 = vcombine.low %v3897_v8, %v3903_v52  ;;  %v554_v39 = vadd.f32 %v553_v6, %v552_v28  ;;  %v2480_v28 = vsel %vm565_vm1, %v3897_v8, -inf }
 0x1c3   :  { %4745 = vst [vmem:[#allocation34_spill] sm:$0xff] %v3906_v48  ;;  %v2647_v27 = vcombine.low %v3900_v46, %v3906_v48  ;;  %v3912_v45 = vpop.f32.mrb[26].mxu0  ;;  %v3919_v7 = vpop.f32.mrb[26].mxu1 }
 0x1c4   :  { %4746 = vst [vmem:[#allocation35_spill] sm:$0xff] %v3912_v45  ;;  %2678 = vst [vmem:[%s4672_s6 + $0x60] sm:$0xff] %v2646_v62  ;;  %v3921_v60 = vpop.f32.mrb[27].mxu0  ;;  %v3926_v43 = vpop.f32.mrb[27].mxu1  ;;  %v555_v45 = vsel %vm547_vm2, %v3695_v40, 0.0 }
 0x1c5   :  { %4747 = vst [vmem:[#allocation36_spill] sm:$0xff] %v3919_v7  ;;  %4748 = vst [vmem:[#allocation37_spill] sm:$0xff] %v3921_v60  ;;  %v556_v10 = vadd.f32 %v555_v45, %v554_v39  ;;  %v2482_v45 = vsel %vm565_vm1, %v3900_v46, -inf  ;;  %v41_v39 = vld [vmem:[%s4669_s4 + $0x8] sm:$0xf] }
 0x1c6   :  { %2679 = vst [vmem:[%s4672_s6 + $0x68] sm:$0xff] %v2647_v27  ;;  %4749 = vst [vmem:[#allocation38_spill] sm:$0xff] %v3926_v43  ;;  %v557_v27 = vsel %vm547_vm2, %v3698_v33, 0.0 }
 0x1cc   :  { %v2356_v38 = vpop.f32.mrb[28].mxu0 }
 0x1cd   :  { %v3933_v62 = vadd.f32 %v2356_v38, %v3662_v13  ;;  %v2433_v7 = vpop.f32.mrb[28].mxu1  ;;  %v2358_v60 = vpop.f32.mrb[29].mxu0  ;;  %v2481_v38 = vsel %vm565_vm1, %v3903_v52, -inf }
 0x1ce   :  { %v3938_v43 = vadd.f32 %v2433_v7, %v3662_v13  ;;  %v3941_v36 = vadd.f32 %v2358_v60, %v3662_v13  ;;  %v2435_v4 = vpop.f32.mrb[29].mxu1  ;;  %v2483_v7 = vsel %vm565_vm1, %v3906_v48, -inf }
 0x1cf   :  { %4750 = vst [vmem:[#allocation39_spill] sm:$0xff] %v3933_v62  ;;  %v3948_v6 = vadd.f32 %v2435_v4, %v3662_v13  ;;  %v2484_v60 = vsel %vm565_vm1, %v3933_v62, -inf }
 0x1d0   :  { %4751 = vst [vmem:[#allocation40_spill] sm:$0xff] %v3938_v43  ;;  %4752 = vst [vmem:[#allocation41_spill] sm:$0xff] %v3941_v36  ;;  %v2648_v20 = vcombine.low %v3933_v62, %v3941_v36  ;;  %v2485_v26 = vmax.f32 %v2480_v28, %v2484_v60  ;;  %v2486_v13 = vsel %vm565_vm1, %v3941_v36, -inf  ;;  %v2488_v4 = vsel %vm565_vm1, %v3938_v43, -inf }
 0x1d1   :  { %4753 = vst [vmem:[#allocation42_spill] sm:$0xff] %v3948_v6  ;;  %v2649_v15 = vcombine.low %v3938_v43, %v3948_v6  ;;  %v2487_v2 = vmax.f32 %v2481_v38, %v2486_v13  ;;  %v2489_v54 = vmax.f32 %v2482_v45, %v2488_v4  ;;  %v2490_v51 = vsel %vm565_vm1, %v3948_v6, -inf }
 0x1d2   :  { %2680 = vst [vmem:[%s4672_s6 + $0x70] sm:$0xff] %v2648_v20  ;;  %v2491_v49 = vmax.f32 %v2483_v7, %v2490_v51  ;;  %v558_v28 = vadd.f32 %v557_v27, %v556_v10  ;;  %229 = vperm.xlu0 %2872, %v41_v39   ;;  %v1239_v38 = vsel %vm547_vm2, %v3744_v56, 0.0  ;;  %v559_v13 = vsel %vm547_vm2, %v3711_v30, 0.0  ;;  %v3981_v10 = vpop.f32.mrb[30].mxu0  ;;  %v3983_v27 = vpop.f32.mrb[30].mxu1 }
 0x1d3   :  { %2681 = vst [vmem:[%s4672_s6 + $0x78] sm:$0xff] %v2649_v15  ;;  %v2492_v60 = vmax.f32 %v2485_v26, %v2487_v2  ;;  %v1240_v51 = vadd.f32 %v1239_v38, %v1238_v53  ;;  %4754 = vst [vmem:[#allocation43_spill] sm:$0xff] %v3981_v10  ;;  %v1841_v2 = vsel %vm547_vm2, %v3817_v29, 0.0  ;;  %v1842_v15 = vsel %vm547_vm2, %v3823_v50, 0.0  ;;  %v3989_v26 = vpop.f32.mrb[31].mxu0 }
 0x1d4   :  { %v2493_v45 = vmax.f32 %v2489_v54, %v2491_v49  ;;  %v560_v20 = vadd.f32 %v559_v13, %v558_v28  ;;  %4755 = vst [vmem:[#allocation44_spill] sm:$0xff] %v3983_v27  ;;  %4756 = vst [vmem:[#allocation45_spill] sm:$0xff] %v3989_v26  ;;  %v3991_v49 = vpop.f32.mrb[31].mxu1  ;;  %v561_v54 = vsel %vm547_vm2, %v3717_v9, 0.0  ;;  %v1241_v53 = vsel %vm547_vm2, %v3747_v11, 0.0 }
 0x1d5   :  { %4757 = vst [vmem:[#allocation46_spill] sm:$0xff] %v3991_v49  ;;  %v1843_v39 = vadd.f32 %v1842_v15, %v1841_v2  ;;  %v1242_v28 = vadd.f32 %v1241_v53, %v1240_v51  ;;  %v1844_v38 = vsel %vm547_vm2, %v3820_v47, 0.0  ;;  %v1846_v49 = vsel %vm547_vm2, %v3826_v35, 0.0 }
 0x1d6   :  { %v2494_v4 = vmax.f32 %v2492_v60, %v2493_v45  ;;  %v562_v7 = vadd.f32 %v561_v54, %v560_v20  ;;  %v1243_v60 = vsel %vm547_vm2, %v3752_v18, 0.0  ;;  %v1247_v20 = vsel %vm547_vm2, %v3777_v25, 0.0 }
 0x1d7   :  { %v1244_v45 = vadd.f32 %v1243_v60, %v1242_v28  ;;  %v1845_v13 = vadd.f32 %v1844_v38, %v1843_v39  ;;  %v1848_v51 = vsel %vm547_vm2, %v3847_v61, 0.0  ;;  %v1850_v54 = vsel %vm547_vm2, %v3853_v58, 0.0 }
 0x1d8   :  { %2495 = vmax.xlane.f32.xlu1 %v2494_v4  ;;  %v1245_v4 = vsel %vm547_vm2, %v3771_v1, 0.0  ;;  %v1249_v53 = vsel %vm547_vm2, %v3774_v21, 0.0  ;;  %v1251_v28 = vsel %vm547_vm2, %v3784_v19, 0.0 }
 0x1d9   :  { %v1246_v27 = vadd.f32 %v1245_v4, %v1244_v45  ;;  %v1847_v26 = vadd.f32 %v1846_v49, %v1845_v13  ;;  %v1852_v49 = vsel %vm547_vm2, %v3850_v16, 0.0  ;;  %v2444_v45 = vsel %vm547_vm2, %v3897_v8, 0.0 }
 0x1da   :  { %v2445_v13 = vsel %vm547_vm2, %v3903_v52, 0.0  ;;  %v4766_v52 = vld [vmem:[#allocation9_spill] sm:$0xff] }
 0x1db   :  { %v1248_v2 = vadd.f32 %v1247_v20, %v1246_v27  ;;  %v1849_v15 = vadd.f32 %v1848_v51, %v1847_v26  ;;  %v1854_v27 = vsel %vm547_vm2, %v3860_v59, 0.0 }
 0x1dc   :  { %563 = vadd.xlane.f32.xlu1 %v562_v7 }
 0x1dd   :  { %v1250_v7 = vadd.f32 %v1249_v53, %v1248_v2  ;;  %v1851_v39 = vadd.f32 %v1850_v54, %v1849_v15  ;;  %v2446_v15 = vadd.f32 %v2445_v13, %v2444_v45  ;;  %v4042_v13 = vld [vmem:[%s4673_s5] ss:$2 sm:$0xff] }
 0x1de   :  { %v4112_v8 = vrot.slane %v4042_v13, %v4766_v52 }
 0x1df   :  { %v1252_v60 = vadd.f32 %v1251_v28, %v1250_v7  ;;  %v1853_v38 = vadd.f32 %v1852_v49, %v1851_v39  ;;  %v2447_v28 = vsel %vm547_vm2, %v3900_v46, 0.0 }
 0x1e1   :  { %v1855_v26 = vadd.f32 %v1854_v27, %v1853_v38  ;;  %v2448_v27 = vadd.f32 %v2447_v28, %v2446_v15  ;;  %v4759_v15 = vld [vmem:[#allocation4_spill] sm:$0xff] }
 0x1f1   :  { %1253 = vadd.xlane.f32.xlu0 %v1252_v60 }
 0x1f5   :  { %1856 = vadd.xlane.f32.xlu0 %v1855_v26 }
 0x212   :  { %v4023_v4 = vpop.xlane.xlu1 %601 }
 0x213   :  { %4758 = vst [vmem:[#allocation47_spill] sm:$0xff] %v4023_v4  ;;  %v603_v20 = vsub.f32 %v3665_v14, %v4023_v4  ;;  %v604_v51 = vsub.f32 %v3671_v41, %v4023_v4  ;;  %v605_v2 = vsub.f32 %v3668_v17, %v4023_v4  ;;  %v606_v54 = vsub.f32 %v3674_v31, %v4023_v4 }
 0x214   :  { %v607_v41 = vsub.f32 %v3695_v40, %v4023_v4  ;;  %v2449_v17 = vsel %vm547_vm2, %v3906_v48, 0.0  ;;  %v608_v40 = vsub.f32 %v3698_v33, %v4023_v4  ;;  %v2453_v33 = vsel %vm547_vm2, %v3941_v36, 0.0  ;;  %v4765_v48 = vld [vmem:[#allocation6_spill] sm:$0xff] }
 0x215   :  { %v611_v53 = vmul.f32 20.0, %v603_v20  ;;  %v612_v7 = vmul.f32 20.0, %v604_v51  ;;  %v613_v39 = vmul.f32 20.0, %v605_v2  ;;  %v614_v38 = vmul.f32 20.0, %v606_v54 }
 0x216   :  { %v2450_v26 = vadd.f32 %v2449_v17, %v2448_v27  ;;  %v615_v45 = vmul.f32 20.0, %v607_v41  ;;  %v2451_v20 = vsel %vm547_vm2, %v3933_v62, 0.0  ;;  %v609_v51 = vsub.f32 %v3711_v30, %v4023_v4  ;;  %v4762_v41 = vld [vmem:[#allocation5_spill] sm:$0xff]  ;;  %v4764_v62 = vld [vmem:[#allocation8_spill] sm:$0xff] }
 0x217   :  { %v619_v49 = vmul.f32 1.442695, %v611_v53  ;;  %v621_v60 = vmul.f32 1.442695, %v612_v7  ;;  %v623_v14 = vmul.f32 1.442695, %v613_v39  ;;  %v610_v2 = vsub.f32 %v3717_v9, %v4023_v4 }
 0x218   :  { %v625_v31 = vmul.f32 1.442695, %v614_v38  ;;  %v4054_v54 = vrot.slane %v4042_v13, %v4759_v15  ;;  %v2452_v53 = vadd.f32 %v2451_v20, %v2450_v26  ;;  %v627_v7 = vmul.f32 1.442695, %v615_v45  ;;  %v4761_v39 = vld [vmem:[#allocation2_spill] sm:$0xff] }
 0x219   :  { %2874 = vpow2.f32 %v619_v49  ;;  %v4058_v28 = vrot.slane %v4042_v13, %v4761_v39  ;;  %v616_v49 = vmul.f32 20.0, %v608_v40  ;;  %v4065_v17 = vrot.slane %v4042_v13, %v4762_v41  ;;  %v4071_v26 = vld [vmem:[%s4673_s5 + $0x1] ss:$2 sm:$0xff] }
 0x21a   :  { %2876 = vpow2.f32 %v621_v60  ;;  %4760 = vst [vmem:[#allocation4_spill] sm:$0xff] %v4054_v54  ;;  %v617_v60 = vmul.f32 20.0, %v609_v51  ;;  %v2454_v9 = vadd.f32 %v2453_v33, %v2452_v53  ;;  %v2455_v51 = vsel %vm547_vm2, %v3938_v43, 0.0 }
 0x21b   :  { %2878 = vpow2.f32 %v623_v14  ;;  %v618_v14 = vmul.f32 20.0, %v610_v2  ;;  %v629_v20 = vmul.f32 1.442695, %v616_v49  ;;  %v4083_v36 = vsel %vm547_vm2, %v3948_v6, 0.0 }
 0x21c   :  { %2880 = vpow2.f32 %v625_v31  ;;  %v631_v40 = vmul.f32 1.442695, %v617_v60  ;;  %v4079_v10 = vadd.f32 %v2455_v51, %v2454_v9  ;;  %v4087_v49 = vrot.slane %v4071_v26, %v4759_v15  ;;  %v4763_v60 = vld [vmem:[#allocation3_spill] sm:$0xff] }
 0x21d   :  { %2882 = vpow2.f32 %v627_v7  ;;  %v633_v4 = vmul.f32 1.442695, %v618_v14  ;;  %v4091_v43 = vrot.slane %v4042_v13, %v4763_v60  ;;  %v4100_v9 = vrot.slane %v4071_v26, %v4761_v39 }
 0x21e   :  { %2884 = vpow2.f32 %v629_v20  ;;  %v4104_v15 = vrot.slane %v4071_v26, %v4762_v41  ;;  %v4108_v46 = vrot.slane %v4042_v13, %v4765_v48  ;;  %v4116_v39 = vrot.slane %v4071_v26, %v4763_v60 }
 0x21f   :  { %2886 = vpow2.f32 %v631_v40  ;;  %v4120_v20 = vrot.slane %v4071_v26, %v4764_v62  ;;  %v4124_v41 = vrot.slane %v4071_v26, %v4765_v48 }
 0x220   :  { %2888 = vpow2.f32 %v633_v4 }
 0x223   :  { %v2875_v30 = vpop.eup %2874 }
 0x224   :  { %v2877_v38 = vpop.eup %2876  ;;  %v694_v27 = vmul.f32 %v2875_v30, %v4054_v54  ;;  %v635_v2 = vsel %vm565_vm1, %v2875_v30, 0.0  ;;  %v761_v40 = vmul.f32 %v2875_v30, %v4087_v49 }
 0x225   :  { %v695_v31 = vmul.f32 %v2877_v38, %v4058_v28  ;;  %v2879_v45 = vpop.eup %2878  ;;  %v636_v53 = vsel %vm565_vm1, %v2877_v38, 0.0 }
 0x226   :  { %v702_v7 = vsel %vm565_vm1, %v694_v27, 0.0  ;;  %v4095_v27 = vrot.slane %v4042_v13, %v4764_v62  ;;  %v696_v14 = vmul.f32 %v2879_v45, %v4065_v17  ;;  %v637_v51 = vadd.f32 %v636_v53, %v635_v2 }
 0x227   :  { %v703_v33 = vsel %vm565_vm1, %v695_v31, 0.0  ;;  %v2881_v31 = vpop.eup %2880  ;;  %v638_v2 = vsel %vm565_vm1, %v2879_v45, 0.0  ;;  %v763_v42 = vmul.f32 %v2879_v45, %v4104_v15 }
 0x228   :  { %v704_v6 = vadd.f32 %v703_v33, %v702_v7  ;;  %v640_v53 = vsel %vm565_vm1, %v2881_v31, 0.0  ;;  %v705_v7 = vsel %vm565_vm1, %v696_v14, 0.0  ;;  %v762_v33 = vmul.f32 %v2877_v38, %v4100_v9  ;;  %v2883_v48 = vpop.eup %2882 }
 0x229   :  { %v639_v4 = vadd.f32 %v638_v2, %v637_v51  ;;  %v697_v62 = vmul.f32 %v2881_v31, %v4091_v43  ;;  %v2885_v44 = vpop.eup %2884 }
 0x22a   :  { %v706_v5 = vadd.f32 %v705_v7, %v704_v6 }
 0x22b   :  { %v707_v57 = vsel %vm565_vm1, %v697_v62, 0.0 }
 0x22e   :  { %v4131_v60 = vpop.xlane.xlu0 %1289 }
 0x22f   :  { %4767 = vst [vmem:[#allocation2_spill] sm:$0xff] %v4131_v60  ;;  %v1291_v30 = vsub.f32 %v3741_v63, %v4131_v60  ;;  %v1292_v24 = vsub.f32 %v3744_v56, %v4131_v60  ;;  %v1293_v14 = vsub.f32 %v3747_v11, %v4131_v60  ;;  %v1294_v38 = vsub.f32 %v3752_v18, %v4131_v60 }
 0x230   :  { %v1295_v51 = vsub.f32 %v3771_v1, %v4131_v60  ;;  %v1296_v6 = vsub.f32 %v3777_v25, %v4131_v60  ;;  %v1297_v45 = vsub.f32 %v3774_v21, %v4131_v60  ;;  %v1298_v63 = vsub.f32 %v3784_v19, %v4131_v60 }
 0x231   :  { %v1299_v2 = vmul.f32 20.0, %v1291_v30  ;;  %v1300_v56 = vmul.f32 20.0, %v1292_v24  ;;  %v1301_v7 = vmul.f32 20.0, %v1293_v14  ;;  %v1302_v55 = vmul.f32 20.0, %v1294_v38  ;;  %v2887_v24 = vpop.eup %2886 }
 0x232   :  { %v1303_v11 = vmul.f32 20.0, %v1295_v51  ;;  %v1304_v37 = vmul.f32 20.0, %v1296_v6  ;;  %v1305_v22 = vmul.f32 20.0, %v1297_v45  ;;  %v642_v18 = vsel %vm565_vm1, %v2883_v48, 0.0  ;;  %v2889_v51 = vpop.eup %2888 }
 0x233   :  { %v1307_v3 = vmul.f32 1.442695, %v1299_v2  ;;  %v1309_v1 = vmul.f32 1.442695, %v1300_v56  ;;  %v1311_v34 = vmul.f32 1.442695, %v1301_v7  ;;  %v698_v25 = vmul.f32 %v2883_v48, %v4095_v27 }
 0x234   :  { %v1306_v23 = vmul.f32 20.0, %v1298_v63  ;;  %v1313_v21 = vmul.f32 1.442695, %v1302_v55  ;;  %v769_v19 = vsel %vm565_vm1, %v761_v40, 0.0  ;;  %v1315_v30 = vmul.f32 1.442695, %v1303_v11 }
 0x235   :  { %2890 = vpow2.f32 %v1307_v3  ;;  %v641_v14 = vadd.f32 %v640_v53, %v639_v4  ;;  %v708_v38 = vadd.f32 %v707_v57, %v706_v5  ;;  %v1317_v6 = vmul.f32 1.442695, %v1304_v37 }
 0x236   :  { %2892 = vpow2.f32 %v1309_v1  ;;  %v764_v45 = vmul.f32 %v2881_v31, %v4116_v39  ;;  %v770_v2 = vsel %vm565_vm1, %v762_v33, 0.0  ;;  %v1319_v56 = vmul.f32 1.442695, %v1305_v22  ;;  %v4768_v31 = vld [vmem:[#allocation7_spill] sm:$0xff] }
 0x237   :  { %2894 = vpow2.f32 %v1311_v34  ;;  %v699_v55 = vmul.f32 %v2885_v44, %v4108_v46  ;;  %v771_v63 = vadd.f32 %v770_v2, %v769_v19  ;;  %v1321_v62 = vmul.f32 1.442695, %v1306_v23 }
 0x238   :  { %2896 = vpow2.f32 %v1313_v21  ;;  %v765_v40 = vmul.f32 %v2883_v48, %v4120_v20  ;;  %v772_v3 = vsel %vm565_vm1, %v763_v42, 0.0  ;;  %v643_v57 = vadd.f32 %v642_v18, %v641_v14 }
 0x239   :  { %2898 = vpow2.f32 %v1315_v30  ;;  %v709_v5 = vsel %vm565_vm1, %v698_v25, 0.0  ;;  %v773_v37 = vadd.f32 %v772_v3, %v771_v63  ;;  %v4163_v53 = vrot.slane %v4042_v13, %v4768_v31 }
 0x23a   :  { %2900 = vpow2.f32 %v1317_v6  ;;  %v710_v34 = vadd.f32 %v709_v5, %v708_v38  ;;  %v774_v22 = vsel %vm565_vm1, %v764_v45, 0.0  ;;  %v4168_v23 = vrot.slane %v4071_v26, %v4766_v52 }
 0x23b   :  { %2902 = vpow2.f32 %v1319_v56  ;;  %v766_v42 = vmul.f32 %v2885_v44, %v4124_v41  ;;  %v775_v33 = vadd.f32 %v774_v22, %v773_v37  ;;  %v644_v4 = vsel %vm565_vm1, %v2885_v44, 0.0 }
 0x23c   :  { %2904 = vpow2.f32 %v1321_v62  ;;  %v700_v48 = vmul.f32 %v2887_v24, %v4112_v8  ;;  %v776_v7 = vsel %vm565_vm1, %v765_v40, 0.0  ;;  %v645_v13 = vadd.f32 %v644_v4, %v643_v57 }
 0x23d   :  { %v711_v11 = vsel %vm565_vm1, %v699_v55, 0.0  ;;  %v4177_v18 = vrot.slane %v4071_v26, %v4768_v31  ;;  %v777_v1 = vadd.f32 %v776_v7, %v775_v33  ;;  %v4181_v52 = vadd.f32 %v4083_v36, %v4079_v10 }
 0x23e   :  { %v646_v25 = vsel %vm565_vm1, %v2887_v24, 0.0  ;;  %v712_v21 = vadd.f32 %v711_v11, %v710_v34  ;;  %v648_v19 = vsel %vm565_vm1, %v2889_v51, 0.0  ;;  %v701_v30 = vmul.f32 %v2889_v51, %v4163_v53 }
 0x23f   :  { %v2891_v44 = vpop.eup %2890  ;;  %v767_v14 = vmul.f32 %v2887_v24, %v4168_v23  ;;  %v778_v38 = vsel %vm565_vm1, %v766_v42, 0.0  ;;  %v713_v45 = vsel %vm565_vm1, %v700_v48, 0.0  ;;  %v647_v55 = vadd.f32 %v646_v25, %v645_v13 }
 0x240   :  { %v2893_v6 = vpop.eup %2892  ;;  %v1341_v26 = vmul.f32 %v2891_v44, %v4054_v54  ;;  %v779_v2 = vadd.f32 %v778_v38, %v777_v1  ;;  %v1323_v36 = vsel %vm565_vm1, %v2891_v44, 0.0  ;;  %v768_v63 = vmul.f32 %v2889_v51, %v4177_v18 }
 0x241   :  { %v4191_v10 = vpop.eup %2894  ;;  %v1342_v56 = vmul.f32 %v2893_v6, %v4058_v28  ;;  %v1324_v62 = vsel %vm565_vm1, %v2893_v6, 0.0  ;;  %v714_v57 = vadd.f32 %v713_v45, %v712_v21  ;;  %v780_v51 = vsel %vm565_vm1, %v767_v14, 0.0 }
 0x242   :  { %v4196_v24 = vpop.eup %2896  ;;  %v1343_v40 = vmul.f32 %v4191_v10, %v4065_v17  ;;  %v1349_v3 = vsel %vm565_vm1, %v1341_v26, 0.0  ;;  %v1325_v5 = vadd.f32 %v1324_v62, %v1323_v36  ;;  %v1326_v22 = vsel %vm565_vm1, %v4191_v10, 0.0 }
 0x243   :  { %v4201_v37 = vpop.eup %2898  ;;  %v1344_v31 = vmul.f32 %v4196_v24, %v4091_v43  ;;  %v1350_v34 = vsel %vm565_vm1, %v1342_v56, 0.0  ;;  %v715_v4 = vsel %vm565_vm1, %v701_v30, 0.0  ;;  %v781_v48 = vadd.f32 %v780_v51, %v779_v2 }
 0x244   :  { %v4209_v42 = vpop.eup %2900  ;;  %v1351_v33 = vadd.f32 %v1350_v34, %v1349_v3  ;;  %v1327_v7 = vadd.f32 %v1326_v22, %v1325_v5  ;;  %v1345_v11 = vmul.f32 %v4201_v37, %v4095_v27  ;;  %v1352_v25 = vsel %vm565_vm1, %v1343_v40, 0.0 }
 0x245   :  { %v4212_v13 = vpop.eup %2902  ;;  %v1346_v1 = vmul.f32 %v4209_v42, %v4108_v46  ;;  %v1328_v21 = vsel %vm565_vm1, %v4196_v24, 0.0  ;;  %v4223_v26 = vadd.f32 %v648_v19, %v647_v55  ;;  %v4225_v30 = vadd.f32 %v715_v4, %v714_v57 }
 0x246   :  { %v4221_v14 = vpop.eup %2904  ;;  %v1353_v38 = vadd.f32 %v1352_v25, %v1351_v33  ;;  %v1329_v45 = vadd.f32 %v1328_v21, %v1327_v7  ;;  %v1354_v2 = vsel %vm565_vm1, %v1344_v31, 0.0  ;;  %v782_v36 = vsel %vm565_vm1, %v768_v63, 0.0 }
 0x247   :  { %v4230_v56 = vmul.f32 %v2891_v44, %v4087_v49  ;;  %v4233_v62 = vmul.f32 %v2893_v6, %v4100_v9  ;;  %v4235_v3 = vadd.f32 %v782_v36, %v781_v48  ;;  %v1330_v19 = vsel %vm565_vm1, %v4201_v37, 0.0 }
 0x248   :  { %v1355_v40 = vadd.f32 %v1354_v2, %v1353_v38  ;;  %v1332_v55 = vsel %vm565_vm1, %v4209_v42, 0.0  ;;  %v1347_v57 = vmul.f32 %v4212_v13, %v4112_v8  ;;  %v1348_v63 = vmul.f32 %v4221_v14, %v4163_v53 }
 0x249   :  { %v1356_v44 = vsel %vm565_vm1, %v1345_v11, 0.0  ;;  %v1358_v6 = vsel %vm565_vm1, %v1346_v1, 0.0  ;;  %v4247_v5 = vpop.xlane.xlu0 %1892  ;;  %v1331_v34 = vadd.f32 %v1330_v19, %v1329_v45  ;;  %v1334_v51 = vsel %vm565_vm1, %v4212_v13, 0.0 }
 0x24a   :  { %4769 = vst [vmem:[#allocation5_spill] sm:$0xff] %v4247_v5  ;;  %v1357_v31 = vadd.f32 %v1356_v44, %v1355_v40  ;;  %v1336_v22 = vsel %vm565_vm1, %v4221_v14, 0.0  ;;  %v1894_v33 = vsub.f32 %v3817_v29, %v4247_v5  ;;  %v1895_v4 = vsub.f32 %v3823_v50, %v4247_v5 }
 0x24b   :  { %v1896_v48 = vsub.f32 %v3820_v47, %v4247_v5  ;;  %v1897_v7 = vsub.f32 %v3826_v35, %v4247_v5  ;;  %v1898_v11 = vsub.f32 %v3847_v61, %v4247_v5  ;;  %v1899_v1 = vsub.f32 %v3853_v58, %v4247_v5 }
 0x24c   :  { %v1900_v25 = vsub.f32 %v3850_v16, %v4247_v5  ;;  %v1901_v29 = vsub.f32 %v3860_v59, %v4247_v5  ;;  %v1902_v21 = vmul.f32 20.0, %v1894_v33  ;;  %v1903_v50 = vmul.f32 20.0, %v1895_v4 }
 0x24d   :  { %v1904_v38 = vmul.f32 20.0, %v1896_v48  ;;  %v1905_v45 = vmul.f32 20.0, %v1897_v7  ;;  %v1906_v47 = vmul.f32 20.0, %v1898_v11  ;;  %v1907_v2 = vmul.f32 20.0, %v1899_v1 }
 0x24e   :  { %v1360_v35 = vsel %vm565_vm1, %v1347_v57, 0.0  ;;  %v1333_v36 = vadd.f32 %v1332_v55, %v1331_v34  ;;  %v1910_v40 = vmul.f32 1.442695, %v1902_v21  ;;  %v1912_v61 = vmul.f32 1.442695, %v1903_v50  ;;  %v4771_v21 = vld [vmem:[#allocation11_spill] sm:$0xff] }
 0x24f   :  { %v1359_v19 = vadd.f32 %v1358_v6, %v1357_v31  ;;  %v4272_v58 = vmul.f32 %v4191_v10, %v4104_v15  ;;  %v1908_v16 = vmul.f32 20.0, %v1900_v25  ;;  %v1914_v44 = vmul.f32 1.442695, %v1904_v38 }
 0x250   :  { %v1362_v59 = vsel %vm565_vm1, %v1348_v63, 0.0  ;;  %v4277_v33 = vmul.f32 %v4196_v24, %v4116_v39  ;;  %v1909_v4 = vmul.f32 20.0, %v1901_v29  ;;  %v1916_v48 = vmul.f32 1.442695, %v1905_v45 }
 0x251   :  { %v1361_v7 = vadd.f32 %v1360_v35, %v1359_v19  ;;  %v4281_v55 = vmul.f32 %v4201_v37, %v4120_v20  ;;  %2906 = vpow2.f32 %v1910_v40  ;;  %v1918_v57 = vmul.f32 1.442695, %v1906_v47  ;;  %v4283_v10 = vpop.permute.xlu0 %229  ;;  %v4774_v47 = vld [vmem:[#allocation13_spill] sm:$0xff]  ;;  %v4775_v40 = vld [vmem:[#allocation15_spill] sm:$0xff] }
 0x252   :  { %v1920_v6 = vmul.f32 1.442695, %v1907_v2  ;;  %v1335_v31 = vadd.f32 %v1334_v51, %v1333_v36  ;;  %2908 = vpow2.f32 %v1912_v61  ;;  %v312_v63 = vadd.f32 %v3678_v0, %v4283_v10  ;;  %v4776_v19 = vld [vmem:[#allocation17_spill] sm:$0xff] }
 0x253   :  { %v1363_v34 = vadd.f32 %v1362_v59, %v1361_v7  ;;  %v314_v24 = vadd.f32 %v3684_v32, %v4283_v10  ;;  %2910 = vpow2.f32 %v1914_v44  ;;  %v1922_v11 = vmul.f32 1.442695, %v1908_v16  ;;  %v4770_v32 = vld [vmem:[#allocation10_spill] sm:$0xff] }
 0x254   :  { %v389_v37 = vadd.f32 %v3682_v12, %v4283_v10  ;;  %v4293_v1 = vmul.f32 %v4209_v42, %v4124_v41  ;;  %2912 = vpow2.f32 %v1916_v48  ;;  %v1924_v25 = vmul.f32 1.442695, %v1909_v4  ;;  %v4778_v59 = vld [vmem:[#allocation14_spill] sm:$0xff] }
 0x255   :  { %1364 = vadd.xlane.f32.xlu0 %v1363_v34  ;;  %v4297_v51 = vmul.f32 %v4212_v13, %v4168_v23  ;;  %v4301_v0 = vmul.f32 %v4221_v14, %v4177_v18  ;;  %2914 = vpow2.f32 %v1918_v57  ;;  %v391_v29 = vadd.f32 %v4770_v32, %v4283_v10  ;;  %v4773_v13 = vld [vmem:[#allocation12_spill] sm:$0xff] }
 0x256   :  { %v566_v12 = vsel %vm565_vm1, %v312_v63, 0.0  ;;  %v567_v42 = vsel %vm565_vm1, %v314_v24, 0.0  ;;  %2916 = vpow2.f32 %v1920_v6  ;;  %v466_v50 = vadd.f32 %v4771_v21, %v4283_v10  ;;  %v4779_v6 = vld [vmem:[#allocation18_spill] sm:$0xff] }
 0x257   :  { %v568_v38 = vadd.f32 %v567_v42, %v566_v12  ;;  %v4309_v45 = vadd.f32 %v1336_v22, %v1335_v31  ;;  %2918 = vpow2.f32 %v1922_v11  ;;  %v468_v14 = vadd.f32 %v4773_v13, %v4283_v10  ;;  %v4777_v22 = vld [vmem:[#allocation16_spill] sm:$0xff]  ;;  %v4780_v12 = vld [vmem:[#allocation19_spill] sm:$0xff] }
 0x258   :  { %v543_v2 = vadd.f32 %v4774_v47, %v4283_v10  ;;  %v569_v35 = vsel %vm565_vm1, %v389_v37, 0.0  ;;  %v1003_v61 = vadd.f32 %v4775_v40, %v4283_v10  ;;  %v1005_v16 = vadd.f32 %v4776_v19, %v4283_v10  ;;  %v4781_v13 = vld [vmem:[#allocation20_spill] sm:$0xff] }
 0x259   :  { %4772 = vst [vmem:[#allocation3_spill] sm:$0xff] %v4309_v45  ;;  %2459 = vadd.xlane.f32.xlu0 %v4181_v52  ;;  %v570_v36 = vadd.f32 %v569_v35, %v568_v38  ;;  %v1080_v44 = vadd.f32 %v4777_v22, %v4283_v10  ;;  %v545_v4 = vadd.f32 %v4778_v59, %v4283_v10  ;;  %v571_v48 = vsel %vm565_vm1, %v391_v29, 0.0 }
 0x25a   :  { %v1375_v7 = vsel %vm565_vm1, %v4230_v56, 0.0  ;;  %v1376_v52 = vsel %vm565_vm1, %v4233_v62, 0.0  ;;  %v1082_v31 = vadd.f32 %v4779_v6, %v4283_v10  ;;  %v1255_v34 = vsel %vm565_vm1, %v1003_v61, 0.0 }
 0x25b   :  { %v572_v57 = vadd.f32 %v571_v48, %v570_v36  ;;  %v1256_v63 = vsel %vm565_vm1, %v1005_v16, 0.0  ;;  %v4334_v24 = vpop.eup %2906  ;;  %2920 = vpow2.f32 %v1924_v25  ;;  %v573_v11 = vsel %vm565_vm1, %v466_v50, 0.0  ;;  %v4782_v50 = vld [vmem:[#allocation21_spill] sm:$0xff] }
 0x25c   :  { %v575_v37 = vsel %vm565_vm1, %v468_v14, 0.0  ;;  %v1257_v32 = vadd.f32 %v1256_v63, %v1255_v34  ;;  %v4338_v56 = vpop.eup %2908  ;;  %v577_v62 = vsel %vm565_vm1, %v543_v2, 0.0  ;;  %v1157_v42 = vadd.f32 %v4780_v12, %v4283_v10  ;;  %v4783_v2 = vld [vmem:[#allocation22_spill] sm:$0xff] }
 0x25d   :  { %v574_v29 = vadd.f32 %v573_v11, %v572_v57  ;;  %v1258_v21 = vsel %vm565_vm1, %v1080_v44, 0.0  ;;  %v4344_v38 = vpop.eup %2910  ;;  %v1159_v25 = vadd.f32 %v4781_v13, %v4283_v10  ;;  %v1234_v47 = vadd.f32 %v4782_v50, %v4283_v10 }
 0x25e   :  { %v1259_v14 = vadd.f32 %v1258_v21, %v1257_v32  ;;  %v1377_v35 = vadd.f32 %v1376_v52, %v1375_v7  ;;  %v4350_v36 = vpop.eup %2912  ;;  %v1236_v61 = vadd.f32 %v4783_v2, %v4283_v10  ;;  %v1260_v19 = vsel %vm565_vm1, %v1082_v31, 0.0  ;;  %v4784_v2 = vld [vmem:[#allocation31_spill] sm:$0xff] }
 0x25f   :  { %v576_v40 = vadd.f32 %v575_v37, %v574_v29  ;;  %v1378_v16 = vsel %vm565_vm1, %v4272_v58, 0.0  ;;  %v4357_v22 = vpop.eup %2914  ;;  %v579_v44 = vsel %vm565_vm1, %v545_v4, 0.0  ;;  %v1926_v7 = vsel %vm565_vm1, %v4334_v24, 0.0 }
 0x260   :  { %v1261_v59 = vadd.f32 %v1260_v19, %v1259_v14  ;;  %v1379_v48 = vadd.f32 %v1378_v16, %v1377_v35  ;;  %v4362_v52 = vpop.eup %2916  ;;  %v1262_v6 = vsel %vm565_vm1, %v1157_v42, 0.0  ;;  %v1380_v31 = vsel %vm565_vm1, %v4277_v33, 0.0  ;;  %v4785_v19 = vld [vmem:[#allocation33_spill] sm:$0xff] }
 0x261   :  { %v578_v57 = vadd.f32 %v577_v62, %v576_v40  ;;  %v1927_v58 = vsel %vm565_vm1, %v4338_v56, 0.0  ;;  %v4369_v34 = vpop.eup %2918  ;;  %v1264_v4 = vsel %vm565_vm1, %v1159_v25, 0.0  ;;  %v1266_v29 = vsel %vm565_vm1, %v1234_v47, 0.0 }
 0x262   :  { %v1263_v63 = vadd.f32 %v1262_v6, %v1261_v59  ;;  %v1381_v11 = vadd.f32 %v1380_v31, %v1379_v48  ;;  %v1928_v37 = vadd.f32 %v1927_v58, %v1926_v7  ;;  %v1268_v62 = vsel %vm565_vm1, %v1236_v61, 0.0  ;;  %v4787_v48 = vld [vmem:[#allocation34_spill] sm:$0xff]  ;;  %v4789_v31 = vld [vmem:[#allocation41_spill] sm:$0xff] }
 0x263   :  { %v580_v32 = vadd.f32 %v579_v44, %v578_v57  ;;  %v1382_v12 = vsel %vm565_vm1, %v4281_v55, 0.0  ;;  %v1384_v42 = vsel %vm565_vm1, %v4293_v1, 0.0  ;;  %v1386_v21 = vsel %vm565_vm1, %v4297_v51, 0.0  ;;  %v4786_v44 = vld [vmem:[#allocation32_spill] sm:$0xff]  ;;  %v4788_v57 = vld [vmem:[#allocation39_spill] sm:$0xff] }
 0x264   :  { %v1265_v33 = vadd.f32 %v1264_v4, %v1263_v63  ;;  %v4382_v13 = vsel %vm565_vm1, %v4301_v0, 0.0  ;;  %v1929_v25 = vsel %vm565_vm1, %v4344_v38, 0.0  ;;  %v1931_v50 = vsel %vm565_vm1, %v4350_v36, 0.0  ;;  %v4790_v63 = vld [vmem:[#allocation40_spill] sm:$0xff] }
 0x265   :  { %581 = vadd.xlane.f32.xlu1 %v580_v32  ;;  %v1933_v55 = vsel %vm565_vm1, %v4357_v22, 0.0  ;;  %v1935_v1 = vsel %vm565_vm1, %v4362_v52, 0.0  ;;  %v4392_v47 = vpop.eup %2920  ;;  %v4394_v51 = vpop.xlane.xlu1 %2495  ;;  %v1383_v0 = vadd.f32 %v1382_v12, %v1381_v11  ;;  %v1930_v35 = vadd.f32 %v1929_v25, %v1928_v37 }
 0x266   :  { %v1267_v14 = vadd.f32 %v1266_v29, %v1265_v33  ;;  %v4398_v40 = vsel %vm565_vm1, %v4369_v34, 0.0  ;;  %v2497_v61 = vsub.f32 %v4784_v2, %v4394_v51  ;;  %v2498_v16 = vsub.f32 %v4785_v19, %v4394_v51  ;;  %v4791_v33 = vld [vmem:[#allocation42_spill] sm:$0xff] }
 0x267   :  { %v2499_v59 = vsub.f32 %v4786_v44, %v4394_v51  ;;  %v2500_v7 = vsub.f32 %v4787_v48, %v4394_v51  ;;  %v2501_v6 = vsub.f32 %v4788_v57, %v4394_v51  ;;  %v2502_v58 = vsub.f32 %v4789_v31, %v4394_v51 }
 0x268   :  { %v2503_v4 = vsub.f32 %v4790_v63, %v4394_v51  ;;  %v1944_v11 = vmul.f32 %v4334_v24, %v4054_v54  ;;  %v2505_v37 = vmul.f32 20.0, %v2497_v61  ;;  %v2506_v32 = vmul.f32 20.0, %v2498_v16 }
 0x269   :  { %v2507_v29 = vmul.f32 20.0, %v2499_v59  ;;  %v2508_v12 = vmul.f32 20.0, %v2500_v7  ;;  %v2504_v25 = vsub.f32 %v4791_v33, %v4394_v51  ;;  %v2509_v2 = vmul.f32 20.0, %v2501_v6  ;;  %v564_v19 = vpop.xlane.xlu1 %563 }
 0x26a   :  { %v1932_v44 = vadd.f32 %v1931_v50, %v1930_v35  ;;  %v1945_v48 = vmul.f32 %v4338_v56, %v4058_v28  ;;  %v2513_v57 = vmul.f32 1.442695, %v2505_v37  ;;  %v2515_v31 = vmul.f32 1.442695, %v2506_v32 }
 0x26b   :  { %v2517_v5 = vmul.f32 1.442695, %v2507_v29  ;;  %v1269_v63 = vadd.f32 %v1268_v62, %v1267_v14  ;;  %v2510_v60 = vmul.f32 20.0, %v2502_v58  ;;  %v2519_v45 = vmul.f32 1.442695, %v2508_v12 }
 0x26c   :  { %v1385_v54 = vadd.f32 %v1384_v42, %v1383_v0  ;;  %v4422_v61 = vsel %vm565_vm1, %v4392_v47, 0.0  ;;  %v2511_v16 = vmul.f32 20.0, %v2503_v4  ;;  %2922 = vpow2.f32 %v2513_v57 }
 0x26d   :  { %v584_v59 = vmul.f32 0.0009765625, %v564_v19  ;;  %1270 = vadd.xlane.f32.xlu1 %v1269_v63  ;;  %v1946_v50 = vmul.f32 %v4344_v38, %v4065_v17  ;;  %v2512_v35 = vmul.f32 20.0, %v2504_v25  ;;  %2924 = vpow2.f32 %v2515_v31 }
 0x26e   :  { %v2521_v7 = vmul.f32 1.442695, %v2509_v2  ;;  %v1947_v62 = vmul.f32 %v4350_v36, %v4091_v43  ;;  %2926 = vpow2.f32 %v2517_v5  ;;  %v1934_v42 = vadd.f32 %v1933_v55, %v1932_v44 }
 0x26f   :  { %2688 = vst.msk [vmem:[%s4674_s8 - $0x4] sm:$0xf0] %vm2687_vm3, %v584_v59  ;;  %v1952_v14 = vsel %vm565_vm1, %v1944_v11, 0.0  ;;  %v1953_v0 = vsel %vm565_vm1, %v1945_v48, 0.0  ;;  %2928 = vpow2.f32 %v2519_v45  ;;  %v2523_v6 = vmul.f32 1.442695, %v2510_v60 }
 0x270   :  { %v1387_v58 = vadd.f32 %v1386_v21, %v1385_v54  ;;  %v1954_v4 = vadd.f32 %v1953_v0, %v1952_v14  ;;  %v2525_v37 = vmul.f32 1.442695, %v2511_v16  ;;  %v1948_v5 = vmul.f32 %v4357_v22, %v4095_v27 }
 0x271   :  { %650 = vadd.xlane.f32.xlu1 %v4223_v26  ;;  %v1949_v32 = vmul.f32 %v4362_v52, %v4108_v46  ;;  %v1955_v29 = vsel %vm565_vm1, %v1946_v50, 0.0  ;;  %2930 = vpow2.f32 %v2521_v7  ;;  %v2527_v55 = vmul.f32 1.442695, %v2512_v35 }
 0x272   :  { %v1950_v11 = vmul.f32 %v4369_v34, %v4112_v8  ;;  %v1956_v45 = vadd.f32 %v1955_v29, %v1954_v4  ;;  %v1936_v60 = vadd.f32 %v1935_v1, %v1934_v42  ;;  %v1957_v54 = vsel %vm565_vm1, %v1947_v62, 0.0  ;;  %v4793_v4 = vld [vmem:[#allocation24_spill] sm:$0xff] }
 0x273   :  { %v1970_v26 = vmul.f32 %v4334_v24, %v4087_v49  ;;  %v1971_v21 = vmul.f32 %v4338_v56, %v4100_v9  ;;  %2932 = vpow2.f32 %v2523_v6  ;;  %v1389_v12 = vadd.f32 %v4382_v13, %v1387_v58 }
 0x274   :  { %v1958_v33 = vadd.f32 %v1957_v54, %v1956_v45  ;;  %v1972_v25 = vmul.f32 %v4344_v38, %v4104_v15  ;;  %2934 = vpow2.f32 %v2525_v37  ;;  %v1951_v1 = vmul.f32 %v4392_v47, %v4163_v53 }
 0x275   :  { %717 = vadd.xlane.f32.xlu1 %v4225_v30  ;;  %v1959_v2 = vsel %vm565_vm1, %v1948_v5, 0.0  ;;  %v1961_v24 = vsel %vm565_vm1, %v1949_v32, 0.0  ;;  %v1973_v56 = vmul.f32 %v4350_v36, %v4116_v39  ;;  %v1978_v13 = vsel %vm565_vm1, %v1970_v26, 0.0  ;;  %v4795_v26 = vld [vmem:[#allocation25_spill] sm:$0xff] }
 0x276   :  { %v1960_v19 = vadd.f32 %v1959_v2, %v1958_v33  ;;  %v1979_v44 = vsel %vm565_vm1, %v1971_v21, 0.0  ;;  %v4459_v48 = vpop.eup %2922  ;;  %2936 = vpow2.f32 %v2527_v55  ;;  %v1938_v30 = vadd.f32 %v4398_v40, %v1936_v60 }
 0x277   :  { %v1963_v38 = vsel %vm565_vm1, %v1950_v11, 0.0  ;;  %v1980_v57 = vadd.f32 %v1979_v44, %v1978_v13  ;;  %v4463_v31 = vpop.eup %2924  ;;  %v1974_v16 = vmul.f32 %v4357_v22, %v4120_v20  ;;  %v1975_v36 = vmul.f32 %v4362_v52, %v4124_v41  ;;  %v4794_v11 = vld [vmem:[#allocation3_spill] sm:$0xff]  ;;  %v4796_v44 = vld [vmem:[#allocation26_spill] sm:$0xff] }
 0x278   :  { %v1962_v63 = vadd.f32 %v1961_v24, %v1960_v19  ;;  %v1981_v59 = vsel %vm565_vm1, %v1972_v25, 0.0  ;;  %v4470_v50 = vpop.eup %2926  ;;  %v1976_v40 = vmul.f32 %v4369_v34, %v4168_v23  ;;  %v2529_v7 = vsel %vm565_vm1, %v4459_v48, 0.0 }
 0x279   :  { %784 = vadd.xlane.f32.xlu1 %v4235_v3  ;;  %v1982_v35 = vadd.f32 %v1981_v59, %v1980_v57  ;;  %v2530_v62 = vsel %vm565_vm1, %v4463_v31, 0.0  ;;  %v4479_v22 = vpop.eup %2928  ;;  %v1977_v52 = vmul.f32 %v4392_v47, %v4177_v18  ;;  %v1983_v42 = vsel %vm565_vm1, %v1973_v56, 0.0  ;;  %v4792_v3 = vld [vmem:[#allocation23_spill] sm:$0xff] }
 0x27a   :  { %v2531_v14 = vadd.f32 %v2530_v62, %v2529_v7  ;;  %v1606_v0 = vadd.f32 %v4792_v3, %v4283_v10  ;;  %v1964_v6 = vadd.f32 %v1963_v38, %v1962_v63  ;;  %v2532_v58 = vsel %vm565_vm1, %v4470_v50, 0.0  ;;  %v4798_v62 = vld [vmem:[#allocation29_spill] sm:$0xff]  ;;  %v4799_v3 = vld [vmem:[#allocation28_spill] sm:$0xff] }
 0x27b   :  { %v1984_v34 = vadd.f32 %v1983_v42, %v1982_v35  ;;  %v1608_v37 = vadd.f32 %v4793_v4, %v4283_v10  ;;  %v4490_v5 = vpop.eup %2930  ;;  %v1940_v32 = vadd.f32 %v4422_v61, %v1938_v30  ;;  %v1965_v47 = vsel %vm565_vm1, %v1951_v1, 0.0 }
 0x27c   :  { %v1985_v29 = vsel %vm565_vm1, %v1974_v16, 0.0  ;;  %v2533_v55 = vadd.f32 %v2532_v58, %v2531_v14  ;;  %v1987_v60 = vsel %vm565_vm1, %v1975_v36, 0.0  ;;  %v2534_v54 = vsel %vm565_vm1, %v4479_v22, 0.0  ;;  %v4797_v16 = vld [vmem:[#allocation27_spill] sm:$0xff] }
 0x27d   :  { %1338 = vadd.xlane.f32.xlu1 %v4794_v11  ;;  %v1986_v45 = vadd.f32 %v1985_v29, %v1984_v34  ;;  %v1683_v21 = vadd.f32 %v4795_v26, %v4283_v10  ;;  %v4501_v33 = vpop.eup %2932  ;;  %v1989_v61 = vsel %vm565_vm1, %v1976_v40, 0.0  ;;  %v1991_v25 = vsel %vm565_vm1, %v1977_v52, 0.0 }
 0x27e   :  { %v2535_v1 = vadd.f32 %v2534_v54, %v2533_v55  ;;  %v1858_v2 = vsel %vm565_vm1, %v1606_v0, 0.0  ;;  %v4506_v24 = vpop.eup %2934  ;;  %v1254_v19 = vpop.xlane.xlu0 %1253  ;;  %v1966_v56 = vadd.f32 %v1965_v47, %v1964_v6  ;;  %v2536_v13 = vsel %vm565_vm1, %v4490_v5, 0.0  ;;  %v4800_v6 = vld [vmem:[#allocation4_spill] sm:$0xff] }
 0x27f   :  { %v1685_v30 = vadd.f32 %v4796_v44, %v4283_v10  ;;  %v1859_v38 = vsel %vm565_vm1, %v1608_v37, 0.0  ;;  %v1272_v57 = vmul.f32 0.0009765625, %v1254_v19  ;;  %v1760_v36 = vadd.f32 %v4797_v16, %v4283_v10  ;;  %v4801_v37 = vld [vmem:[#allocation30_spill] sm:$0xff] }
 0x280   :  { %v2537_v63 = vadd.f32 %v2536_v13, %v2535_v1  ;;  %v1860_v59 = vadd.f32 %v1859_v38, %v1858_v2  ;;  %v4515_v40 = vpop.eup %2936  ;;  %v1988_v35 = vadd.f32 %v1987_v60, %v1986_v45  ;;  %v2538_v7 = vsel %vm565_vm1, %v4501_v33, 0.0 }
 0x281   :  { %1390 = vadd.xlane.f32.xlu1 %v1389_v12  ;;  %v1762_v52 = vadd.f32 %v4798_v62, %v4283_v10  ;;  %v1861_v42 = vsel %vm565_vm1, %v1683_v21, 0.0  ;;  %2691 = vst.msk [vmem:[%s4674_s8 + $0x4] sm:$0xf0] %vm2687_vm3, %v1272_v57  ;;  %v2540_v14 = vsel %vm565_vm1, %v4506_v24, 0.0  ;;  %v1837_v12 = vadd.f32 %v4799_v3, %v4283_v10  ;;  %v4802_v3 = vld [vmem:[#allocation35_spill] sm:$0xff] }
 0x282   :  { %v1862_v0 = vadd.f32 %v1861_v42, %v1860_v59  ;;  %v2547_v34 = vmul.f32 %v4459_v48, %v4800_v6  ;;  %v1857_v58 = vpop.xlane.xlu0 %1856  ;;  %v2539_v4 = vadd.f32 %v2538_v7, %v2537_v63  ;;  %v1839_v47 = vadd.f32 %v4801_v37, %v4283_v10 }
 0x283   :  { %v1863_v29 = vsel %vm565_vm1, %v1685_v30, 0.0  ;;  %v2548_v55 = vmul.f32 %v4463_v31, %v4058_v28  ;;  %v1875_v11 = vmul.f32 0.0009765625, %v1857_v58  ;;  %v2542_v45 = vsel %vm565_vm1, %v4515_v40, 0.0  ;;  %v4804_v58 = vld [vmem:[#allocation36_spill] sm:$0xff] }
 0x284   :  { %v1864_v60 = vadd.f32 %v1863_v29, %v1862_v0  ;;  %v2549_v54 = vmul.f32 %v4470_v50, %v4065_v17  ;;  %v1990_v26 = vadd.f32 %v1989_v61, %v1988_v35  ;;  %v1865_v21 = vsel %vm565_vm1, %v1760_v36, 0.0  ;;  %v4803_v0 = vld [vmem:[#allocation37_spill] sm:$0xff] }
 0x285   :  { %1941 = vadd.xlane.f32.xlu1 %v1940_v32  ;;  %v1867_v1 = vsel %vm565_vm1, %v1762_v52, 0.0  ;;  %v2555_v2 = vsel %vm565_vm1, %v2547_v34, 0.0  ;;  %2693 = vst.msk [vmem:[%s4674_s8 + $0xc] sm:$0xf0] %vm2687_vm3, %v1875_v11  ;;  %v1869_v19 = vsel %vm565_vm1, %v1837_v12, 0.0  ;;  %v2550_v13 = vmul.f32 %v4479_v22, %v4091_v43 }
 0x286   :  { %v1866_v28 = vadd.f32 %v1865_v21, %v1864_v60  ;;  %v2556_v17 = vsel %vm565_vm1, %v2548_v55, 0.0  ;;  %v2541_v32 = vadd.f32 %v2540_v14, %v2539_v4  ;;  %v1871_v61 = vsel %vm565_vm1, %v1839_v47, 0.0  ;;  %v4807_v47 = vld [vmem:[#allocation45_spill] sm:$0xff]  ;;  %v4808_v55 = vld [vmem:[#allocation44_spill] sm:$0xff] }
 0x287   :  { %v2551_v44 = vmul.f32 %v4490_v5, %v4095_v27  ;;  %v2557_v30 = vadd.f32 %v2556_v17, %v2555_v2  ;;  %v2552_v57 = vmul.f32 %v4501_v33, %v4108_v46  ;;  %v2558_v63 = vsel %vm565_vm1, %v2549_v54, 0.0 }
 0x288   :  { %v1868_v38 = vadd.f32 %v1867_v1, %v1866_v28  ;;  %v2573_v16 = vmul.f32 %v4459_v48, %v4087_v49  ;;  %v1992_v43 = vadd.f32 %v1991_v25, %v1990_v26  ;;  %v2574_v59 = vmul.f32 %v4463_v31, %v4100_v9 }
 0x289   :  { %1967 = vadd.xlane.f32.xlu1 %v1966_v56  ;;  %v2559_v36 = vadd.f32 %v2558_v63, %v2557_v30  ;;  %v2575_v35 = vmul.f32 %v4470_v50, %v4104_v15  ;;  %v2553_v7 = vmul.f32 %v4506_v24, %v4112_v8  ;;  %v2560_v46 = vsel %vm565_vm1, %v2550_v13, 0.0 }
 0x28a   :  { %v1870_v27 = vadd.f32 %v1869_v19, %v1868_v38  ;;  %v2576_v62 = vmul.f32 %v4479_v22, %v4116_v39  ;;  %v2543_v52 = vadd.f32 %v2542_v45, %v2541_v32  ;;  %v2581_v48 = vsel %vm565_vm1, %v2573_v16, 0.0  ;;  %v4809_v45 = vld [vmem:[#allocation46_spill] sm:$0xff] }
 0x28b   :  { %v2561_v49 = vadd.f32 %v2560_v46, %v2559_v36  ;;  %v2582_v25 = vsel %vm565_vm1, %v2574_v59, 0.0  ;;  %v2562_v9 = vsel %vm565_vm1, %v2551_v44, 0.0  ;;  %v2564_v15 = vsel %vm565_vm1, %v2552_v57, 0.0 }
 0x28c   :  { %v1872_v56 = vadd.f32 %v1871_v61, %v1870_v27  ;;  %v2583_v31 = vadd.f32 %v2582_v25, %v2581_v48  ;;  %v2577_v8 = vmul.f32 %v4490_v5, %v4120_v20  ;;  %v2578_v39 = vmul.f32 %v4501_v33, %v4124_v41  ;;  %v4805_v20 = vld [vmem:[#allocation38_spill] sm:$0xff]  ;;  %v4806_v41 = vld [vmem:[#allocation43_spill] sm:$0xff] }
 0x28d   :  { %1993 = vadd.xlane.f32.xlu1 %v1992_v43  ;;  %v2563_v50 = vadd.f32 %v2562_v9, %v2561_v49  ;;  %v2584_v22 = vsel %vm565_vm1, %v2575_v35, 0.0  ;;  %v2586_v14 = vsel %vm565_vm1, %v2576_v62, 0.0  ;;  %v2209_v12 = vadd.f32 %v4802_v3, %v4283_v10 }
 0x28e   :  { %v2585_v42 = vadd.f32 %v2584_v22, %v2583_v31  ;;  %v2211_v6 = vadd.f32 %v4803_v0, %v4283_v10  ;;  %v2286_v4 = vadd.f32 %v4804_v58, %v4283_v10  ;;  %v2288_v5 = vadd.f32 %v4805_v20, %v4283_v10 }
 0x28f   :  { %v2565_v34 = vadd.f32 %v2564_v15, %v2563_v50  ;;  %v2363_v33 = vadd.f32 %v4806_v41, %v4283_v10  ;;  %v2365_v29 = vadd.f32 %v4807_v47, %v4283_v10  ;;  %v2440_v11 = vadd.f32 %v4808_v55, %v4283_v10 }
 0x290   :  { %v2587_v37 = vadd.f32 %v2586_v14, %v2585_v42  ;;  %v2442_v60 = vadd.f32 %v4809_v45, %v4283_v10  ;;  %v2554_v54 = vmul.f32 %v4515_v40, %v4163_v53  ;;  %v2588_v26 = vsel %vm565_vm1, %v2577_v8, 0.0 }
 0x291   :  { %2544 = vadd.xlane.f32.xlu1 %v2543_v52  ;;  %v2461_v21 = vsel %vm565_vm1, %v2209_v12, 0.0  ;;  %v2462_v1 = vsel %vm565_vm1, %v2211_v6, 0.0  ;;  %v2566_v2 = vsel %vm565_vm1, %v2553_v7, 0.0  ;;  %v2579_v28 = vmul.f32 %v4506_v24, %v4168_v23  ;;  %v4810_v12 = vld [vmem:[#allocation47_spill] sm:$0xff] }
 0x292   :  { %v2589_v19 = vadd.f32 %v2588_v26, %v2587_v37  ;;  %v2463_v13 = vadd.f32 %v2462_v1, %v2461_v21  ;;  %v2567_v17 = vadd.f32 %v2566_v2, %v2565_v34  ;;  %v2590_v10 = vsel %vm565_vm1, %v2578_v39, 0.0  ;;  %v4811_v37 = vld [vmem:[#allocation2_spill] sm:$0xff]  ;;  %v4812_v21 = vld [vmem:[#allocation5_spill] sm:$0xff] }
 0x293   :  { %v2464_v32 = vsel %vm565_vm1, %v2286_v4, 0.0  ;;  %v2466_v44 = vsel %vm565_vm1, %v2288_v5, 0.0  ;;  %v2568_v30 = vsel %vm565_vm1, %v2554_v54, 0.0  ;;  %v2580_v38 = vmul.f32 %v4515_v40, %v4177_v18 }
 0x294   :  { %v2591_v61 = vadd.f32 %v2590_v10, %v2589_v19  ;;  %v2465_v53 = vadd.f32 %v2464_v32, %v2463_v13  ;;  %v2592_v57 = vsel %vm565_vm1, %v2579_v28, 0.0  ;;  %v2569_v24 = vadd.f32 %v2568_v30, %v2567_v17 }
 0x295   :  { %1873 = vadd.xlane.f32.xlu1 %v1872_v56  ;;  %v2468_v16 = vsel %vm565_vm1, %v2363_v33, 0.0  ;;  %v2470_v36 = vsel %vm565_vm1, %v2365_v29, 0.0  ;;  %v2594_v59 = vsel %vm565_vm1, %v2580_v38, 0.0  ;;  %v2472_v7 = vsel %vm565_vm1, %v2440_v11, 0.0 }
 0x296   :  { %v2467_v23 = vadd.f32 %v2466_v44, %v2465_v53  ;;  %v2593_v63 = vadd.f32 %v2592_v57, %v2591_v61  ;;  %v2474_v18 = vsel %vm565_vm1, %v2442_v60, 0.0 }
 0x298   :  { %v2469_v43 = vadd.f32 %v2468_v16, %v2467_v23  ;;  %v2595_v27 = vadd.f32 %v2594_v59, %v2593_v63 }
 0x299   :  { %2570 = vadd.xlane.f32.xlu1 %v2569_v24 }
 0x29a   :  { %v2471_v35 = vadd.f32 %v2470_v36, %v2469_v43 }
 0x29c   :  { %v2473_v46 = vadd.f32 %v2472_v7, %v2471_v35 }
 0x29d   :  { %2596 = vadd.xlane.f32.xlu1 %v2595_v27 }
 0x29e   :  { %v2475_v40 = vadd.f32 %v2474_v18, %v2473_v46 }
 0x2a1   :  { %2476 = vadd.xlane.f32.xlu1 %v2475_v40 }
 0x2e2   :  { %v1365_v62 = vpop.xlane.xlu0 %1364 }
 0x2e6   :  { %v2460_v52 = vpop.xlane.xlu0 %2459 }
 0x2e7   :  { %v2478_v49 = vmul.f32 0.0009765625, %v2460_v52 }
 0x2e9   :  { %2695 = vst.msk [vmem:[%s4674_s8 + $0x14] sm:$0xf0] %vm2687_vm3, %v2478_v49 }
 0x2f2   :  { %v582_v48 = vpop.xlane.xlu1 %581 }
 0x2f3   :  { %v585_v25 = vmul.f32 0.0009765625, %v582_v48 }
 0x2f5   :  { %2690 = vst.msk [vmem:[%s4674_s8 + $0x4] sm:$0xf] %vm2689_vm4, %v585_v25 }
 0x2fa   :  { %v1271_v56 = vpop.xlane.xlu1 %1270 }
 0x2fb   :  { %v1273_v9 = vmul.f32 0.0009765625, %v1271_v56 }
 0x2fd   :  { %2692 = vst.msk [vmem:[%s4674_s8 + $0xc] sm:$0xf] %vm2689_vm4, %v1273_v9 }
 0x2fe   :  { %v651_v15 = vpop.xlane.xlu1 %650 }
 0x2ff   :  { %2938 = vrcp.f32 %v651_v15 }
 0x302   :  { %v718_v31 = vpop.xlane.xlu1 %717 }
 0x306   :  { %v785_v50 = vpop.xlane.xlu1 %784 }
 0x309   :  { %v2939_v8 = vpop.eup %2938 }
 0x30a   :  { %v719_v39 = vmul.f32 %v2939_v8, %v718_v31  ;;  %v786_v22 = vmul.f32 %v2939_v8, %v785_v50  ;;  %v1339_v42 = vpop.xlane.xlu1 %1338 }
 0x30b   :  { %2940 = vrcp.f32 %v1339_v42 }
 0x30c   :  { %v788_v14 = vsel %vm787_vm5, %v719_v39, %v786_v22 }
 0x30d   :  { %v790_v3 = vsel %vm789_vm6, %v788_v14, 1.0 }
 0x30e   :  { %v792_v0 = vsel %vm791_vm7, %v790_v3, %v4810_v12  ;;  %v1391_v6 = vpop.xlane.xlu1 %1390 }
 0x30f   :  { %2683 = vst.msk [vmem:[%s4675_s7] sm:$0xf] %vm2682_vm8, %v792_v0 }
 0x312   :  { %v1942_v34 = vpop.xlane.xlu1 %1941 }
 0x313   :  { %2942 = vrcp.f32 %v1942_v34 }
 0x315   :  { %v2941_v58 = vpop.eup %2940 }
 0x316   :  { %v1366_v4 = vmul.f32 %v2941_v58, %v1365_v62  ;;  %v1392_v20 = vmul.f32 %v2941_v58, %v1391_v6  ;;  %v1968_v5 = vpop.xlane.xlu1 %1967 }
 0x318   :  { %v1393_v41 = vsel %vm787_vm5, %v1366_v4, %v1392_v20 }
 0x319   :  { %v1394_v33 = vsel %vm789_vm6, %v1393_v41, 1.0 }
 0x31a   :  { %v1395_v47 = vsel %vm791_vm7, %v1394_v33, %v4811_v37  ;;  %v1994_v29 = vpop.xlane.xlu1 %1993 }
 0x31b   :  { %2684 = vst.msk [vmem:[%s4675_s7 + $0x4] sm:$0xf] %vm2682_vm8, %v1395_v47 }
 0x31d   :  { %v2943_v55 = vpop.eup %2942 }
 0x31e   :  { %v1969_v11 = vmul.f32 %v2943_v55, %v1968_v5  ;;  %v1995_v45 = vmul.f32 %v2943_v55, %v1994_v29  ;;  %v2545_v60 = vpop.xlane.xlu1 %2544 }
 0x31f   :  { %2944 = vrcp.f32 %v2545_v60 }
 0x320   :  { %v1996_v54 = vsel %vm787_vm5, %v1969_v11, %v1995_v45 }
 0x321   :  { %v1997_v26 = vsel %vm789_vm6, %v1996_v54, 1.0 }
 0x322   :  { %v1998_v1 = vsel %vm791_vm7, %v1997_v26, %v4812_v21  ;;  %v1874_v2 = vpop.xlane.xlu1 %1873 }
 0x323   :  { %2685 = vst.msk [vmem:[%s4675_s7 + $0x8] sm:$0xf] %vm2682_vm8, %v1998_v1  ;;  %v1876_v28 = vmul.f32 0.0009765625, %v1874_v2 }
 0x325   :  { %2694 = vst.msk [vmem:[%s4674_s8 + $0x14] sm:$0xf] %vm2689_vm4, %v1876_v28 }
 0x326   :  { %v2571_v19 = vpop.xlane.xlu1 %2570 }
 0x329   :  { %v2945_v13 = vpop.eup %2944 }
 0x32a   :  { %v2572_v17 = vmul.f32 %v2945_v13, %v2571_v19  ;;  %v2597_v10 = vpop.xlane.xlu1 %2596 }
 0x32b   :  { %v2598_v32 = vmul.f32 %v2945_v13, %v2597_v10 }
 0x32d   :  { %v2599_v61 = vsel %vm787_vm5, %v2572_v17, %v2598_v32 }
 0x32e   :  { %v2600_v53 = vsel %vm789_vm6, %v2599_v61, 1.0  ;;  %v2477_v44 = vpop.xlane.xlu1 %2476 }
 0x32f   :  { %v2601_v30 = vsel %vm791_vm7, %v2600_v53, %v4394_v51  ;;  %v2479_v38 = vmul.f32 0.0009765625, %v2477_v44 }
 0x330   :  { %2686 = vst.msk [vmem:[%s4675_s7 + $0xc] sm:$0xf] %vm2682_vm8, %v2601_v30 }
 0x331   :  { %2696 = vst.msk [vmem:[%s4674_s8 + $0x1c] sm:$0xf] %vm2689_vm4, %v2479_v38 }

// kernel: custom-call.38
= control target key start
LH: loop header
LB: loop body
LE: loop exit
PB: predicated region body
PF: predicated region fallthrough
CT: control target
= control target key end

     0   :  { %s343_s6 = smov 0   ;;  %s345_s7 = smov 0   ;;  %s390_s0 = inlined_call_operand.vmem [shape: f32[8,1,3,3], index: 0, kind: input, shape index: {}]   ;;  %s391_s1 = inlined_call_operand.vmem [shape: f32[8,1,3,3], index: 1, kind: output, shape index: {}]  }
   0x1   :  { %s347_s8 = smov 0  }
   0x2 LB: > { %s269_s9 = sadd.s32 4294967295, %s330_s8   ;;  %s33_s10 = sadd.s32 1, %s326_s7  ;;  %s330_s8 = sphi %s347_s8, %s7_s8   ;;  %s326_s7 = sphi %s345_s7, %s393_s7   ;;  %s322_s6 = sphi %s343_s6, %s392_s6  }
   0x3   : > { %p35_p0 = scmp.ge.s32.totalorder %s33_s10, 8  ;;  %p271_p1 = scmp.ge.s32.totalorder %s330_s8, 8 }
   0x4   : > { %s49_s11 = sand.u32 (!%p271_p1), 1, %s330_s8   ;;  %s273_s12 = sshll.u32 (!%p271_p1), %s326_s7, 2 }
   0x5   : > { %s395_s10 = smov (%p35_p0, %s33_s10), 0  ;;  %47 = sbr.rel (%p271_p1) target bundleno = 12 (0xc), region = 16 }
   0x6   : > { %s272_s13 = sshll.u32 (!%p271_p1), %s49_s11, 2  ;;  %s56_s16 = scalar_lea.vmem (!%p271_p1), %s390_s0, %s273_s12 }
   0x7   : > { %v72_v0 = vld [vmem:[%s56_s16] sm:$0xf] (!%p271_p1)  ;;  %s51_s17 = scalar_lea.vmem (!%p271_p1), [#allocation1], %s272_s13 }
   0x8   : > { %73 = vst [vmem:[%s51_s17] sm:$0xf] (!%p271_p1), %v72_v0 }
   0xc PF: > { %p274_p2 = scmp.ge.s32.totalorder %s330_s8, 1  ;;  %p89_p3 = scmp.lt.s32.totalorder %s330_s8, 9 }
   0xe   : > { %p90_p4 = pnand %p274_p2, %p89_p3 }
  0x10   : > { %93 = sbr.rel (%p90_p4) target bundleno = 511 (0x1ff), region = 50 }
  0x17   : > { %s370_s18 = sand.u32 1, %s269_s9   ;;  %v111_v1 = vlaneseq  ;;  %v332_v11 = vmov -1.0   ;;  %s278_s22 = sshll.u32 %s322_s6, 2 }
  0x18   : > { %s275_s19 = sshll.u32 %s370_s18, 2  ;;  %s178_s25 = scalar_lea.vmem %s391_s1, %s278_s22 }
  0x19   : > { %s102_s20 = scalar_lea.vmem [#allocation1], %s275_s19  ;;  %v112_v3 = vand.u32 127, %v111_v1  ;;  %v115_v4 = vshrl.u32 %v111_v1, 7  ;;  %s106_s21 = scalar_lea.vmem [#allocation3], %s275_s19 }
  0x1a   : > { %v109_v2 = vld [vmem:[%s102_s20] sm:$0xf] }
  0x1b   : > { %110 = vst [vmem:[#allocation0] sm:$0xf] %v109_v2  ;;  %vm113_vm0 = vcmp.lt.s32.totalorder %v112_v3, 3  ;;  %vm122_vm1 = vcmp.ge.s32.totalorder %v115_v4, %v112_v3  ;;  %vm117_vm2 = vcmp.eq.s32.totalorder %v115_v4, %v112_v3  ;;  %vm136_vm4 = vcmp.eq.s32.totalorder %v112_v3, 0 }
  0x1c   : > { %vm123_vm3 = vmand %vm122_vm1, %vm113_vm0  ;;  %vm133_vm5 = vcmp.eq.s32.totalorder %v112_v3, %v115_v4  ;;  %v137_v12 = vsel %vm136_vm4, 1.0, %v332_v11  ;;  %vm144_vm6 = vcmp.eq.s32.totalorder %v112_v3, 1  ;;  %vm154_vm7 = vcmp.eq.s32.totalorder %v112_v3, 2 }
  0x1d   : > { %v138_v13 = vsel %vm133_vm5, %v137_v12, 0.0 }
  0x22   : > { %v118_v5 = vld [vmem:[#allocation0] sm:$0xff] }
  0x23   : > { %v119_v6 = vsel %vm117_vm2, %v118_v5, 0.0  ;;  %v124_v7 = vsel %vm123_vm3, %v118_v5, 0.0 }
  0x24   : > { %120 = vadd.xlane.f32.xlu0 %v119_v6 }
  0xb1   : > { %v121_v8 = vpop.xlane.xlu0 %120 }
  0xb2   : > { %306 = vrcp.f32 %v121_v8  ;;  %vm161_vm8 = vweird.f32 %v121_v8 }
  0xbc   : > { %v307_v9 = vpop.eup %306 }
  0xbd   : > { %v126_v10 = vmul.f32 %v307_v9, %v124_v7 }
  0xbf   : > { %127 = vst [vmem:[#allocation4] sm:$0xff] %v126_v10 }
  0xc6   : > { %v140_v14 = vld [vmem:[#allocation4 + $0x1] ss:$0 sm:$0xff]  ;;  %v150_v17 = vld [vmem:[#allocation4 + $0x2] ss:$0 sm:$0xff] }
  0xc7   : > { %v141_v15 = vxor.u32 2147483648, %v140_v14  ;;  %v151_v19 = vxor.u32 2147483648, %v150_v17 }
  0xc9   : > { %v145_v16 = vmul.f32 %v141_v15, %v138_v13 }
  0xcb   : > { %146 = vadd.xlane.f32.xlu0 %v145_v16 }
 0x158   : > { %v147_v18 = vpop.xlane.xlu0 %146 }
 0x159   : > { %v148_v20 = vsel %vm144_vm6, %v147_v18, %v138_v13 }
 0x15a   : > { %v155_v21 = vmul.f32 %v151_v19, %v148_v20 }
 0x15c   : > { %156 = vadd.xlane.f32.xlu1 %v155_v21 }
 0x1e9   : > { %v157_v22 = vpop.xlane.xlu1 %156 }
 0x1ea   : > { %v158_v23 = vsel %vm154_vm7, %v157_v22, %v148_v20 }
 0x1eb   : > { %v160_v24 = vmul.f32 %v307_v9, %v158_v23 }
 0x1ed   : > { %v162_v25 = vsel %vm161_vm8, %v158_v23, %v160_v24 }
 0x1ee   : > { %163 = vst [vmem:[#allocation2] sm:$0xff] %v162_v25 }
 0x1f5   : > { %v167_v26 = vld [vmem:[#allocation2] sm:$0xf] }
 0x1f6   : > { %169 = vst [vmem:[%s106_s21] sm:$0xf] %v167_v26 }
 0x1fd   : > { %v194_v27 = vld [vmem:[%s106_s21] sm:$0xf] }
 0x1fe   : > { %195 = vst [vmem:[%s178_s25] sm:$0xf] %v194_v27 }
 0x1ff PF: > { %s7_s8 = sadd.s32 1, %s330_s8   ;;  %s392_s6 = smov %s326_s7 }
 0x200   : > { %p4_p5 = scmp.ge.s32.totalorder %s7_s8, 10   ;;  %s393_s7 = smov %s395_s10 }
 0x202   :  { %6 = sbr.rel (!%p4_p5) target bundleno = 2 (0x2), region = 112 }

// kernel: custom-call.37
= control target key start
LH: loop header
LB: loop body
LE: loop exit
PB: predicated region body
PF: predicated region fallthrough
CT: control target
= control target key end

     0   :  { %s342_s6 = smov 0   ;;  %s344_s7 = smov 0   ;;  %s389_s0 = inlined_call_operand.vmem [shape: f32[8,1,3,3], index: 0, kind: input, shape index: {}]   ;;  %s390_s1 = inlined_call_operand.vmem [shape: f32[8,1,3,3], index: 1, kind: output, shape index: {}]  }
   0x1   :  { %s346_s8 = smov 0  }
   0x2 LB: > { %s268_s9 = sadd.s32 4294967295, %s329_s8   ;;  %s33_s10 = sadd.s32 1, %s325_s7  ;;  %s329_s8 = sphi %s346_s8, %s7_s8   ;;  %s325_s7 = sphi %s344_s7, %s392_s7   ;;  %s321_s6 = sphi %s342_s6, %s391_s6  }
   0x3   : > { %p35_p0 = scmp.ge.s32.totalorder %s33_s10, 8  ;;  %p270_p1 = scmp.ge.s32.totalorder %s329_s8, 8 }
   0x4   : > { %s49_s11 = sand.u32 (!%p270_p1), 1, %s329_s8   ;;  %s272_s12 = sshll.u32 (!%p270_p1), %s325_s7, 2 }
   0x5   : > { %s394_s10 = smov (%p35_p0, %s33_s10), 0  ;;  %47 = sbr.rel (%p270_p1) target bundleno = 12 (0xc), region = 16 }
   0x6   : > { %s271_s13 = sshll.u32 (!%p270_p1), %s49_s11, 2  ;;  %s56_s16 = scalar_lea.vmem (!%p270_p1), %s389_s0, %s272_s12 }
   0x7   : > { %v72_v0 = vld [vmem:[%s56_s16] sm:$0xf] (!%p270_p1)  ;;  %s51_s17 = scalar_lea.vmem (!%p270_p1), [#allocation1], %s271_s13 }
   0x8   : > { %73 = vst [vmem:[%s51_s17] sm:$0xf] (!%p270_p1), %v72_v0 }
   0xc PF: > { %p273_p2 = scmp.ge.s32.totalorder %s329_s8, 1  ;;  %p89_p3 = scmp.lt.s32.totalorder %s329_s8, 9 }
   0xe   : > { %p90_p4 = pnand %p273_p2, %p89_p3 }
  0x10   : > { %93 = sbr.rel (%p90_p4) target bundleno = 511 (0x1ff), region = 50 }
  0x17   : > { %s369_s18 = sand.u32 1, %s268_s9   ;;  %v111_v1 = vlaneseq  ;;  %v331_v11 = vmov -1.0   ;;  %s277_s22 = sshll.u32 %s321_s6, 2 }
  0x18   : > { %s274_s19 = sshll.u32 %s369_s18, 2  ;;  %s177_s25 = scalar_lea.vmem %s390_s1, %s277_s22 }
  0x19   : > { %s102_s20 = scalar_lea.vmem [#allocation1], %s274_s19  ;;  %v112_v3 = vand.u32 127, %v111_v1  ;;  %v115_v4 = vshrl.u32 %v111_v1, 7  ;;  %s106_s21 = scalar_lea.vmem [#allocation3], %s274_s19 }
  0x1a   : > { %v109_v2 = vld [vmem:[%s102_s20] sm:$0xf] }
  0x1b   : > { %110 = vst [vmem:[#allocation0] sm:$0xf] %v109_v2  ;;  %vm113_vm0 = vcmp.lt.s32.totalorder %v112_v3, 3  ;;  %vm122_vm1 = vcmp.le.s32.totalorder %v115_v4, %v112_v3  ;;  %vm117_vm2 = vcmp.eq.s32.totalorder %v115_v4, %v112_v3  ;;  %vm136_vm4 = vcmp.eq.s32.totalorder %v112_v3, 2 }
  0x1c   : > { %vm123_vm3 = vmand %vm122_vm1, %vm113_vm0  ;;  %vm133_vm5 = vcmp.eq.s32.totalorder %v112_v3, %v115_v4  ;;  %v137_v12 = vsel %vm136_vm4, 1.0, %v331_v11  ;;  %vm144_vm6 = vcmp.eq.s32.totalorder %v112_v3, 1  ;;  %vm153_vm7 = vcmp.eq.s32.totalorder %v112_v3, 0 }
  0x1d   : > { %v138_v13 = vsel %vm133_vm5, %v137_v12, 0.0 }
  0x22   : > { %v118_v5 = vld [vmem:[#allocation0] sm:$0xff] }
  0x23   : > { %v119_v6 = vsel %vm117_vm2, %v118_v5, 0.0  ;;  %v124_v7 = vsel %vm123_vm3, %v118_v5, 0.0 }
  0x24   : > { %120 = vadd.xlane.f32.xlu0 %v119_v6 }
  0xb1   : > { %v121_v8 = vpop.xlane.xlu0 %120 }
  0xb2   : > { %305 = vrcp.f32 %v121_v8  ;;  %vm160_vm8 = vweird.f32 %v121_v8 }
  0xbc   : > { %v306_v9 = vpop.eup %305 }
  0xbd   : > { %v126_v10 = vmul.f32 %v306_v9, %v124_v7 }
  0xbf   : > { %127 = vst [vmem:[#allocation4] sm:$0xff] %v126_v10 }
  0xc6   : > { %v140_v14 = vld [vmem:[#allocation4 + $0x1] ss:$0 sm:$0xff]  ;;  %v149_v17 = vld [vmem:[#allocation4] ss:$0 sm:$0xff] }
  0xc7   : > { %v141_v15 = vxor.u32 2147483648, %v140_v14  ;;  %v150_v19 = vxor.u32 2147483648, %v149_v17 }
  0xc9   : > { %v145_v16 = vmul.f32 %v141_v15, %v138_v13 }
  0xcb   : > { %146 = vadd.xlane.f32.xlu0 %v145_v16 }
 0x158   : > { %v147_v18 = vpop.xlane.xlu0 %146 }
 0x159   : > { %v148_v20 = vsel %vm144_vm6, %v147_v18, %v138_v13 }
 0x15a   : > { %v154_v21 = vmul.f32 %v150_v19, %v148_v20 }
 0x15c   : > { %155 = vadd.xlane.f32.xlu1 %v154_v21 }
 0x1e9   : > { %v156_v22 = vpop.xlane.xlu1 %155 }
 0x1ea   : > { %v157_v23 = vsel %vm153_vm7, %v156_v22, %v148_v20 }
 0x1eb   : > { %v159_v24 = vmul.f32 %v306_v9, %v157_v23 }
 0x1ed   : > { %v161_v25 = vsel %vm160_vm8, %v157_v23, %v159_v24 }
 0x1ee   : > { %162 = vst [vmem:[#allocation2] sm:$0xff] %v161_v25 }
 0x1f5   : > { %v166_v26 = vld [vmem:[#allocation2] sm:$0xf] }
 0x1f6   : > { %168 = vst [vmem:[%s106_s21] sm:$0xf] %v166_v26 }
 0x1fd   : > { %v193_v27 = vld [vmem:[%s106_s21] sm:$0xf] }
 0x1fe   : > { %194 = vst [vmem:[%s177_s25] sm:$0xf] %v193_v27 }
 0x1ff PF: > { %s7_s8 = sadd.s32 1, %s329_s8   ;;  %s391_s6 = smov %s325_s7 }
 0x200   : > { %p4_p5 = scmp.ge.s32.totalorder %s7_s8, 10   ;;  %s392_s7 = smov %s394_s10 }
 0x202   :  { %6 = sbr.rel (!%p4_p5) target bundleno = 2 (0x2), region = 111 }

// kernel: sub.4
= control target key start
LH: loop header
LB: loop body
LE: loop exit
PB: predicated region body
PF: predicated region fallthrough
CT: control target
= control target key end

     0   :  { %s34_s0 = inlined_call_operand.vmem [shape: f32[8,3], index: 0, kind: input, shape index: {}]   ;;  %s35_s1 = inlined_call_operand.vmem [shape: f32[8,3], index: 1, kind: input, shape index: {}]   ;;  %s36_s2 = inlined_call_operand.vmem [shape: f32[8,3], index: 2, kind: output, shape index: {}]  }
   0x1   :  { %v3_v0 = vld [vmem:[%s34_s0] sm:$0xff] }
   0x2   :  { %v4_v1 = vld [vmem:[%s35_s1] sm:$0xff] }
   0x3   :  { %v7_v2 = vsub.f32 %v3_v0, %v4_v1 }
   0x5   :  { %9 = vst [vmem:[%s36_s2] sm:$0xff] %v7_v2 }

// kernel: integer_pow.43
= control target key start
LH: loop header
LB: loop body
LE: loop exit
PB: predicated region body
PF: predicated region fallthrough
CT: control target
= control target key end

     0   :  { %s34_s0 = inlined_call_operand.vmem [shape: f32[2,4], index: 0, kind: input, shape index: {}, may-alias: {0,1}]   ;;  %s35_s1 = inlined_call_operand.vmem [shape: f32[2,4], index: 1, kind: input, shape index: {}, may-alias: {0,1}]   ;;  %s36_s2 = inlined_call_operand.vmem [shape: f32[2,4], index: 2, kind: output, shape index: {}]  }
   0x1   :  { %v3_v0 = vld [vmem:[%s34_s0] sm:$0x3] }
   0x2   :  { %v4_v1 = vld [vmem:[%s35_s1] sm:$0x3] }
   0x3   :  { %v7_v2 = vmul.f32 %v4_v1, %v3_v0 }
   0x5   :  { %9 = vst [vmem:[%s36_s2] sm:$0x3] %v7_v2 }

// kernel: _lambda_.3
= control target key start
LH: loop header
LB: loop body
LE: loop exit
PB: predicated region body
PF: predicated region fallthrough
CT: control target
= control target key end

     0   :  { %v958_v0 = vmov 0   ;;  %v959_v3 = vmov 1   ;;  %v960_v6 = vmov 839922192   ;;  %v46_v8 = vlaneseq  ;;  %s1579_s1 = inlined_call_operand.vmem [shape: f32[4,4,2], index: 1, kind: input, shape index: {}]   ;;  %s1580_s0 = inlined_call_operand.vmem [shape: f32[4,4,1024], index: 0, kind: input, shape index: {}]   ;;  %s1581_s3 = inlined_call_operand.vmem [shape: f32[4,4,1024], index: 3, kind: output, shape index: {0}]   ;;  %s1582_s2 = inlined_call_operand.vmem [shape: f32[2,1024], index: 2, kind: input, shape index: {}]   ;;  %s1583_s4 = inlined_call_operand.vmem [shape: f32[4,4,3], index: 4, kind: output, shape index: {1}]  }
   0x1   :  { %915 = vset.pattern.permute.xlu1 %v958_v0  ;;  %913 = vset.pattern.permute.xlu0 %v958_v0  ;;  %v33_v1 = vld [vmem:[%s1579_s1 + $0x4] sm:$0xf]  ;;  %v32_v2 = vld [vmem:[%s1579_s1] sm:$0xf]  ;;  %v34_v4 = vld [vmem:[%s1579_s1 + $0x8] sm:$0xf]  ;;  %v44_v7 = vunpack.c.l.s4 %v960_v6 }
   0x2   :  { %315 = vperm.xlu1 %915, %v33_v1   ;;  %41 = vperm.xlu0 %913, %v32_v2   ;;  %v35_v5 = vld [vmem:[%s1579_s1 + $0xc] sm:$0xf]  ;;  %v998_v10 = vshrl.u32 %v46_v8, 7  ;;  %v20_v15 = vld [vmem:[%s1580_s0 + $0x20] sm:$0xff]  ;;  %v22_v17 = vld [vmem:[%s1580_s0 + $0x30] sm:$0xff]  ;;  %vm86_vm0 = vcmask 1043456  }
   0x3   :  { %v45_v9 = vunpack.c.0.s8 %v44_v7  ;;  %v21_v16 = vld [vmem:[%s1580_s0 + $0x28] sm:$0xff]  ;;  %v23_v18 = vld [vmem:[%s1580_s0 + $0x38] sm:$0xff]  ;;  %v16_v19 = vld [vmem:[%s1580_s0] sm:$0xff]  ;;  %vm309_vm1 = vcmask 7168   ;;  %vm311_vm2 = vcmask 15360   ;;  %vm896_vm3 = vcmask 19456  }
   0x4   :  { %v17_v21 = vld [vmem:[%s1580_s0 + $0x8] sm:$0xff]  ;;  %v18_v22 = vld [vmem:[%s1580_s0 + $0x10] sm:$0xff]  ;;  %v19_v23 = vld [vmem:[%s1580_s0 + $0x18] sm:$0xff] }
   0x5   :  { %v1001_v11 = vsub.s32 %v45_v9, %v998_v10  ;;  %v28_v49 = vld [vmem:[%s1580_s0 + $0x60] sm:$0xff]  ;;  %v29_v50 = vld [vmem:[%s1580_s0 + $0x68] sm:$0xff]  ;;  %v30_v56 = vld [vmem:[%s1580_s0 + $0x70] sm:$0xff] }
   0x6   :  { %916 = vset.pattern.permute.xlu1 %v959_v3  ;;  %914 = vset.pattern.permute.xlu0 %v959_v3  ;;  %v31_v57 = vld [vmem:[%s1580_s0 + $0x78] sm:$0xff]  ;;  %v24_v58 = vld [vmem:[%s1580_s0 + $0x40] sm:$0xff]  ;;  %v25_v60 = vld [vmem:[%s1580_s0 + $0x48] sm:$0xff] }
   0x7   :  { %330 = vperm.xlu1 %916, %v33_v1   ;;  %56 = vperm.xlu0 %914, %v32_v2   ;;  %v26_v61 = vld [vmem:[%s1580_s0 + $0x50] sm:$0xff]  ;;  %v27_v62 = vld [vmem:[%s1580_s0 + $0x58] sm:$0xff] }
   0xb   :  { %917 = vset.pattern.permute.xlu1 %v958_v0  ;;  %519 = vperm.xlu0 %914, %v34_v4  }
   0xc   :  { %504 = vperm.xlu1 %917, %v34_v4  }
   0xf   :  { %708 = vperm.xlu0 %914, %v35_v5  }
  0x10   :  { %693 = vperm.xlu1 %917, %v35_v5  }
  0x81   :  { %v316_v12 = vpop.permute.xlu1 %315  ;;  %v42_v13 = vpop.permute.xlu0 %41 }
  0x82   :  { %v323_v14 = vrot.slane %v316_v12, %v1001_v11  ;;  %v49_v20 = vrot.slane %v42_v13, %v1001_v11 }
  0x84   :  { %v325_v24 = vmul.f32 %v323_v14, %v20_v15  ;;  %v326_v25 = vmul.f32 %v323_v14, %v21_v16  ;;  %v327_v28 = vmul.f32 %v323_v14, %v22_v17  ;;  %v328_v29 = vmul.f32 %v323_v14, %v23_v18 }
  0x85   :  { %v51_v32 = vmul.f32 %v49_v20, %v16_v19  ;;  %v52_v33 = vmul.f32 %v49_v20, %v17_v21  ;;  %v53_v34 = vmul.f32 %v49_v20, %v18_v22  ;;  %v54_v35 = vmul.f32 %v49_v20, %v19_v23 }
  0x86   :  { %v331_v26 = vpop.permute.xlu1 %330  ;;  %v57_v27 = vpop.permute.xlu0 %56 }
  0x87   :  { %v338_v30 = vrot.slane %v331_v26, %v1001_v11  ;;  %v64_v31 = vrot.slane %v57_v27, %v1001_v11 }
  0x89   :  { %v340_v36 = vmul.f32 %v338_v30, %v16_v19  ;;  %v341_v37 = vmul.f32 %v338_v30, %v17_v21  ;;  %v342_v38 = vmul.f32 %v338_v30, %v18_v22  ;;  %v343_v39 = vmul.f32 %v338_v30, %v19_v23 }
  0x8a   :  { %v66_v40 = vmul.f32 %v64_v31, %v20_v15  ;;  %v67_v41 = vmul.f32 %v64_v31, %v21_v16  ;;  %v68_v42 = vmul.f32 %v64_v31, %v22_v17  ;;  %v69_v43 = vmul.f32 %v64_v31, %v23_v18  ;;  %v520_v44 = vpop.permute.xlu0 %519 }
  0x8b   :  { %v1031_v45 = vadd.f32 %v340_v36, %v325_v24  ;;  %v1033_v46 = vadd.f32 %v341_v37, %v326_v25  ;;  %v1035_v47 = vadd.f32 %v342_v38, %v327_v28  ;;  %v1037_v48 = vadd.f32 %v343_v39, %v328_v29  ;;  %v505_v51 = vpop.permute.xlu1 %504 }
  0x8c   :  { %v1045_v52 = vadd.f32 %v66_v40, %v51_v32  ;;  %v1047_v53 = vadd.f32 %v67_v41, %v52_v33  ;;  %v1049_v54 = vadd.f32 %v68_v42, %v53_v34  ;;  %v1051_v55 = vadd.f32 %v69_v43, %v54_v35 }
  0x8d   :  { %884 = vst [vmem:[%s1581_s3 + $0x20] sm:$0xff] %v1031_v45  ;;  %885 = vst [vmem:[%s1581_s3 + $0x28] sm:$0xff] %v1033_v46  ;;  %v527_v59 = vrot.slane %v520_v44, %v1001_v11  ;;  %v512_v63 = vrot.slane %v505_v51, %v1001_v11  ;;  %v352_v0 = vcombine.high %v1031_v45, %v1031_v45  ;;  %v360_v5 = vsel %vm86_vm0, %v1031_v45, -inf }
  0x8e   :  { %886 = vst [vmem:[%s1581_s3 + $0x30] sm:$0xff] %v1035_v47  ;;  %887 = vst [vmem:[%s1581_s3 + $0x38] sm:$0xff] %v1037_v48  ;;  %v353_v1 = vcombine.high %v1033_v46, %v1033_v46  ;;  %v709_v2 = vpop.permute.xlu0 %708  ;;  %v354_v3 = vcombine.high %v1035_v47, %v1035_v47  ;;  %v355_v4 = vcombine.high %v1037_v48, %v1037_v48  ;;  %v362_v6 = vsel %vm86_vm0, %v1033_v46, -inf }
  0x8f   :  { %880 = vst [vmem:[%s1581_s3] sm:$0xff] %v1045_v52  ;;  %881 = vst [vmem:[%s1581_s3 + $0x8] sm:$0xff] %v1047_v53  ;;  %v529_v7 = vmul.f32 %v527_v59, %v28_v49  ;;  %v530_v8 = vmul.f32 %v527_v59, %v29_v50  ;;  %v531_v9 = vmul.f32 %v527_v59, %v30_v56  ;;  %v694_v13 = vpop.permute.xlu1 %693  ;;  %v361_v20 = vsel %vm86_vm0, %v352_v0, -inf }
  0x90   :  { %882 = vst [vmem:[%s1581_s3 + $0x10] sm:$0xff] %v1049_v54  ;;  %883 = vst [vmem:[%s1581_s3 + $0x18] sm:$0xff] %v1051_v55  ;;  %v532_v12 = vmul.f32 %v527_v59, %v31_v57  ;;  %v514_v14 = vmul.f32 %v512_v63, %v24_v58  ;;  %v515_v15 = vmul.f32 %v512_v63, %v25_v60  ;;  %v363_v21 = vsel %vm86_vm0, %v353_v1, -inf }
  0x91   :  { %v516_v16 = vmul.f32 %v512_v63, %v26_v61  ;;  %v517_v17 = vmul.f32 %v512_v63, %v27_v62  ;;  %v716_v18 = vrot.slane %v709_v2, %v1001_v11  ;;  %v701_v19 = vrot.slane %v694_v13, %v1001_v11 }
  0x92   :  { %v1121_v22 = vadd.f32 %v529_v7, %v514_v14  ;;  %v1123_v23 = vadd.f32 %v530_v8, %v515_v15  ;;  %v364_v34 = vsel %vm86_vm0, %v1035_v47, -inf  ;;  %v366_v35 = vsel %vm86_vm0, %v354_v3, -inf }
  0x93   :  { %v1125_v24 = vadd.f32 %v531_v9, %v516_v16  ;;  %v1127_v25 = vadd.f32 %v532_v12, %v517_v17  ;;  %v718_v26 = vmul.f32 %v716_v18, %v24_v58  ;;  %v719_v27 = vmul.f32 %v716_v18, %v25_v60 }
  0x94   :  { %v720_v28 = vmul.f32 %v716_v18, %v26_v61  ;;  %v721_v29 = vmul.f32 %v716_v18, %v27_v62  ;;  %888 = vst [vmem:[%s1581_s3 + $0x40] sm:$0xff] %v1121_v22  ;;  %889 = vst [vmem:[%s1581_s3 + $0x48] sm:$0xff] %v1123_v23  ;;  %v703_v30 = vmul.f32 %v701_v19, %v28_v49  ;;  %v368_v36 = vsel %vm86_vm0, %v1037_v48, -inf }
  0x95   :  { %890 = vst [vmem:[%s1581_s3 + $0x50] sm:$0xff] %v1125_v24  ;;  %891 = vst [vmem:[%s1581_s3 + $0x58] sm:$0xff] %v1127_v25  ;;  %v704_v31 = vmul.f32 %v701_v19, %v29_v50  ;;  %v705_v32 = vmul.f32 %v701_v19, %v30_v56  ;;  %v706_v33 = vmul.f32 %v701_v19, %v31_v57  ;;  %v370_v37 = vsel %vm86_vm0, %v355_v4, -inf }
  0x96   :  { %v1151_v38 = vadd.f32 %v718_v26, %v703_v30  ;;  %v365_v42 = vmax.f32 %v360_v5, %v364_v34  ;;  %v367_v43 = vmax.f32 %v361_v20, %v366_v35  ;;  %v369_v44 = vmax.f32 %v362_v6, %v368_v36 }
  0x97   :  { %v1153_v39 = vadd.f32 %v719_v27, %v704_v31  ;;  %v1155_v40 = vadd.f32 %v720_v28, %v705_v32  ;;  %v1157_v41 = vadd.f32 %v721_v29, %v706_v33  ;;  %v371_v49 = vmax.f32 %v363_v21, %v370_v37 }
  0x98   :  { %892 = vst [vmem:[%s1581_s3 + $0x60] sm:$0xff] %v1151_v38  ;;  %v78_v50 = vcombine.high %v1045_v52, %v1045_v52  ;;  %v79_v51 = vcombine.high %v1047_v53, %v1047_v53  ;;  %v80_v56 = vcombine.high %v1049_v54, %v1049_v54  ;;  %v81_v57 = vcombine.high %v1051_v55, %v1051_v55 }
  0x99   :  { %893 = vst [vmem:[%s1581_s3 + $0x68] sm:$0xff] %v1153_v39  ;;  %894 = vst [vmem:[%s1581_s3 + $0x70] sm:$0xff] %v1155_v40  ;;  %v372_v58 = vmax.f32 %v365_v42, %v367_v43  ;;  %v373_v59 = vmax.f32 %v369_v44, %v371_v49  ;;  %v87_v60 = vsel %vm86_vm0, %v1045_v52, -inf  ;;  %v89_v61 = vsel %vm86_vm0, %v1047_v53, -inf }
  0x9a   :  { %895 = vst [vmem:[%s1581_s3 + $0x78] sm:$0xff] %v1157_v41  ;;  %v88_v62 = vsel %vm86_vm0, %v78_v50, -inf  ;;  %v90_v63 = vsel %vm86_vm0, %v79_v51, -inf  ;;  %v91_v0 = vsel %vm86_vm0, %v1049_v54, -inf  ;;  %v93_v1 = vsel %vm86_vm0, %v80_v56, -inf }
  0x9b   :  { %v374_v2 = vmax.f32 %v372_v58, %v373_v59  ;;  %v92_v3 = vmax.f32 %v87_v60, %v91_v0  ;;  %v94_v4 = vmax.f32 %v88_v62, %v93_v1  ;;  %v95_v5 = vsel %vm86_vm0, %v1051_v55, -inf }
  0x9c   :  { %v96_v6 = vmax.f32 %v89_v61, %v95_v5  ;;  %v97_v7 = vsel %vm86_vm0, %v81_v57, -inf  ;;  %v541_v8 = vcombine.high %v1121_v22, %v1121_v22  ;;  %v542_v9 = vcombine.high %v1123_v23, %v1123_v23 }
  0x9d   :  { %375 = vmax.xlane.f32.xlu0 %v374_v2  ;;  %v98_v12 = vmax.f32 %v90_v63, %v97_v7  ;;  %v99_v13 = vmax.f32 %v92_v3, %v94_v4  ;;  %v543_v14 = vcombine.high %v1125_v24, %v1125_v24  ;;  %v544_v15 = vcombine.high %v1127_v25, %v1127_v25 }
  0x9e   :  { %v549_v16 = vsel %vm86_vm0, %v1121_v22, -inf  ;;  %v550_v17 = vsel %vm86_vm0, %v541_v8, -inf  ;;  %v551_v18 = vsel %vm86_vm0, %v1123_v23, -inf  ;;  %v552_v19 = vsel %vm86_vm0, %v542_v9, -inf  ;;  %v909_v8 = vld [vmem:[%s1582_s2 + $0x1] ss:$2 sm:$0xff] }
  0x9f   :  { %v100_v20 = vmax.f32 %v96_v6, %v98_v12  ;;  %v553_v21 = vsel %vm86_vm0, %v1125_v24, -inf  ;;  %v555_v26 = vsel %vm86_vm0, %v543_v14, -inf  ;;  %v557_v27 = vsel %vm86_vm0, %v1127_v25, -inf }
  0xa0   :  { %v554_v28 = vmax.f32 %v549_v16, %v553_v21  ;;  %v556_v29 = vmax.f32 %v550_v17, %v555_v26  ;;  %v558_v30 = vmax.f32 %v551_v18, %v557_v27  ;;  %v559_v31 = vsel %vm86_vm0, %v544_v15, -inf }
  0xa1   :  { %v101_v32 = vmax.f32 %v99_v13, %v100_v20  ;;  %v560_v33 = vmax.f32 %v552_v19, %v559_v31  ;;  %v730_v34 = vcombine.high %v1151_v38, %v1151_v38  ;;  %v731_v35 = vcombine.high %v1153_v39, %v1153_v39 }
  0xa2   :  { %v561_v36 = vmax.f32 %v554_v28, %v556_v29  ;;  %v732_v37 = vcombine.high %v1155_v40, %v1155_v40  ;;  %v733_v42 = vcombine.high %v1157_v41, %v1157_v41  ;;  %v738_v43 = vsel %vm86_vm0, %v1151_v38, -inf }
  0xa3   :  { %102 = vmax.xlane.f32.xlu1 %v101_v32  ;;  %v562_v44 = vmax.f32 %v558_v30, %v560_v33  ;;  %v739_v49 = vsel %vm86_vm0, %v730_v34, -inf  ;;  %v740_v50 = vsel %vm86_vm0, %v1153_v39, -inf  ;;  %v741_v51 = vsel %vm86_vm0, %v731_v35, -inf }
  0xa4   :  { %v742_v56 = vsel %vm86_vm0, %v1155_v40, -inf  ;;  %v744_v57 = vsel %vm86_vm0, %v732_v37, -inf  ;;  %v746_v58 = vsel %vm86_vm0, %v1157_v41, -inf  ;;  %v748_v59 = vsel %vm86_vm0, %v733_v42, -inf }
  0xa5   :  { %v563_v60 = vmax.f32 %v561_v36, %v562_v44  ;;  %v743_v61 = vmax.f32 %v738_v43, %v742_v56  ;;  %v745_v62 = vmax.f32 %v739_v49, %v744_v57  ;;  %v747_v63 = vmax.f32 %v740_v50, %v746_v58 }
  0xa6   :  { %v749_v0 = vmax.f32 %v741_v51, %v748_v59  ;;  %v162_v5 = vsub.s32 0, %v998_v10  ;;  %v166_v6 = vsub.s32 1, %v998_v10  ;;  %v170_v9 = vsub.s32 2, %v998_v10  ;;  %v36_v59 = vld [vmem:[%s1582_s2] ss:$2 sm:$0xff] }
  0xa7   :  { %564 = vmax.xlane.f32.xlu0 %v563_v60  ;;  %v750_v1 = vmax.f32 %v743_v61, %v745_v62  ;;  %v174_v12 = vsub.s32 3, %v998_v10  ;;  %v178_v13 = vsub.s32 4, %v998_v10  ;;  %v182_v14 = vsub.s32 5, %v998_v10 }
  0xa8   :  { %v751_v2 = vmax.f32 %v747_v63, %v749_v0  ;;  %v186_v19 = vsub.s32 6, %v998_v10  ;;  %v190_v20 = vsub.s32 7, %v998_v10  ;;  %v238_v21 = vrot.slane %v909_v8, %v162_v5 }
  0xa9   :  { %v242_v26 = vrot.slane %v909_v8, %v166_v6  ;;  %v163_v0 = vrot.slane %v36_v59, %v162_v5  ;;  %v171_v5 = vrot.slane %v36_v59, %v170_v9 }
  0xaa   :  { %v752_v3 = vmax.f32 %v750_v1, %v751_v2  ;;  %v262_v37 = vrot.slane %v909_v8, %v186_v19  ;;  %v266_v42 = vrot.slane %v909_v8, %v190_v20 }
  0xab   :  { %v1268_v56 = vcombine.low %v238_v21, %v242_v26 }
  0xac   :  { %753 = vmax.xlane.f32.xlu1 %v752_v3 }
 0x12a   :  { %v376_v4 = vpop.xlane.xlu0 %375 }
 0x12b   :  { %v384_v7 = vrot.slane %v376_v4, %v1001_v11 }
 0x12d   :  { %v386_v15 = vsub.f32 %v1031_v45, %v384_v7  ;;  %v387_v16 = vsub.f32 %v1033_v46, %v384_v7  ;;  %v388_v17 = vsub.f32 %v1035_v47, %v384_v7  ;;  %v389_v18 = vsub.f32 %v1037_v48, %v384_v7 }
 0x12e   :  { %v246_v45 = vrot.slane %v909_v8, %v170_v9  ;;  %v250_v46 = vrot.slane %v909_v8, %v174_v12  ;;  %v254_v47 = vrot.slane %v909_v8, %v178_v13  ;;  %v258_v48 = vrot.slane %v909_v8, %v182_v14 }
 0x12f   :  { %v390_v27 = vmul.f32 20.0, %v386_v15  ;;  %v391_v28 = vmul.f32 20.0, %v387_v16  ;;  %v392_v29 = vmul.f32 20.0, %v388_v17  ;;  %v393_v30 = vmul.f32 20.0, %v389_v18 }
 0x130   :  { %v103_v31 = vpop.xlane.xlu1 %102  ;;  %v1270_v57 = vcombine.low %v246_v45, %v250_v46  ;;  %v1272_v58 = vcombine.low %v254_v47, %v258_v48  ;;  %v167_v16 = vrot.slane %v36_v59, %v166_v6  ;;  %v183_v46 = vrot.slane %v36_v59, %v182_v14 }
 0x131   :  { %v394_v32 = vmul.f32 1.442695, %v390_v27  ;;  %v396_v33 = vmul.f32 1.442695, %v391_v28  ;;  %v111_v34 = vrot.slane %v103_v31, %v1001_v11  ;;  %v398_v35 = vmul.f32 1.442695, %v392_v29 }
 0x132   :  { %v400_v36 = vmul.f32 1.442695, %v393_v30  ;;  %v1317_v14 = vcombine.low %v163_v0, %v167_v16 }
 0x133   :  { %918 = vpow2.f32 %v394_v32  ;;  %v113_v43 = vsub.f32 %v1045_v52, %v111_v34  ;;  %v114_v44 = vsub.f32 %v1047_v53, %v111_v34  ;;  %v115_v49 = vsub.f32 %v1049_v54, %v111_v34 }
 0x134   :  { %v116_v50 = vsub.f32 %v1051_v55, %v111_v34  ;;  %v565_v51 = vpop.xlane.xlu0 %564  ;;  %920 = vpow2.f32 %v396_v33  ;;  %v1278_v55 = vcombine.low %v262_v37, %v266_v42 }
 0x135   :  { %v117_v60 = vmul.f32 20.0, %v113_v43  ;;  %v118_v52 = vmul.f32 20.0, %v114_v44  ;;  %v119_v61 = vmul.f32 20.0, %v115_v49  ;;  %922 = vpow2.f32 %v398_v35 }
 0x136   :  { %v120_v53 = vmul.f32 20.0, %v116_v50  ;;  %v573_v54 = vrot.slane %v565_v51, %v1001_v11  ;;  %924 = vpow2.f32 %v400_v36 }
 0x137   :  { %v121_v62 = vmul.f32 1.442695, %v117_v60  ;;  %v123_v63 = vmul.f32 1.442695, %v118_v52  ;;  %v125_v1 = vmul.f32 1.442695, %v119_v61 }
 0x138   :  { %v575_v2 = vsub.f32 %v1121_v22, %v573_v54  ;;  %v576_v3 = vsub.f32 %v1123_v23, %v573_v54  ;;  %v577_v4 = vsub.f32 %v1125_v24, %v573_v54  ;;  %v127_v7 = vmul.f32 1.442695, %v120_v53 }
 0x139   :  { %926 = vpow2.f32 %v121_v62  ;;  %v578_v8 = vsub.f32 %v1127_v25, %v573_v54  ;;  %v754_v15 = vpop.xlane.xlu1 %753  ;;  %v175_v22 = vrot.slane %v36_v59, %v174_v12  ;;  %v179_v23 = vrot.slane %v36_v59, %v178_v13 }
 0x13a   :  { %928 = vpow2.f32 %v123_v63  ;;  %v579_v17 = vmul.f32 20.0, %v575_v2  ;;  %v580_v18 = vmul.f32 20.0, %v576_v3  ;;  %v581_v21 = vmul.f32 20.0, %v577_v4 }
 0x13b   :  { %v762_v26 = vrot.slane %v754_v15, %v1001_v11  ;;  %930 = vpow2.f32 %v125_v1  ;;  %v582_v24 = vmul.f32 20.0, %v578_v8  ;;  %v1326_v42 = vcombine.low %v171_v5, %v175_v22 }
 0x13c   :  { %v583_v25 = vmul.f32 1.442695, %v579_v17  ;;  %v585_v27 = vmul.f32 1.442695, %v580_v18  ;;  %932 = vpow2.f32 %v127_v7  ;;  %v587_v9 = vmul.f32 1.442695, %v581_v21 }
 0x13d   :  { %v1291_v6 = vpop.eup %918  ;;  %v764_v28 = vsub.f32 %v1151_v38, %v762_v26  ;;  %v765_v11 = vsub.f32 %v1153_v39, %v762_v26  ;;  %v766_v29 = vsub.f32 %v1155_v40, %v762_v26  ;;  %v767_v12 = vsub.f32 %v1157_v41, %v762_v26 }
 0x13e   :  { %934 = vpow2.f32 %v583_v25  ;;  %v406_v13 = vcombine.high %v1291_v6, %v1291_v6  ;;  %v1299_v30 = vpop.eup %920  ;;  %v589_v39 = vmul.f32 1.442695, %v582_v24  ;;  %v1307_v40 = vrot.slane %v36_v59, %v186_v19 }
 0x13f   :  { %936 = vpow2.f32 %v585_v27  ;;  %v768_v31 = vmul.f32 20.0, %v764_v28  ;;  %v769_v45 = vmul.f32 20.0, %v765_v11  ;;  %v1303_v38 = vpop.eup %922  ;;  %v770_v47 = vmul.f32 20.0, %v766_v29 }
 0x140   :  { %v1311_v41 = vrot.slane %v36_v59, %v190_v20  ;;  %v1313_v48 = vpop.eup %924  ;;  %v771_v32 = vmul.f32 20.0, %v767_v12  ;;  %v414_v34 = vsel %vm86_vm0, %v1291_v6, 0.0  ;;  %938 = vpow2.f32 %v587_v9 }
 0x141   :  { %v772_v33 = vmul.f32 1.442695, %v768_v31  ;;  %v774_v35 = vmul.f32 1.442695, %v769_v45  ;;  %v407_v36 = vcombine.high %v1299_v30, %v1299_v30  ;;  %v415_v19 = vsel %vm86_vm0, %v406_v13, 0.0 }
 0x142   :  { %v408_v10 = vcombine.high %v1303_v38, %v1303_v38  ;;  %v416_v20 = vadd.f32 %v415_v19, %v414_v34  ;;  %v1328_v43 = vcombine.low %v179_v23, %v183_v46  ;;  %940 = vpow2.f32 %v589_v39 }
 0x143   :  { %v1322_v37 = vpop.eup %926  ;;  %v776_v49 = vmul.f32 1.442695, %v770_v47  ;;  %v409_v50 = vcombine.high %v1313_v48, %v1313_v48  ;;  %v417_v51 = vsel %vm86_vm0, %v1299_v30, 0.0  ;;  %942 = vpow2.f32 %v772_v33 }
 0x144   :  { %v1330_v44 = vpop.eup %928  ;;  %v778_v59 = vmul.f32 1.442695, %v771_v32  ;;  %v418_v60 = vadd.f32 %v417_v51, %v416_v20  ;;  %v133_v52 = vcombine.high %v1322_v37, %v1322_v37  ;;  %944 = vpow2.f32 %v774_v35 }
 0x145   :  { %v1338_v61 = vpop.eup %930  ;;  %v419_v53 = vsel %vm86_vm0, %v407_v36, 0.0  ;;  %v421_v54 = vsel %vm86_vm0, %v1303_v38, 0.0  ;;  %v134_v62 = vcombine.high %v1330_v44, %v1330_v44  ;;  %v423_v1 = vsel %vm86_vm0, %v408_v10, 0.0 }
 0x146   :  { %v1345_v63 = vpop.eup %932  ;;  %v420_v0 = vadd.f32 %v419_v53, %v418_v60  ;;  %v141_v2 = vsel %vm86_vm0, %v1322_v37, 0.0  ;;  %v142_v3 = vsel %vm86_vm0, %v133_v52, 0.0  ;;  %946 = vpow2.f32 %v776_v49 }
 0x147   :  { %v425_v7 = vsel %vm86_vm0, %v1313_v48, 0.0  ;;  %v427_v8 = vsel %vm86_vm0, %v409_v50, 0.0  ;;  %v143_v15 = vadd.f32 %v142_v3, %v141_v2  ;;  %v135_v18 = vcombine.high %v1338_v61, %v1338_v61 }
 0x148   :  { %v1351_v4 = vpop.eup %934  ;;  %v422_v17 = vadd.f32 %v421_v54, %v420_v0  ;;  %v144_v21 = vsel %vm86_vm0, %v1330_v44, 0.0  ;;  %v136_v5 = vcombine.high %v1345_v63, %v1345_v63  ;;  %v146_v23 = vsel %vm86_vm0, %v134_v62, 0.0 }
 0x149   :  { %v1356_v16 = vpop.eup %936  ;;  %v595_v26 = vcombine.high %v1351_v4, %v1351_v4  ;;  %v145_v22 = vadd.f32 %v144_v21, %v143_v15  ;;  %v603_v24 = vsel %vm86_vm0, %v1351_v4, 0.0  ;;  %v275_v11 = vmul.f32 %v1322_v37, %v1268_v56 }
 0x14a   :  { %v424_v25 = vadd.f32 %v423_v1, %v422_v17  ;;  %v596_v27 = vcombine.high %v1356_v16, %v1356_v16  ;;  %v1374_v29 = vpop.eup %938  ;;  %948 = vpow2.f32 %v778_v59  ;;  %v148_v12 = vsel %vm86_vm0, %v1338_v61, 0.0 }
 0x14b   :  { %v604_v28 = vsel %vm86_vm0, %v595_v26, 0.0  ;;  %v147_v9 = vadd.f32 %v146_v23, %v145_v22  ;;  %v150_v45 = vsel %vm86_vm0, %v135_v18, 0.0  ;;  %v606_v46 = vsel %vm86_vm0, %v1356_v16, 0.0 }
 0x14c   :  { %v605_v13 = vadd.f32 %v604_v28, %v603_v24  ;;  %v426_v31 = vadd.f32 %v425_v7, %v424_v25  ;;  %v276_v39 = vmul.f32 %v1330_v44, %v1270_v57  ;;  %v1383_v47 = vpop.eup %940  ;;  %v152_v33 = vsel %vm86_vm0, %v1345_v63, 0.0 }
 0x14d   :  { %v149_v32 = vadd.f32 %v148_v12, %v147_v9  ;;  %v154_v34 = vsel %vm86_vm0, %v136_v5, 0.0  ;;  %v1388_v36 = vpop.eup %942  ;;  %v597_v10 = vcombine.high %v1374_v29, %v1374_v29  ;;  %v608_v20 = vsel %vm86_vm0, %v596_v27, 0.0 }
 0x14e   :  { %v607_v35 = vadd.f32 %v606_v46, %v605_v13  ;;  %v428_v19 = vadd.f32 %v427_v8, %v426_v31  ;;  %v283_v49 = vcombine.high %v275_v11, %v275_v11  ;;  %v1393_v50 = vpop.eup %944  ;;  %v610_v60 = vsel %vm86_vm0, %v1374_v29, 0.0 }
 0x14f   :  { %v151_v51 = vadd.f32 %v150_v45, %v149_v32  ;;  %v277_v52 = vmul.f32 %v1338_v61, %v1272_v58  ;;  %v598_v53 = vcombine.high %v1383_v47, %v1383_v47  ;;  %v284_v54 = vcombine.high %v276_v39, %v276_v39 }
 0x150   :  { %v609_v59 = vadd.f32 %v608_v20, %v607_v35  ;;  %429 = vadd.xlane.f32.xlu1 %v428_v19  ;;  %v291_v62 = vsel %vm86_vm0, %v275_v11, 0.0  ;;  %v292_v0 = vsel %vm86_vm0, %v283_v49, 0.0  ;;  %v1403_v1 = vpop.eup %946  ;;  %v278_v7 = vmul.f32 %v1345_v63, %v1278_v55 }
 0x151   :  { %v153_v2 = vadd.f32 %v152_v33, %v151_v51  ;;  %v293_v8 = vadd.f32 %v292_v0, %v291_v62  ;;  %v612_v15 = vsel %vm86_vm0, %v597_v10, 0.0  ;;  %v614_v17 = vsel %vm86_vm0, %v1383_v47, 0.0 }
 0x152   :  { %v611_v3 = vadd.f32 %v610_v60, %v609_v59  ;;  %v294_v18 = vsel %vm86_vm0, %v276_v39, 0.0  ;;  %v784_v21 = vcombine.high %v1388_v36, %v1388_v36  ;;  %v285_v22 = vcombine.high %v277_v52, %v277_v52 }
 0x153   :  { %v155_v26 = vadd.f32 %v154_v34, %v153_v2  ;;  %v295_v23 = vadd.f32 %v294_v18, %v293_v8  ;;  %v296_v24 = vsel %vm86_vm0, %v284_v54, 0.0  ;;  %v785_v25 = vcombine.high %v1393_v50, %v1393_v50 }
 0x154   :  { %v613_v5 = vadd.f32 %v612_v15, %v611_v3  ;;  %v792_v27 = vsel %vm86_vm0, %v1388_v36, 0.0  ;;  %v793_v28 = vsel %vm86_vm0, %v784_v21, 0.0  ;;  %v1419_v11 = vpop.eup %948  ;;  %v286_v12 = vcombine.high %v278_v7, %v278_v7 }
 0x155   :  { %156 = vadd.xlane.f32.xlu0 %v155_v26  ;;  %v297_v13 = vadd.f32 %v296_v24, %v295_v23  ;;  %v794_v31 = vadd.f32 %v793_v28, %v792_v27  ;;  %v616_v45 = vsel %vm86_vm0, %v598_v53, 0.0  ;;  %v298_v46 = vsel %vm86_vm0, %v277_v52, 0.0 }
 0x156   :  { %v615_v9 = vadd.f32 %v614_v17, %v613_v5  ;;  %v795_v39 = vsel %vm86_vm0, %v1393_v50, 0.0  ;;  %v1427_v32 = vcombine.low %v1307_v40, %v1311_v41  ;;  %v300_v35 = vsel %vm86_vm0, %v285_v22, 0.0 }
 0x157   :  { %v299_v34 = vadd.f32 %v298_v46, %v297_v13  ;;  %v796_v19 = vadd.f32 %v795_v39, %v794_v31  ;;  %v786_v10 = vcombine.high %v1403_v1, %v1403_v1  ;;  %v797_v20 = vsel %vm86_vm0, %v785_v25, 0.0 }
 0x158   :  { %v617_v33 = vadd.f32 %v616_v45, %v615_v9  ;;  %v432_v49 = vmul.f32 %v1291_v6, %v1317_v14  ;;  %v433_v51 = vmul.f32 %v1299_v30, %v1326_v42  ;;  %v302_v40 = vsel %vm86_vm0, %v278_v7, 0.0 }
 0x159   :  { %v301_v59 = vadd.f32 %v300_v35, %v299_v34  ;;  %v304_v41 = vsel %vm86_vm0, %v286_v12, 0.0  ;;  %v798_v60 = vadd.f32 %v797_v20, %v796_v19  ;;  %v787_v52 = vcombine.high %v1419_v11, %v1419_v11 }
 0x15a   :  { %618 = vadd.xlane.f32.xlu0 %v617_v33  ;;  %v799_v53 = vsel %vm86_vm0, %v1403_v1, 0.0  ;;  %v440_v54 = vcombine.high %v432_v49, %v432_v49  ;;  %v200_v62 = vmul.f32 %v1322_v37, %v1317_v14  ;;  %v434_v3 = vmul.f32 %v1303_v38, %v1328_v43 }
 0x15b   :  { %v303_v0 = vadd.f32 %v302_v40, %v301_v59  ;;  %v800_v2 = vadd.f32 %v799_v53, %v798_v60  ;;  %v441_v8 = vcombine.high %v433_v51, %v433_v51  ;;  %v801_v7 = vsel %vm86_vm0, %v786_v10, 0.0 }
 0x15c   :  { %v448_v15 = vsel %vm86_vm0, %v432_v49, 0.0  ;;  %v449_v17 = vsel %vm86_vm0, %v440_v54, 0.0  ;;  %v201_v18 = vmul.f32 %v1330_v44, %v1326_v42  ;;  %v803_v37 = vsel %vm86_vm0, %v1419_v11, 0.0 }
 0x15d   :  { %v305_v21 = vadd.f32 %v304_v41, %v303_v0  ;;  %v802_v26 = vadd.f32 %v801_v7, %v800_v2  ;;  %v450_v5 = vadd.f32 %v449_v17, %v448_v15  ;;  %v805_v22 = vsel %vm86_vm0, %v787_v52, 0.0 }
 0x15e   :  { %v435_v23 = vmul.f32 %v1313_v48, %v1427_v32  ;;  %v451_v24 = vsel %vm86_vm0, %v433_v51, 0.0  ;;  %v208_v25 = vcombine.high %v200_v62, %v200_v62  ;;  %v442_v28 = vcombine.high %v434_v3, %v434_v3 }
 0x15f   :  { %306 = vadd.xlane.f32.xlu0 %v305_v21  ;;  %v804_v27 = vadd.f32 %v803_v37, %v802_v26  ;;  %v452_v9 = vadd.f32 %v451_v24, %v450_v5  ;;  %v453_v44 = vsel %vm86_vm0, %v441_v8, 0.0  ;;  %v202_v12 = vmul.f32 %v1338_v61, %v1328_v43 }
 0x160   :  { %v209_v13 = vcombine.high %v201_v18, %v201_v18  ;;  %v216_v31 = vsel %vm86_vm0, %v200_v62, 0.0  ;;  %v217_v45 = vsel %vm86_vm0, %v208_v25, 0.0  ;;  %v203_v33 = vmul.f32 %v1345_v63, %v1427_v32 }
 0x161   :  { %v806_v46 = vadd.f32 %v805_v22, %v804_v27  ;;  %v454_v39 = vadd.f32 %v453_v44, %v452_v9  ;;  %v218_v34 = vadd.f32 %v217_v45, %v216_v31  ;;  %v443_v35 = vcombine.high %v435_v23, %v435_v23 }
 0x162   :  { %v455_v19 = vsel %vm86_vm0, %v434_v3, 0.0  ;;  %v219_v10 = vsel %vm86_vm0, %v201_v18, 0.0  ;;  %v655_v61 = vmul.f32 %v1351_v4, %v1268_v56  ;;  %v656_v51 = vmul.f32 %v1356_v16, %v1270_v57 }
 0x163   :  { %807 = vadd.xlane.f32.xlu1 %v806_v46  ;;  %v456_v20 = vadd.f32 %v455_v19, %v454_v39  ;;  %v220_v49 = vadd.f32 %v219_v10, %v218_v34  ;;  %v457_v59 = vsel %vm86_vm0, %v442_v28, 0.0  ;;  %v459_v40 = vsel %vm86_vm0, %v435_v23, 0.0 }
 0x164   :  { %v210_v63 = vcombine.high %v202_v12, %v202_v12  ;;  %v221_v41 = vsel %vm86_vm0, %v209_v13, 0.0  ;;  %v211_v52 = vcombine.high %v203_v33, %v203_v33  ;;  %v663_v54 = vcombine.high %v655_v61, %v655_v61 }
 0x165   :  { %v458_v60 = vadd.f32 %v457_v59, %v456_v20  ;;  %v222_v53 = vadd.f32 %v221_v41, %v220_v49  ;;  %v223_v62 = vsel %vm86_vm0, %v202_v12, 0.0  ;;  %v657_v0 = vmul.f32 %v1374_v29, %v1272_v58 }
 0x166   :  { %v664_v2 = vcombine.high %v656_v51, %v656_v51  ;;  %v466_v3 = vmul.f32 %v1291_v6, %v1268_v56  ;;  %v671_v15 = vsel %vm86_vm0, %v655_v61, 0.0  ;;  %v672_v17 = vsel %vm86_vm0, %v663_v54, 0.0 }
 0x167   :  { %v460_v8 = vadd.f32 %v459_v40, %v458_v60  ;;  %v224_v7 = vadd.f32 %v223_v62, %v222_v53  ;;  %v461_v18 = vsel %vm86_vm0, %v443_v35, 0.0  ;;  %v225_v21 = vsel %vm86_vm0, %v210_v63, 0.0 }
 0x168   :  { %v673_v26 = vadd.f32 %v672_v17, %v671_v15  ;;  %v467_v37 = vmul.f32 %v1299_v30, %v1270_v57  ;;  %v658_v23 = vmul.f32 %v1383_v47, %v1278_v55  ;;  %v674_v6 = vsel %vm86_vm0, %v656_v51, 0.0 }
 0x169   :  { %v462_v5 = vadd.f32 %v461_v18, %v460_v8  ;;  %v226_v22 = vadd.f32 %v225_v21, %v224_v7  ;;  %v227_v24 = vsel %vm86_vm0, %v203_v33, 0.0  ;;  %v665_v25 = vcombine.high %v657_v0, %v657_v0 }
 0x16a   :  { %v675_v27 = vadd.f32 %v674_v6, %v673_v26  ;;  %v474_v28 = vcombine.high %v466_v3, %v466_v3  ;;  %v229_v44 = vsel %vm86_vm0, %v211_v52, 0.0  ;;  %v676_v12 = vsel %vm86_vm0, %v664_v2, 0.0 }
 0x16b   :  { %463 = vadd.xlane.f32.xlu0 %v462_v5  ;;  %v228_v9 = vadd.f32 %v227_v24, %v226_v22  ;;  %v468_v30 = vmul.f32 %v1303_v38, %v1272_v58  ;;  %v475_v31 = vcombine.high %v467_v37, %v467_v37  ;;  %v482_v45 = vsel %vm86_vm0, %v466_v3, 0.0 }
 0x16c   :  { %v677_v13 = vadd.f32 %v676_v12, %v675_v27  ;;  %v483_v46 = vsel %vm86_vm0, %v474_v28, 0.0  ;;  %v666_v33 = vcombine.high %v658_v23, %v658_v23  ;;  %v678_v34 = vsel %vm86_vm0, %v657_v0, 0.0 }
 0x16d   :  { %v230_v39 = vadd.f32 %v229_v44, %v228_v9  ;;  %v484_v35 = vadd.f32 %v483_v46, %v482_v45  ;;  %v680_v10 = vsel %vm86_vm0, %v665_v25, 0.0  ;;  %v485_v20 = vsel %vm86_vm0, %v467_v37, 0.0 }
 0x16e   :  { %v679_v19 = vadd.f32 %v678_v34, %v677_v13  ;;  %v810_v49 = vmul.f32 %v1388_v36, %v1317_v14  ;;  %v682_v38 = vsel %vm86_vm0, %v658_v23, 0.0  ;;  %v469_v61 = vmul.f32 %v1313_v48, %v1278_v55 }
 0x16f   :  { %231 = vadd.xlane.f32.xlu1 %v230_v39  ;;  %v486_v51 = vadd.f32 %v485_v20, %v484_v35  ;;  %v811_v59 = vmul.f32 %v1393_v50, %v1326_v42  ;;  %v476_v63 = vcombine.high %v468_v30, %v468_v30  ;;  %v487_v41 = vsel %vm86_vm0, %v475_v31, 0.0 }
 0x170   :  { %v681_v40 = vadd.f32 %v680_v10, %v679_v19  ;;  %v818_v60 = vcombine.high %v810_v49, %v810_v49  ;;  %v489_v53 = vsel %vm86_vm0, %v468_v30, 0.0  ;;  %v812_v54 = vmul.f32 %v1403_v1, %v1328_v43 }
 0x171   :  { %v488_v52 = vadd.f32 %v487_v41, %v486_v51  ;;  %v826_v62 = vsel %vm86_vm0, %v810_v49, 0.0  ;;  %v819_v2 = vcombine.high %v811_v59, %v811_v59  ;;  %v621_v3 = vmul.f32 %v1351_v4, %v1317_v14 }
 0x172   :  { %v683_v0 = vadd.f32 %v682_v38, %v681_v40  ;;  %v827_v48 = vsel %vm86_vm0, %v818_v60, 0.0  ;;  %v684_v8 = vsel %vm86_vm0, %v666_v33, 0.0  ;;  %v477_v7 = vcombine.high %v469_v61, %v469_v61 }
 0x173   :  { %v490_v15 = vadd.f32 %v489_v53, %v488_v52  ;;  %v828_v17 = vadd.f32 %v827_v48, %v826_v62  ;;  %v491_v21 = vsel %vm86_vm0, %v476_v63, 0.0  ;;  %v829_v26 = vsel %vm86_vm0, %v811_v59, 0.0 }
 0x174   :  { %v685_v18 = vadd.f32 %v684_v8, %v683_v0  ;;  %v622_v37 = vmul.f32 %v1356_v16, %v1326_v42  ;;  %v813_v22 = vmul.f32 %v1419_v11, %v1427_v32  ;;  %v493_v14 = vsel %vm86_vm0, %v469_v61, 0.0 }
 0x175   :  { %v492_v5 = vadd.f32 %v491_v21, %v490_v15  ;;  %v830_v23 = vadd.f32 %v829_v26, %v828_v17  ;;  %v820_v4 = vcombine.high %v812_v54, %v812_v54  ;;  %v831_v6 = vsel %vm86_vm0, %v819_v2, 0.0 }
 0x176   :  { %686 = vadd.xlane.f32.xlu0 %v685_v18  ;;  %v629_v24 = vcombine.high %v621_v3, %v621_v3  ;;  %v495_v27 = vsel %vm86_vm0, %v477_v7, 0.0  ;;  %v833_v9 = vsel %vm86_vm0, %v812_v54, 0.0  ;;  %v623_v42 = vmul.f32 %v1374_v29, %v1328_v43 }
 0x177   :  { %v494_v25 = vadd.f32 %v493_v14, %v492_v5  ;;  %v832_v28 = vadd.f32 %v831_v6, %v830_v23  ;;  %v630_v16 = vcombine.high %v622_v37, %v622_v37  ;;  %v637_v44 = vsel %vm86_vm0, %v621_v3, 0.0 }
 0x178   :  { %v638_v12 = vsel %vm86_vm0, %v629_v24, 0.0  ;;  %v821_v13 = vcombine.high %v813_v22, %v813_v22  ;;  %v835_v46 = vsel %vm86_vm0, %v820_v4, 0.0  ;;  %v640_v39 = vsel %vm86_vm0, %v622_v37, 0.0 }
 0x179   :  { %v496_v30 = vadd.f32 %v495_v27, %v494_v25  ;;  %v834_v31 = vadd.f32 %v833_v9, %v832_v28  ;;  %v639_v45 = vadd.f32 %v638_v12, %v637_v44  ;;  %v844_v33 = vmul.f32 %v1388_v36, %v1268_v56 }
 0x17a   :  { %v845_v34 = vmul.f32 %v1393_v50, %v1270_v57  ;;  %v837_v29 = vsel %vm86_vm0, %v813_v22, 0.0  ;;  %v624_v19 = vmul.f32 %v1383_v47, %v1427_v32  ;;  %v631_v10 = vcombine.high %v623_v42, %v623_v42 }
 0x17b   :  { %497 = vadd.xlane.f32.xlu1 %v496_v30  ;;  %v836_v43 = vadd.f32 %v835_v46, %v834_v31  ;;  %v641_v35 = vadd.f32 %v640_v39, %v639_v45  ;;  %v642_v20 = vsel %vm86_vm0, %v630_v16, 0.0  ;;  %v852_v49 = vcombine.high %v844_v33, %v844_v33 }
 0x17c   :  { %v839_v61 = vsel %vm86_vm0, %v821_v13, 0.0  ;;  %v644_v56 = vsel %vm86_vm0, %v623_v42, 0.0  ;;  %v846_v57 = vmul.f32 %v1403_v1, %v1272_v58  ;;  %v853_v36 = vcombine.high %v845_v34, %v845_v34 }
 0x17d   :  { %v838_v38 = vadd.f32 %v837_v29, %v836_v43  ;;  %v643_v51 = vadd.f32 %v642_v20, %v641_v35  ;;  %v860_v50 = vsel %vm86_vm0, %v844_v33, 0.0  ;;  %v861_v59 = vsel %vm86_vm0, %v852_v49, 0.0 }
 0x17e   :  { %v862_v32 = vadd.f32 %v861_v59, %v860_v50  ;;  %v632_v63 = vcombine.high %v624_v19, %v624_v19  ;;  %v646_v41 = vsel %vm86_vm0, %v631_v10, 0.0  ;;  %v863_v60 = vsel %vm86_vm0, %v845_v34, 0.0 }
 0x17f   :  { %v840_v40 = vadd.f32 %v839_v61, %v838_v38  ;;  %v645_v47 = vadd.f32 %v644_v56, %v643_v51  ;;  %v648_v54 = vsel %vm86_vm0, %v624_v19, 0.0  ;;  %v847_v58 = vmul.f32 %v1419_v11, %v1278_v55 }
 0x180   :  { %v864_v53 = vadd.f32 %v863_v60, %v862_v32  ;;  %v854_v1 = vcombine.high %v846_v57, %v846_v57  ;;  %v865_v62 = vsel %vm86_vm0, %v853_v36, 0.0  ;;  %v650_v48 = vsel %vm86_vm0, %v632_v63, 0.0 }
 0x181   :  { %841 = vadd.xlane.f32.xlu0 %v840_v40  ;;  %v647_v52 = vadd.f32 %v646_v41, %v645_v47  ;;  %v867_v3 = vsel %vm86_vm0, %v846_v57, 0.0  ;;  %v855_v15 = vcombine.high %v847_v58, %v847_v58  ;;  %v871_v21 = vsel %vm86_vm0, %v847_v58, 0.0 }
 0x182   :  { %v866_v2 = vadd.f32 %v865_v62, %v864_v53  ;;  %v869_v17 = vsel %vm86_vm0, %v854_v1, 0.0 }
 0x183   :  { %v649_v0 = vadd.f32 %v648_v54, %v647_v52  ;;  %v873_v55 = vsel %vm86_vm0, %v855_v15, 0.0 }
 0x184   :  { %v868_v7 = vadd.f32 %v867_v3, %v866_v2 }
 0x185   :  { %v651_v8 = vadd.f32 %v650_v48, %v649_v0 }
 0x186   :  { %v870_v18 = vadd.f32 %v869_v17, %v868_v7 }
 0x187   :  { %652 = vadd.xlane.f32.xlu1 %v651_v8 }
 0x188   :  { %v872_v26 = vadd.f32 %v871_v21, %v870_v18 }
 0x18a   :  { %v874_v11 = vadd.f32 %v873_v55, %v872_v26 }
 0x18c   :  { %875 = vadd.xlane.f32.xlu1 %v874_v11 }
 0x1dd   :  { %v430_v5 = vpop.xlane.xlu1 %429 }
 0x1e2   :  { %v157_v37 = vpop.xlane.xlu0 %156 }
 0x1e3   :  { %950 = vrcp.f32 %v157_v37 }
 0x1e4   :  { %952 = vrcp.f32 %v430_v5 }
 0x1e7   :  { %v619_v22 = vpop.xlane.xlu0 %618 }
 0x1e8   :  { %954 = vrcp.f32 %v619_v22 }
 0x1ec   :  { %v307_v4 = vpop.xlane.xlu0 %306 }
 0x1ed   :  { %v951_v14 = vpop.eup %950 }
 0x1ee   :  { %v308_v24 = vmul.f32 %v951_v14, %v307_v4  ;;  %v953_v42 = vpop.eup %952 }
 0x1f0   :  { %v808_v23 = vpop.xlane.xlu1 %807 }
 0x1f1   :  { %956 = vrcp.f32 %v808_v23 }
 0x1f2   :  { %v955_v31 = vpop.eup %954 }
 0x1f8   :  { %v464_v9 = vpop.xlane.xlu0 %463 }
 0x1f9   :  { %v465_v44 = vmul.f32 %v953_v42, %v464_v9 }
 0x1fb   :  { %v957_v43 = vpop.eup %956 }
 0x1fc   :  { %v232_v6 = vpop.xlane.xlu1 %231 }
 0x1fd   :  { %v233_v25 = vmul.f32 %v951_v14, %v232_v6 }
 0x1ff   :  { %v310_v27 = vsel %vm309_vm1, %v233_v25, %v308_v24 }
 0x200   :  { %v312_v28 = vsel %vm311_vm2, %v310_v27, 1.0 }
 0x201   :  { %897 = vst.msk [vmem:[%s1583_s4] sm:$0xf] %vm896_vm3, %v312_v28 }
 0x203   :  { %v687_v45 = vpop.xlane.xlu0 %686 }
 0x204   :  { %v688_v39 = vmul.f32 %v955_v31, %v687_v45 }
 0x208   :  { %v498_v16 = vpop.xlane.xlu1 %497 }
 0x209   :  { %v499_v12 = vmul.f32 %v953_v42, %v498_v16 }
 0x20b   :  { %v500_v30 = vsel %vm309_vm1, %v465_v44, %v499_v12 }
 0x20c   :  { %v501_v13 = vsel %vm311_vm2, %v500_v30, 1.0 }
 0x20d   :  { %898 = vst.msk [vmem:[%s1583_s4 + $0x4] sm:$0xf] %vm896_vm3, %v501_v13 }
 0x20e   :  { %v842_v29 = vpop.xlane.xlu0 %841 }
 0x20f   :  { %v843_v10 = vmul.f32 %v957_v43, %v842_v29 }
 0x214   :  { %v653_v46 = vpop.xlane.xlu1 %652 }
 0x215   :  { %v654_v33 = vmul.f32 %v955_v31, %v653_v46 }
 0x217   :  { %v689_v34 = vsel %vm309_vm1, %v654_v33, %v688_v39 }
 0x218   :  { %v690_v35 = vsel %vm311_vm2, %v689_v34, 1.0 }
 0x219   :  { %899 = vst.msk [vmem:[%s1583_s4 + $0x8] sm:$0xf] %vm896_vm3, %v690_v35  ;;  %v876_v19 = vpop.xlane.xlu1 %875 }
 0x21a   :  { %v877_v20 = vmul.f32 %v957_v43, %v876_v19 }
 0x21c   :  { %v878_v49 = vsel %vm309_vm1, %v843_v10, %v877_v20 }
 0x21d   :  { %v879_v38 = vsel %vm311_vm2, %v878_v49, 1.0 }
 0x21e   :  { %900 = vst.msk [vmem:[%s1583_s4 + $0xc] sm:$0xf] %vm896_vm3, %v879_v38 }

</bundles_post_ra>
